<compile_context>
chip_gen: v7x
topology: tpu7x:2x2x1
jax: 0.10.0
libtpu: 0.0.40
codegen_flags: <defaults>
</compile_context>

<pallas_src>
import math
import numpy as np
import jax
import jax.numpy as jnp
from jax.experimental import pallas as pl
from jax.experimental.pallas import tpu as pltpu

# ----------------------------- configuration --------------------------------
SEGMENT_LENGTH = 4
LEFT_CONTEXT = 2
RIGHT_CONTEXT = 2
MAX_MEMORY_SIZE = 0          # use_mem = False
NUM_LAYERS = 2
D_MODEL = 32
NUM_HEADS = 4
HEAD_DIM = D_MODEL // NUM_HEADS
FFN_DIM = 64
SCALING = HEAD_DIM ** -0.5
LN_EPS = 1e-5
NEG_BIAS = -1e9

# TODO(synk): memory-bank path (max_memory_size > 0: AvgPool1d mems/summary, 9-column mask,
#             tanh/clamp output mems) and streaming infer() are not implemented; this
#             reproduces forward() for the default max_memory_size=0 configuration.
# TODO(synk): on v7x a grid=(B,) with dimension_semantics=("parallel",) would use both
#             TensorCores; omitted here because at B=2 the extra grid steps add latency on
#             the single-TC v5e/v6e chips.


# ------------------------------ Pallas kernel --------------------------------
def _layer_norm(v, g, b):
    mu = jnp.mean(v, axis=-1, keepdims=True)
    var = jnp.mean(jnp.square(v - mu), axis=-1, keepdims=True)
    return (v - mu) * jax.lax.rsqrt(var + LN_EPS) * g + b


def _emformer_kernel(x_ref, bias_ref,
                     ln_in_g_ref, ln_in_b_ref,
                     wq_ref, bq_ref, wkv_ref, bkv_ref, wo_ref, bo_ref,
                     ln_ff_g_ref, ln_ff_b_ref,
                     w1_ref, b1_ref, w2_ref, b2_ref,
                     ln_out_g_ref, ln_out_b_ref,
                     out_ref):
    x = x_ref[...]                                   # (B*Tpad, D) f32, rows = [rc; utt; pad]
    bias = bias_ref[...]                             # (B, Tpad, Tpad) f32 additive mask bias
    B, Tpad, _ = bias.shape
    N, D = x.shape
    L = wq_ref.shape[0]

    for l in range(L):                               # static unroll over layers (small)
        # --- pre-attention LayerNorm (f32) ---
        xn = _layer_norm(x, ln_in_g_ref[l], ln_in_b_ref[l])
        xnb = xn.astype(jnp.bfloat16)

        # --- Q / KV projections on the flattened matrix (bf16 MXU, f32 accumulate) ---
        # wq/bq already carry the 1/sqrt(head_dim) scaling (folded at packing time).
        q = jnp.dot(xnb, wq_ref[l], preferred_element_type=jnp.float32) + bq_ref[l]
        kv = jnp.dot(xnb, wkv_ref[l], preferred_element_type=jnp.float32) + bkv_ref[l]

        q3 = q.reshape(B, Tpad, D).astype(jnp.bfloat16)
        k3 = kv[:, :D].reshape(B, Tpad, D).astype(jnp.bfloat16)
        v3 = kv[:, D:].reshape(B, Tpad, D).astype(jnp.bfloat16)

        # --- masked multi-head attention: batched over B, static loop over heads ---
        heads = []
        for h in range(NUM_HEADS):
            sl = slice(h * HEAD_DIM, (h + 1) * HEAD_DIM)
            s = jnp.einsum('bqc,bkc->bqk', q3[..., sl], k3[..., sl],
                           preferred_element_type=jnp.float32)
            s = s + bias                              # additive mask (finite, no NaN hazard)
            m = jnp.max(s, axis=-1, keepdims=True)
            e = jnp.exp(s - m)
            denom = jnp.sum(e, axis=-1, keepdims=True)
            p = (e * pl.reciprocal(denom, approx=True)).astype(jnp.bfloat16)
            heads.append(jnp.einsum('bqk,bkc->bqc', p, v3[..., sl],
                                    preferred_element_type=jnp.float32))
        attn = jnp.concatenate(heads, axis=-1).reshape(N, D)

        # --- output projection + residual (dropout == identity) ---
        rc_out = jnp.dot(attn.astype(jnp.bfloat16), wo_ref[l],
                         preferred_element_type=jnp.float32) + bo_ref[l]
        res = rc_out + x

        # --- position-wise FFN (LayerNorm -> Linear -> ReLU -> Linear) + residual ---
        hb = _layer_norm(res, ln_ff_g_ref[l], ln_ff_b_ref[l])
        ff = jnp.maximum(
            jnp.dot(hb.astype(jnp.bfloat16), w1_ref[l],
                    preferred_element_type=jnp.float32) + b1_ref[l], 0.0)
        ff = jnp.dot(ff.astype(jnp.bfloat16), w2_ref[l],
                     preferred_element_type=jnp.float32) + b2_ref[l]
        res = ff + res

        # --- output LayerNorm ---
        x = _layer_norm(res, ln_out_g_ref[l], ln_out_b_ref[l])

    out_ref[...] = x                                  # single lane/sublane-dense full store


def _pallas_emformer(x2d, bias, packed_params):
    n_in = 2 + len(packed_params)
    return pl.pallas_call(
        _emformer_kernel,
        out_shape=jax.ShapeDtypeStruct(x2d.shape, jnp.float32),
        in_specs=[pl.BlockSpec(memory_space=pltpu.MemorySpace.VMEM)] * n_in,
        out_specs=pl.BlockSpec(memory_space=pltpu.MemorySpace.VMEM),
    )(x2d, bias, *packed_params)


# ------------------------------ JAX / numpy glue -------------------------------
def _gen_right_context(x_tbd):
    """x_tbd: (T_utt + right_context, B, D) time-major."""
    T = x_tbd.shape[0]
    num_segs = math.ceil((T - RIGHT_CONTEXT) / SEGMENT_LENGTH)
    blocks = []
    for seg_idx in range(num_segs - 1):
        start = (seg_idx + 1) * SEGMENT_LENGTH
        blocks.append(x_tbd[start:start + RIGHT_CONTEXT])
    blocks.append(x_tbd[T - RIGHT_CONTEXT:])
    return jnp.concatenate(blocks, axis=0)


def _gen_attention_mask_np(utt_len):
    """Static attention mask; 1.0 means masked (== the torch bool mask), no-mems path."""
    num_segs = math.ceil(utt_len / SEGMENT_LENGTH)
    rc = RIGHT_CONTEXT
    lc = LEFT_CONTEXT
    rc_len = rc * num_segs
    col_mask = [i in (1, 4) for i in range(6)]
    rc_rows, q_rows = [], []
    for seg_idx in range(num_segs):
        rc_start = seg_idx * rc
        rc_end = rc_start + rc
        seg_start = max(seg_idx * SEGMENT_LENGTH - lc, 0)
        seg_end = min((seg_idx + 1) * SEGMENT_LENGTH, utt_len)
        col_widths = [rc_start, rc, rc_len - rc_end,
                      seg_start, seg_end - seg_start, utt_len - seg_end]

        def block(nrows):
            cols = [np.ones((nrows, w), np.float32) if m else np.zeros((nrows, w), np.float32)
                    for w, m in zip(col_widths, col_mask)]
            return np.concatenate(cols, axis=1)

        rc_rows.append(block(rc))
        q_rows.append(block(min(SEGMENT_LENGTH, utt_len - seg_idx * SEGMENT_LENGTH)))
    mask = 1.0 - np.concatenate([np.concatenate(rc_rows), np.concatenate(q_rows)])
    return mask.astype(np.float32)


def build_padded_attention_mask(utt_len):
    """Static (Tpad, Tpad) mask, padded rows/cols fully masked, Tpad multiple of 8."""
    amask = _gen_attention_mask_np(utt_len)          # (Tk, Tk)
    Tk = amask.shape[0]
    Tpad = ((Tk + 7) // 8) * 8
    padded = np.ones((Tpad, Tpad), np.float32)
    padded[:Tk, :Tk] = amask
    return jnp.asarray(padded)


def emformer_forward(x_btd, lengths, packed_params, amask_padded):
    """_EmformerImpl.forward.  x_btd: (B, T_utt + right_context, D) -> ((B, T_utt, D), lengths)."""
    B, TR, D = x_btd.shape
    T_utt = TR - RIGHT_CONTEXT
    x = jnp.transpose(x_btd, (1, 0, 2)).astype(jnp.float32)      # (T+R, B, D) time-major
    right_context = _gen_right_context(x)                        # (R_total, B, D)
    utterance = x[:T_utt]
    R_total = right_context.shape[0]
    Tk = R_total + T_utt
    Tpad = amask_padded.shape[0]

    # key-padding mask (same semantics as _EmformerAttention._gen_padding_mask, no mems)
    if B > 1:
        rc_blocks_len = Tk - jnp.max(lengths)
        klengths = lengths + rc_blocks_len
        pmask = (jnp.arange(Tpad)[None, :] >= klengths[:, None]).astype(jnp.float32)
    else:
        pmask = jnp.zeros((B, Tpad), jnp.float32)

    combined = amask_padded[None, :, :] + pmask[:, None, :]
    bias = jnp.where(combined > 0.5, NEG_BIAS, 0.0).astype(jnp.float32)   # (B, Tpad, Tpad)

    # kernel-internal layout: batch-major (B, Tpad, D) -> flattened (B*Tpad, D)
    xin = jnp.concatenate([right_context, utterance], axis=0)    # (Tk, B, D)
    xin = jnp.transpose(xin, (1, 0, 2))                          # (B, Tk, D)
    xin = jnp.pad(xin, ((0, 0), (0, Tpad - Tk), (0, 0)))         # (B, Tpad, D)
    x2d = xin.reshape(B * Tpad, D)

    out2d = _pallas_emformer(x2d, bias, packed_params)           # one fused kernel, all layers
    out = out2d.reshape(B, Tpad, D)[:, R_total:R_total + T_utt, :]
    return out, lengths


# ------------------------------ parameters ------------------------------------
def init_params(key, num_layers):
    params = []
    for layer_idx in range(num_layers):
        k = jax.random.split(jax.random.fold_in(key, layer_idx), 8)

        def nrm(kk, shape, scale=0.1):
            return scale * jax.random.normal(kk, shape, jnp.float32)

        ones = lambda n: jnp.ones((1, n), jnp.float32)
        zeros = lambda n: jnp.zeros((1, n), jnp.float32)
        layer = (
            ones(D_MODEL), zeros(D_MODEL),                                    # 0,1  ln_in g,b
            nrm(k[0], (D_MODEL, D_MODEL)), zeros(D_MODEL),                    # 2,3  Wq, bq
            nrm(k[1], (D_MODEL, 2 * D_MODEL)), zeros(2 * D_MODEL),            # 4,5  Wkv, bkv
            nrm(k[2], (D_MODEL, D_MODEL)), zeros(D_MODEL),                    # 6,7  Wout, bout
            ones(D_MODEL), zeros(D_MODEL),                                    # 8,9  ln_ff g,b
            nrm(k[3], (D_MODEL, FFN_DIM)), nrm(k[4], (1, FFN_DIM), 0.01),     # 10,11 W1, b1
            nrm(k[5], (FFN_DIM, D_MODEL)), nrm(k[6], (1, D_MODEL), 0.01),     # 12,13 W2, b2
            ones(D_MODEL), zeros(D_MODEL),                                    # 14,15 ln_out g,b
        )
        params.append(layer)
    return tuple(params)


def pack_params(params):
    """Stack per-layer params along a leading layer dim; bf16 matmul weights, f32 vectors.

    The attention scaling 1/sqrt(head_dim) is folded into Wq and bq here.
    """
    st = lambda i: jnp.stack([layer[i] for layer in params])     # (L, ...) f32
    bf = jnp.bfloat16
    return (
        st(0), st(1),                                            # ln_in  g,b   (L,1,D)
        (st(2) * SCALING).astype(bf), st(3) * SCALING,           # Wq (L,D,D) bf16, bq (L,1,D)
        st(4).astype(bf), st(5),                                 # Wkv (L,D,2D) bf16, bkv
        st(6).astype(bf), st(7),                                 # Wout bf16, bout
        st(8), st(9),                                            # ln_ff  g,b
        st(10).astype(bf), st(11),                               # W1 (L,D,F) bf16, b1
        st(12).astype(bf), st(13),                               # W2 (L,F,D) bf16, b2
        st(14), st(15),                                          # ln_out g,b
    )


# ------------------------------ main -------------------------------------------
if __name__ == "__main__":
    key = jax.random.PRNGKey(0)
    B, T_utt = 2, 16
    x = jax.random.normal(jax.random.fold_in(key, 123),
                          (B, T_utt + RIGHT_CONTEXT, D_MODEL), jnp.float32)
    lengths = jnp.array([T_utt, T_utt - 2], jnp.int32)

    params = init_params(key, NUM_LAYERS)
    packed = pack_params(params)
    amask_padded = build_padded_attention_mask(T_utt)            # (Tpad, Tpad) static

    fwd = jax.jit(emformer_forward)
    out, out_lengths = fwd(x, lengths, packed, amask_padded)
    jax.block_until_ready(out)

    assert out.shape == (B, T_utt, D_MODEL), out.shape
    assert out_lengths.shape == (B,), out_lengths.shape
    assert bool(jnp.all(jnp.isfinite(out)))
    print("KERNEL_OK")
</pallas_src>

<mosaic_0001>
module attributes {stable_mosaic.version = 11 : i64} {
  func.func @_emformer_kernel(%arg0: memref<48x32xf32, #tpu.memory_space<vmem>>, %arg1: memref<2x24x24xf32, #tpu.memory_space<vmem>>, %arg2: memref<2x1x32xf32, #tpu.memory_space<vmem>>, %arg3: memref<2x1x32xf32, #tpu.memory_space<vmem>>, %arg4: memref<2x32x32xbf16, #tpu.memory_space<vmem>>, %arg5: memref<2x1x32xf32, #tpu.memory_space<vmem>>, %arg6: memref<2x32x64xbf16, #tpu.memory_space<vmem>>, %arg7: memref<2x1x64xf32, #tpu.memory_space<vmem>>, %arg8: memref<2x32x32xbf16, #tpu.memory_space<vmem>>, %arg9: memref<2x1x32xf32, #tpu.memory_space<vmem>>, %arg10: memref<2x1x32xf32, #tpu.memory_space<vmem>>, %arg11: memref<2x1x32xf32, #tpu.memory_space<vmem>>, %arg12: memref<2x32x64xbf16, #tpu.memory_space<vmem>>, %arg13: memref<2x1x64xf32, #tpu.memory_space<vmem>>, %arg14: memref<2x64x32xbf16, #tpu.memory_space<vmem>>, %arg15: memref<2x1x32xf32, #tpu.memory_space<vmem>>, %arg16: memref<2x1x32xf32, #tpu.memory_space<vmem>>, %arg17: memref<2x1x32xf32, #tpu.memory_space<vmem>>, %arg18: memref<48x32xf32, #tpu.memory_space<vmem>>) attributes {dimension_semantics = [], scalar_prefetch = 0 : i64, scratch_operands = 0 : i64, tpu.core_type = #tpu.core_type<tc>} {
    %c0 = arith.constant 0 : index
    %c0_0 = arith.constant 0 : index
    %0 = vector.load %arg0[%c0, %c0_0] : memref<48x32xf32, #tpu.memory_space<vmem>>, vector<48x32xf32>
    %c0_1 = arith.constant 0 : index
    %c0_2 = arith.constant 0 : index
    %c0_3 = arith.constant 0 : index
    %1 = vector.load %arg1[%c0_1, %c0_2, %c0_3] : memref<2x24x24xf32, #tpu.memory_space<vmem>>, vector<2x24x24xf32>
    %c0_4 = arith.constant 0 : index
    %c0_5 = arith.constant 0 : index
    %c0_6 = arith.constant 0 : index
    %2 = vector.load %arg2[%c0_4, %c0_5, %c0_6] : memref<2x1x32xf32, #tpu.memory_space<vmem>>, vector<1x1x32xf32>
    %3 = vector.shape_cast %2 : vector<1x1x32xf32> to vector<1x32xf32>
    %c0_7 = arith.constant 0 : index
    %c0_8 = arith.constant 0 : index
    %c0_9 = arith.constant 0 : index
    %4 = vector.load %arg3[%c0_7, %c0_8, %c0_9] : memref<2x1x32xf32, #tpu.memory_space<vmem>>, vector<1x1x32xf32>
    %5 = vector.shape_cast %4 : vector<1x1x32xf32> to vector<1x32xf32>
    %cst = arith.constant dense<0.000000e+00> : vector<48xf32>
    %6 = vector.multi_reduction <add>, %0, %cst [1] : vector<48x32xf32> to vector<48xf32>
    %7 = vector.shape_cast %6 : vector<48xf32> to vector<48x1xf32>
    %cst_10 = arith.constant 3.200000e+01 : f32
    %8 = vector.broadcast %cst_10 : f32 to vector<48x1xf32>
    %9 = arith.divf %7, %8 : vector<48x1xf32>
    %10 = vector.broadcast %9 : vector<48x1xf32> to vector<48x32xf32>
    %11 = arith.subf %0, %10 : vector<48x32xf32>
    %12 = arith.mulf %11, %11 : vector<48x32xf32>
    %cst_11 = arith.constant dense<0.000000e+00> : vector<48xf32>
    %13 = vector.multi_reduction <add>, %12, %cst_11 [1] : vector<48x32xf32> to vector<48xf32>
    %14 = vector.shape_cast %13 : vector<48xf32> to vector<48x1xf32>
    %cst_12 = arith.constant 3.200000e+01 : f32
    %15 = vector.broadcast %cst_12 : f32 to vector<48x1xf32>
    %16 = arith.divf %14, %15 : vector<48x1xf32>
    %17 = vector.broadcast %9 : vector<48x1xf32> to vector<48x32xf32>
    %18 = arith.subf %0, %17 : vector<48x32xf32>
    %cst_13 = arith.constant 9.99999974E-6 : f32
    %19 = vector.broadcast %cst_13 : f32 to vector<48x1xf32>
    %20 = arith.addf %16, %19 : vector<48x1xf32>
    %21 = math.rsqrt %20 : vector<48x1xf32>
    %22 = vector.broadcast %21 : vector<48x1xf32> to vector<48x32xf32>
    %23 = arith.mulf %18, %22 : vector<48x32xf32>
    %24 = vector.broadcast %3 : vector<1x32xf32> to vector<48x32xf32>
    %25 = arith.mulf %23, %24 : vector<48x32xf32>
    %26 = vector.broadcast %5 : vector<1x32xf32> to vector<48x32xf32>
    %27 = arith.addf %25, %26 : vector<48x32xf32>
    %28 = arith.truncf %27 : vector<48x32xf32> to vector<48x32xbf16>
    %c0_14 = arith.constant 0 : index
    %c0_15 = arith.constant 0 : index
    %c0_16 = arith.constant 0 : index
    %29 = vector.load %arg4[%c0_14, %c0_15, %c0_16] : memref<2x32x32xbf16, #tpu.memory_space<vmem>>, vector<1x32x32xbf16>
    %30 = vector.shape_cast %29 : vector<1x32x32xbf16> to vector<32x32xbf16>
    %cst_17 = arith.constant dense<0.000000e+00> : vector<48x32xf32>
    %31 = tpu.matmul %28, %30, %cst_17 {dimension_numbers = #tpu.dot_dimension_numbers<[1], [0], [0], [1], [0, 0, 1, 1], [], []>} : vector<48x32xbf16>, vector<32x32xbf16>, vector<48x32xf32> -> vector<48x32xf32>
    %c0_18 = arith.constant 0 : index
    %c0_19 = arith.constant 0 : index
    %c0_20 = arith.constant 0 : index
    %32 = vector.load %arg5[%c0_18, %c0_19, %c0_20] : memref<2x1x32xf32, #tpu.memory_space<vmem>>, vector<1x1x32xf32>
    %33 = vector.shape_cast %32 : vector<1x1x32xf32> to vector<1x32xf32>
    %34 = vector.broadcast %33 : vector<1x32xf32> to vector<48x32xf32>
    %35 = arith.addf %31, %34 : vector<48x32xf32>
    %c0_21 = arith.constant 0 : index
    %c0_22 = arith.constant 0 : index
    %c0_23 = arith.constant 0 : index
    %36 = vector.load %arg6[%c0_21, %c0_22, %c0_23] : memref<2x32x64xbf16, #tpu.memory_space<vmem>>, vector<1x32x64xbf16>
    %37 = vector.shape_cast %36 : vector<1x32x64xbf16> to vector<32x64xbf16>
    %cst_24 = arith.constant dense<0.000000e+00> : vector<48x64xf32>
    %38 = tpu.matmul %28, %37, %cst_24 {dimension_numbers = #tpu.dot_dimension_numbers<[1], [0], [0], [1], [0, 0, 1, 1], [], []>} : vector<48x32xbf16>, vector<32x64xbf16>, vector<48x64xf32> -> vector<48x64xf32>
    %c0_25 = arith.constant 0 : index
    %c0_26 = arith.constant 0 : index
    %c0_27 = arith.constant 0 : index
    %39 = vector.load %arg7[%c0_25, %c0_26, %c0_27] : memref<2x1x64xf32, #tpu.memory_space<vmem>>, vector<1x1x64xf32>
    %40 = vector.shape_cast %39 : vector<1x1x64xf32> to vector<1x64xf32>
    %41 = vector.broadcast %40 : vector<1x64xf32> to vector<48x64xf32>
    %42 = arith.addf %38, %41 : vector<48x64xf32>
    %43 = vector.shape_cast %35 : vector<48x32xf32> to vector<2x24x32xf32>
    %44 = arith.truncf %43 : vector<2x24x32xf32> to vector<2x24x32xbf16>
    %45 = vector.extract_strided_slice %42 {offsets = [0, 0], sizes = [48, 32], strides = [1, 1]} : vector<48x64xf32> to vector<48x32xf32>
    %46 = vector.shape_cast %45 : vector<48x32xf32> to vector<2x24x32xf32>
    %47 = arith.truncf %46 : vector<2x24x32xf32> to vector<2x24x32xbf16>
    %48 = vector.extract_strided_slice %42 {offsets = [0, 32], sizes = [48, 32], strides = [1, 1]} : vector<48x64xf32> to vector<48x32xf32>
    %49 = vector.shape_cast %48 : vector<48x32xf32> to vector<2x24x32xf32>
    %50 = arith.truncf %49 : vector<2x24x32xf32> to vector<2x24x32xbf16>
    %51 = vector.extract_strided_slice %44 {offsets = [0, 0, 0], sizes = [2, 24, 8], strides = [1, 1, 1]} : vector<2x24x32xbf16> to vector<2x24x8xbf16>
    %52 = vector.extract_strided_slice %47 {offsets = [0, 0, 0], sizes = [2, 24, 8], strides = [1, 1, 1]} : vector<2x24x32xbf16> to vector<2x24x8xbf16>
    "tpu.trace_start"() <{level = 10 : i32, message = "bqc,bkc->bqk"}> : () -> ()
    %cst_28 = arith.constant dense<0.000000e+00> : vector<2x24x24xf32>
    %53 = tpu.matmul %51, %52, %cst_28 {dimension_numbers = #tpu.dot_dimension_numbers<[2], [2], [1], [1], [0, 0, 0, 1, 1, 1], [0], [0]>} : vector<2x24x8xbf16>, vector<2x24x8xbf16>, vector<2x24x24xf32> -> vector<2x24x24xf32>
    "tpu.trace_stop"() : () -> ()
    %54 = arith.addf %53, %1 : vector<2x24x24xf32>
    %cst_29 = arith.constant dense<0xFF800000> : vector<2x24xf32>
    %55 = vector.multi_reduction <maximumf>, %54, %cst_29 [2] : vector<2x24x24xf32> to vector<2x24xf32>
    %56 = vector.shape_cast %55 : vector<2x24xf32> to vector<2x24x1xf32>
    %57 = vector.broadcast %56 : vector<2x24x1xf32> to vector<2x24x24xf32>
    %58 = arith.subf %54, %57 : vector<2x24x24xf32>
    %59 = math.exp %58 : vector<2x24x24xf32>
    %cst_30 = arith.constant dense<0.000000e+00> : vector<2x24xf32>
    %60 = vector.multi_reduction <add>, %59, %cst_30 [2] : vector<2x24x24xf32> to vector<2x24xf32>
    %61 = vector.shape_cast %60 : vector<2x24xf32> to vector<2x24x1xf32>
    %62 = tpu.reciprocal %61 {approx = true} : vector<2x24x1xf32> -> vector<2x24x1xf32>
    %63 = vector.broadcast %62 : vector<2x24x1xf32> to vector<2x24x24xf32>
    %64 = arith.mulf %59, %63 : vector<2x24x24xf32>
    %65 = arith.truncf %64 : vector<2x24x24xf32> to vector<2x24x24xbf16>
    %66 = vector.extract_strided_slice %50 {offsets = [0, 0, 0], sizes = [2, 24, 8], strides = [1, 1, 1]} : vector<2x24x32xbf16> to vector<2x24x8xbf16>
    "tpu.trace_start"() <{level = 10 : i32, message = "bqk,bkc->bqc"}> : () -> ()
    %cst_31 = arith.constant dense<0.000000e+00> : vector<2x24x8xf32>
    %67 = tpu.matmul %65, %66, %cst_31 {dimension_numbers = #tpu.dot_dimension_numbers<[2], [1], [1], [2], [0, 0, 0, 1, 1, 2], [0], [0]>} : vector<2x24x24xbf16>, vector<2x24x8xbf16>, vector<2x24x8xf32> -> vector<2x24x8xf32>
    "tpu.trace_stop"() : () -> ()
    %68 = vector.extract_strided_slice %44 {offsets = [0, 0, 8], sizes = [2, 24, 8], strides = [1, 1, 1]} : vector<2x24x32xbf16> to vector<2x24x8xbf16>
    %69 = vector.extract_strided_slice %47 {offsets = [0, 0, 8], sizes = [2, 24, 8], strides = [1, 1, 1]} : vector<2x24x32xbf16> to vector<2x24x8xbf16>
    "tpu.trace_start"() <{level = 10 : i32, message = "bqc,bkc->bqk"}> : () -> ()
    %cst_32 = arith.constant dense<0.000000e+00> : vector<2x24x24xf32>
    %70 = tpu.matmul %68, %69, %cst_32 {dimension_numbers = #tpu.dot_dimension_numbers<[2], [2], [1], [1], [0, 0, 0, 1, 1, 1], [0], [0]>} : vector<2x24x8xbf16>, vector<2x24x8xbf16>, vector<2x24x24xf32> -> vector<2x24x24xf32>
    "tpu.trace_stop"() : () -> ()
    %71 = arith.addf %70, %1 : vector<2x24x24xf32>
    %cst_33 = arith.constant dense<0xFF800000> : vector<2x24xf32>
    %72 = vector.multi_reduction <maximumf>, %71, %cst_33 [2] : vector<2x24x24xf32> to vector<2x24xf32>
    %73 = vector.shape_cast %72 : vector<2x24xf32> to vector<2x24x1xf32>
    %74 = vector.broadcast %73 : vector<2x24x1xf32> to vector<2x24x24xf32>
    %75 = arith.subf %71, %74 : vector<2x24x24xf32>
    %76 = math.exp %75 : vector<2x24x24xf32>
    %cst_34 = arith.constant dense<0.000000e+00> : vector<2x24xf32>
    %77 = vector.multi_reduction <add>, %76, %cst_34 [2] : vector<2x24x24xf32> to vector<2x24xf32>
    %78 = vector.shape_cast %77 : vector<2x24xf32> to vector<2x24x1xf32>
    %79 = tpu.reciprocal %78 {approx = true} : vector<2x24x1xf32> -> vector<2x24x1xf32>
    %80 = vector.broadcast %79 : vector<2x24x1xf32> to vector<2x24x24xf32>
    %81 = arith.mulf %76, %80 : vector<2x24x24xf32>
    %82 = arith.truncf %81 : vector<2x24x24xf32> to vector<2x24x24xbf16>
    %83 = vector.extract_strided_slice %50 {offsets = [0, 0, 8], sizes = [2, 24, 8], strides = [1, 1, 1]} : vector<2x24x32xbf16> to vector<2x24x8xbf16>
    "tpu.trace_start"() <{level = 10 : i32, message = "bqk,bkc->bqc"}> : () -> ()
    %cst_35 = arith.constant dense<0.000000e+00> : vector<2x24x8xf32>
    %84 = tpu.matmul %82, %83, %cst_35 {dimension_numbers = #tpu.dot_dimension_numbers<[2], [1], [1], [2], [0, 0, 0, 1, 1, 2], [0], [0]>} : vector<2x24x24xbf16>, vector<2x24x8xbf16>, vector<2x24x8xf32> -> vector<2x24x8xf32>
    "tpu.trace_stop"() : () -> ()
    %85 = vector.extract_strided_slice %44 {offsets = [0, 0, 16], sizes = [2, 24, 8], strides = [1, 1, 1]} : vector<2x24x32xbf16> to vector<2x24x8xbf16>
    %86 = vector.extract_strided_slice %47 {offsets = [0, 0, 16], sizes = [2, 24, 8], strides = [1, 1, 1]} : vector<2x24x32xbf16> to vector<2x24x8xbf16>
    "tpu.trace_start"() <{level = 10 : i32, message = "bqc,bkc->bqk"}> : () -> ()
    %cst_36 = arith.constant dense<0.000000e+00> : vector<2x24x24xf32>
    %87 = tpu.matmul %85, %86, %cst_36 {dimension_numbers = #tpu.dot_dimension_numbers<[2], [2], [1], [1], [0, 0, 0, 1, 1, 1], [0], [0]>} : vector<2x24x8xbf16>, vector<2x24x8xbf16>, vector<2x24x24xf32> -> vector<2x24x24xf32>
    "tpu.trace_stop"() : () -> ()
    %88 = arith.addf %87, %1 : vector<2x24x24xf32>
    %cst_37 = arith.constant dense<0xFF800000> : vector<2x24xf32>
    %89 = vector.multi_reduction <maximumf>, %88, %cst_37 [2] : vector<2x24x24xf32> to vector<2x24xf32>
    %90 = vector.shape_cast %89 : vector<2x24xf32> to vector<2x24x1xf32>
    %91 = vector.broadcast %90 : vector<2x24x1xf32> to vector<2x24x24xf32>
    %92 = arith.subf %88, %91 : vector<2x24x24xf32>
    %93 = math.exp %92 : vector<2x24x24xf32>
    %cst_38 = arith.constant dense<0.000000e+00> : vector<2x24xf32>
    %94 = vector.multi_reduction <add>, %93, %cst_38 [2] : vector<2x24x24xf32> to vector<2x24xf32>
    %95 = vector.shape_cast %94 : vector<2x24xf32> to vector<2x24x1xf32>
    %96 = tpu.reciprocal %95 {approx = true} : vector<2x24x1xf32> -> vector<2x24x1xf32>
    %97 = vector.broadcast %96 : vector<2x24x1xf32> to vector<2x24x24xf32>
    %98 = arith.mulf %93, %97 : vector<2x24x24xf32>
    %99 = arith.truncf %98 : vector<2x24x24xf32> to vector<2x24x24xbf16>
    %100 = vector.extract_strided_slice %50 {offsets = [0, 0, 16], sizes = [2, 24, 8], strides = [1, 1, 1]} : vector<2x24x32xbf16> to vector<2x24x8xbf16>
    "tpu.trace_start"() <{level = 10 : i32, message = "bqk,bkc->bqc"}> : () -> ()
    %cst_39 = arith.constant dense<0.000000e+00> : vector<2x24x8xf32>
    %101 = tpu.matmul %99, %100, %cst_39 {dimension_numbers = #tpu.dot_dimension_numbers<[2], [1], [1], [2], [0, 0, 0, 1, 1, 2], [0], [0]>} : vector<2x24x24xbf16>, vector<2x24x8xbf16>, vector<2x24x8xf32> -> vector<2x24x8xf32>
    "tpu.trace_stop"() : () -> ()
    %102 = vector.extract_strided_slice %44 {offsets = [0, 0, 24], sizes = [2, 24, 8], strides = [1, 1, 1]} : vector<2x24x32xbf16> to vector<2x24x8xbf16>
    %103 = vector.extract_strided_slice %47 {offsets = [0, 0, 24], sizes = [2, 24, 8], strides = [1, 1, 1]} : vector<2x24x32xbf16> to vector<2x24x8xbf16>
    "tpu.trace_start"() <{level = 10 : i32, message = "bqc,bkc->bqk"}> : () -> ()
    %cst_40 = arith.constant dense<0.000000e+00> : vector<2x24x24xf32>
    %104 = tpu.matmul %102, %103, %cst_40 {dimension_numbers = #tpu.dot_dimension_numbers<[2], [2], [1], [1], [0, 0, 0, 1, 1, 1], [0], [0]>} : vector<2x24x8xbf16>, vector<2x24x8xbf16>, vector<2x24x24xf32> -> vector<2x24x24xf32>
    "tpu.trace_stop"() : () -> ()
    %105 = arith.addf %104, %1 : vector<2x24x24xf32>
    %cst_41 = arith.constant dense<0xFF800000> : vector<2x24xf32>
    %106 = vector.multi_reduction <maximumf>, %105, %cst_41 [2] : vector<2x24x24xf32> to vector<2x24xf32>
    %107 = vector.shape_cast %106 : vector<2x24xf32> to vector<2x24x1xf32>
    %108 = vector.broadcast %107 : vector<2x24x1xf32> to vector<2x24x24xf32>
    %109 = arith.subf %105, %108 : vector<2x24x24xf32>
    %110 = math.exp %109 : vector<2x24x24xf32>
    %cst_42 = arith.constant dense<0.000000e+00> : vector<2x24xf32>
    %111 = vector.multi_reduction <add>, %110, %cst_42 [2] : vector<2x24x24xf32> to vector<2x24xf32>
    %112 = vector.shape_cast %111 : vector<2x24xf32> to vector<2x24x1xf32>
    %113 = tpu.reciprocal %112 {approx = true} : vector<2x24x1xf32> -> vector<2x24x1xf32>
    %114 = vector.broadcast %113 : vector<2x24x1xf32> to vector<2x24x24xf32>
    %115 = arith.mulf %110, %114 : vector<2x24x24xf32>
    %116 = arith.truncf %115 : vector<2x24x24xf32> to vector<2x24x24xbf16>
    %117 = vector.extract_strided_slice %50 {offsets = [0, 0, 24], sizes = [2, 24, 8], strides = [1, 1, 1]} : vector<2x24x32xbf16> to vector<2x24x8xbf16>
    "tpu.trace_start"() <{level = 10 : i32, message = "bqk,bkc->bqc"}> : () -> ()
    %cst_43 = arith.constant dense<0.000000e+00> : vector<2x24x8xf32>
    %118 = tpu.matmul %116, %117, %cst_43 {dimension_numbers = #tpu.dot_dimension_numbers<[2], [1], [1], [2], [0, 0, 0, 1, 1, 2], [0], [0]>} : vector<2x24x24xbf16>, vector<2x24x8xbf16>, vector<2x24x8xf32> -> vector<2x24x8xf32>
    "tpu.trace_stop"() : () -> ()
    %119 = tpu.concatenate %67, %84, %101, %118 in 2 : vector<2x24x8xf32>, vector<2x24x8xf32>, vector<2x24x8xf32>, vector<2x24x8xf32> -> vector<2x24x32xf32>
    %120 = vector.shape_cast %119 : vector<2x24x32xf32> to vector<48x32xf32>
    %121 = arith.truncf %120 : vector<48x32xf32> to vector<48x32xbf16>
    %c0_44 = arith.constant 0 : index
    %c0_45 = arith.constant 0 : index
    %c0_46 = arith.constant 0 : index
    %122 = vector.load %arg8[%c0_44, %c0_45, %c0_46] : memref<2x32x32xbf16, #tpu.memory_space<vmem>>, vector<1x32x32xbf16>
    %123 = vector.shape_cast %122 : vector<1x32x32xbf16> to vector<32x32xbf16>
    %cst_47 = arith.constant dense<0.000000e+00> : vector<48x32xf32>
    %124 = tpu.matmul %121, %123, %cst_47 {dimension_numbers = #tpu.dot_dimension_numbers<[1], [0], [0], [1], [0, 0, 1, 1], [], []>} : vector<48x32xbf16>, vector<32x32xbf16>, vector<48x32xf32> -> vector<48x32xf32>
    %c0_48 = arith.constant 0 : index
    %c0_49 = arith.constant 0 : index
    %c0_50 = arith.constant 0 : index
    %125 = vector.load %arg9[%c0_48, %c0_49, %c0_50] : memref<2x1x32xf32, #tpu.memory_space<vmem>>, vector<1x1x32xf32>
    %126 = vector.shape_cast %125 : vector<1x1x32xf32> to vector<1x32xf32>
    %127 = vector.broadcast %126 : vector<1x32xf32> to vector<48x32xf32>
    %128 = arith.addf %124, %127 : vector<48x32xf32>
    %129 = arith.addf %128, %0 : vector<48x32xf32>
    %c0_51 = arith.constant 0 : index
    %c0_52 = arith.constant 0 : index
    %c0_53 = arith.constant 0 : index
    %130 = vector.load %arg10[%c0_51, %c0_52, %c0_53] : memref<2x1x32xf32, #tpu.memory_space<vmem>>, vector<1x1x32xf32>
    %131 = vector.shape_cast %130 : vector<1x1x32xf32> to vector<1x32xf32>
    %c0_54 = arith.constant 0 : index
    %c0_55 = arith.constant 0 : index
    %c0_56 = arith.constant 0 : index
    %132 = vector.load %arg11[%c0_54, %c0_55, %c0_56] : memref<2x1x32xf32, #tpu.memory_space<vmem>>, vector<1x1x32xf32>
    %133 = vector.shape_cast %132 : vector<1x1x32xf32> to vector<1x32xf32>
    %cst_57 = arith.constant dense<0.000000e+00> : vector<48xf32>
    %134 = vector.multi_reduction <add>, %129, %cst_57 [1] : vector<48x32xf32> to vector<48xf32>
    %135 = vector.shape_cast %134 : vector<48xf32> to vector<48x1xf32>
    %cst_58 = arith.constant 3.200000e+01 : f32
    %136 = vector.broadcast %cst_58 : f32 to vector<48x1xf32>
    %137 = arith.divf %135, %136 : vector<48x1xf32>
    %138 = vector.broadcast %137 : vector<48x1xf32> to vector<48x32xf32>
    %139 = arith.subf %129, %138 : vector<48x32xf32>
    %140 = arith.mulf %139, %139 : vector<48x32xf32>
    %cst_59 = arith.constant dense<0.000000e+00> : vector<48xf32>
    %141 = vector.multi_reduction <add>, %140, %cst_59 [1] : vector<48x32xf32> to vector<48xf32>
    %142 = vector.shape_cast %141 : vector<48xf32> to vector<48x1xf32>
    %cst_60 = arith.constant 3.200000e+01 : f32
    %143 = vector.broadcast %cst_60 : f32 to vector<48x1xf32>
    %144 = arith.divf %142, %143 : vector<48x1xf32>
    %145 = vector.broadcast %137 : vector<48x1xf32> to vector<48x32xf32>
    %146 = arith.subf %129, %145 : vector<48x32xf32>
    %cst_61 = arith.constant 9.99999974E-6 : f32
    %147 = vector.broadcast %cst_61 : f32 to vector<48x1xf32>
    %148 = arith.addf %144, %147 : vector<48x1xf32>
    %149 = math.rsqrt %148 : vector<48x1xf32>
    %150 = vector.broadcast %149 : vector<48x1xf32> to vector<48x32xf32>
    %151 = arith.mulf %146, %150 : vector<48x32xf32>
    %152 = vector.broadcast %131 : vector<1x32xf32> to vector<48x32xf32>
    %153 = arith.mulf %151, %152 : vector<48x32xf32>
    %154 = vector.broadcast %133 : vector<1x32xf32> to vector<48x32xf32>
    %155 = arith.addf %153, %154 : vector<48x32xf32>
    %156 = arith.truncf %155 : vector<48x32xf32> to vector<48x32xbf16>
    %c0_62 = arith.constant 0 : index
    %c0_63 = arith.constant 0 : index
    %c0_64 = arith.constant 0 : index
    %157 = vector.load %arg12[%c0_62, %c0_63, %c0_64] : memref<2x32x64xbf16, #tpu.memory_space<vmem>>, vector<1x32x64xbf16>
    %158 = vector.shape_cast %157 : vector<1x32x64xbf16> to vector<32x64xbf16>
    %cst_65 = arith.constant dense<0.000000e+00> : vector<48x64xf32>
    %159 = tpu.matmul %156, %158, %cst_65 {dimension_numbers = #tpu.dot_dimension_numbers<[1], [0], [0], [1], [0, 0, 1, 1], [], []>} : vector<48x32xbf16>, vector<32x64xbf16>, vector<48x64xf32> -> vector<48x64xf32>
    %c0_66 = arith.constant 0 : index
    %c0_67 = arith.constant 0 : index
    %c0_68 = arith.constant 0 : index
    %160 = vector.load %arg13[%c0_66, %c0_67, %c0_68] : memref<2x1x64xf32, #tpu.memory_space<vmem>>, vector<1x1x64xf32>
    %161 = vector.shape_cast %160 : vector<1x1x64xf32> to vector<1x64xf32>
    %162 = vector.broadcast %161 : vector<1x64xf32> to vector<48x64xf32>
    %163 = arith.addf %159, %162 : vector<48x64xf32>
    %cst_69 = arith.constant 0.000000e+00 : f32
    %164 = vector.broadcast %cst_69 : f32 to vector<48x64xf32>
    %165 = arith.maximumf %163, %164 : vector<48x64xf32>
    %166 = arith.truncf %165 : vector<48x64xf32> to vector<48x64xbf16>
    %c0_70 = arith.constant 0 : index
    %c0_71 = arith.constant 0 : index
    %c0_72 = arith.constant 0 : index
    %167 = vector.load %arg14[%c0_70, %c0_71, %c0_72] : memref<2x64x32xbf16, #tpu.memory_space<vmem>>, vector<1x64x32xbf16>
    %168 = vector.shape_cast %167 : vector<1x64x32xbf16> to vector<64x32xbf16>
    %cst_73 = arith.constant dense<0.000000e+00> : vector<48x32xf32>
    %169 = tpu.matmul %166, %168, %cst_73 {dimension_numbers = #tpu.dot_dimension_numbers<[1], [0], [0], [1], [0, 0, 1, 1], [], []>} : vector<48x64xbf16>, vector<64x32xbf16>, vector<48x32xf32> -> vector<48x32xf32>
    %c0_74 = arith.constant 0 : index
    %c0_75 = arith.constant 0 : index
    %c0_76 = arith.constant 0 : index
    %170 = vector.load %arg15[%c0_74, %c0_75, %c0_76] : memref<2x1x32xf32, #tpu.memory_space<vmem>>, vector<1x1x32xf32>
    %171 = vector.shape_cast %170 : vector<1x1x32xf32> to vector<1x32xf32>
    %172 = vector.broadcast %171 : vector<1x32xf32> to vector<48x32xf32>
    %173 = arith.addf %169, %172 : vector<48x32xf32>
    %174 = arith.addf %173, %129 : vector<48x32xf32>
    %c0_77 = arith.constant 0 : index
    %c0_78 = arith.constant 0 : index
    %c0_79 = arith.constant 0 : index
    %175 = vector.load %arg16[%c0_77, %c0_78, %c0_79] : memref<2x1x32xf32, #tpu.memory_space<vmem>>, vector<1x1x32xf32>
    %176 = vector.shape_cast %175 : vector<1x1x32xf32> to vector<1x32xf32>
    %c0_80 = arith.constant 0 : index
    %c0_81 = arith.constant 0 : index
    %c0_82 = arith.constant 0 : index
    %177 = vector.load %arg17[%c0_80, %c0_81, %c0_82] : memref<2x1x32xf32, #tpu.memory_space<vmem>>, vector<1x1x32xf32>
    %178 = vector.shape_cast %177 : vector<1x1x32xf32> to vector<1x32xf32>
    %cst_83 = arith.constant dense<0.000000e+00> : vector<48xf32>
    %179 = vector.multi_reduction <add>, %174, %cst_83 [1] : vector<48x32xf32> to vector<48xf32>
    %180 = vector.shape_cast %179 : vector<48xf32> to vector<48x1xf32>
    %cst_84 = arith.constant 3.200000e+01 : f32
    %181 = vector.broadcast %cst_84 : f32 to vector<48x1xf32>
    %182 = arith.divf %180, %181 : vector<48x1xf32>
    %183 = vector.broadcast %182 : vector<48x1xf32> to vector<48x32xf32>
    %184 = arith.subf %174, %183 : vector<48x32xf32>
    %185 = arith.mulf %184, %184 : vector<48x32xf32>
    %cst_85 = arith.constant dense<0.000000e+00> : vector<48xf32>
    %186 = vector.multi_reduction <add>, %185, %cst_85 [1] : vector<48x32xf32> to vector<48xf32>
    %187 = vector.shape_cast %186 : vector<48xf32> to vector<48x1xf32>
    %cst_86 = arith.constant 3.200000e+01 : f32
    %188 = vector.broadcast %cst_86 : f32 to vector<48x1xf32>
    %189 = arith.divf %187, %188 : vector<48x1xf32>
    %190 = vector.broadcast %182 : vector<48x1xf32> to vector<48x32xf32>
    %191 = arith.subf %174, %190 : vector<48x32xf32>
    %cst_87 = arith.constant 9.99999974E-6 : f32
    %192 = vector.broadcast %cst_87 : f32 to vector<48x1xf32>
    %193 = arith.addf %189, %192 : vector<48x1xf32>
    %194 = math.rsqrt %193 : vector<48x1xf32>
    %195 = vector.broadcast %194 : vector<48x1xf32> to vector<48x32xf32>
    %196 = arith.mulf %191, %195 : vector<48x32xf32>
    %197 = vector.broadcast %176 : vector<1x32xf32> to vector<48x32xf32>
    %198 = arith.mulf %196, %197 : vector<48x32xf32>
    %199 = vector.broadcast %178 : vector<1x32xf32> to vector<48x32xf32>
    %200 = arith.addf %198, %199 : vector<48x32xf32>
    %c1 = arith.constant 1 : index
    %c0_88 = arith.constant 0 : index
    %c0_89 = arith.constant 0 : index
    %201 = vector.load %arg2[%c1, %c0_88, %c0_89] : memref<2x1x32xf32, #tpu.memory_space<vmem>>, vector<1x1x32xf32>
    %202 = vector.shape_cast %201 : vector<1x1x32xf32> to vector<1x32xf32>
    %c1_90 = arith.constant 1 : index
    %c0_91 = arith.constant 0 : index
    %c0_92 = arith.constant 0 : index
    %203 = vector.load %arg3[%c1_90, %c0_91, %c0_92] : memref<2x1x32xf32, #tpu.memory_space<vmem>>, vector<1x1x32xf32>
    %204 = vector.shape_cast %203 : vector<1x1x32xf32> to vector<1x32xf32>
    %cst_93 = arith.constant dense<0.000000e+00> : vector<48xf32>
    %205 = vector.multi_reduction <add>, %200, %cst_93 [1] : vector<48x32xf32> to vector<48xf32>
    %206 = vector.shape_cast %205 : vector<48xf32> to vector<48x1xf32>
    %cst_94 = arith.constant 3.200000e+01 : f32
    %207 = vector.broadcast %cst_94 : f32 to vector<48x1xf32>
    %208 = arith.divf %206, %207 : vector<48x1xf32>
    %209 = vector.broadcast %208 : vector<48x1xf32> to vector<48x32xf32>
    %210 = arith.subf %200, %209 : vector<48x32xf32>
    %211 = arith.mulf %210, %210 : vector<48x32xf32>
    %cst_95 = arith.constant dense<0.000000e+00> : vector<48xf32>
    %212 = vector.multi_reduction <add>, %211, %cst_95 [1] : vector<48x32xf32> to vector<48xf32>
    %213 = vector.shape_cast %212 : vector<48xf32> to vector<48x1xf32>
    %cst_96 = arith.constant 3.200000e+01 : f32
    %214 = vector.broadcast %cst_96 : f32 to vector<48x1xf32>
    %215 = arith.divf %213, %214 : vector<48x1xf32>
    %216 = vector.broadcast %208 : vector<48x1xf32> to vector<48x32xf32>
    %217 = arith.subf %200, %216 : vector<48x32xf32>
    %cst_97 = arith.constant 9.99999974E-6 : f32
    %218 = vector.broadcast %cst_97 : f32 to vector<48x1xf32>
    %219 = arith.addf %215, %218 : vector<48x1xf32>
    %220 = math.rsqrt %219 : vector<48x1xf32>
    %221 = vector.broadcast %220 : vector<48x1xf32> to vector<48x32xf32>
    %222 = arith.mulf %217, %221 : vector<48x32xf32>
    %223 = vector.broadcast %202 : vector<1x32xf32> to vector<48x32xf32>
    %224 = arith.mulf %222, %223 : vector<48x32xf32>
    %225 = vector.broadcast %204 : vector<1x32xf32> to vector<48x32xf32>
    %226 = arith.addf %224, %225 : vector<48x32xf32>
    %227 = arith.truncf %226 : vector<48x32xf32> to vector<48x32xbf16>
    %c1_98 = arith.constant 1 : index
    %c0_99 = arith.constant 0 : index
    %c0_100 = arith.constant 0 : index
    %228 = vector.load %arg4[%c1_98, %c0_99, %c0_100] : memref<2x32x32xbf16, #tpu.memory_space<vmem>>, vector<1x32x32xbf16>
    %229 = vector.shape_cast %228 : vector<1x32x32xbf16> to vector<32x32xbf16>
    %cst_101 = arith.constant dense<0.000000e+00> : vector<48x32xf32>
    %230 = tpu.matmul %227, %229, %cst_101 {dimension_numbers = #tpu.dot_dimension_numbers<[1], [0], [0], [1], [0, 0, 1, 1], [], []>} : vector<48x32xbf16>, vector<32x32xbf16>, vector<48x32xf32> -> vector<48x32xf32>
    %c1_102 = arith.constant 1 : index
    %c0_103 = arith.constant 0 : index
    %c0_104 = arith.constant 0 : index
    %231 = vector.load %arg5[%c1_102, %c0_103, %c0_104] : memref<2x1x32xf32, #tpu.memory_space<vmem>>, vector<1x1x32xf32>
    %232 = vector.shape_cast %231 : vector<1x1x32xf32> to vector<1x32xf32>
    %233 = vector.broadcast %232 : vector<1x32xf32> to vector<48x32xf32>
    %234 = arith.addf %230, %233 : vector<48x32xf32>
    %c1_105 = arith.constant 1 : index
    %c0_106 = arith.constant 0 : index
    %c0_107 = arith.constant 0 : index
    %235 = vector.load %arg6[%c1_105, %c0_106, %c0_107] : memref<2x32x64xbf16, #tpu.memory_space<vmem>>, vector<1x32x64xbf16>
    %236 = vector.shape_cast %235 : vector<1x32x64xbf16> to vector<32x64xbf16>
    %cst_108 = arith.constant dense<0.000000e+00> : vector<48x64xf32>
    %237 = tpu.matmul %227, %236, %cst_108 {dimension_numbers = #tpu.dot_dimension_numbers<[1], [0], [0], [1], [0, 0, 1, 1], [], []>} : vector<48x32xbf16>, vector<32x64xbf16>, vector<48x64xf32> -> vector<48x64xf32>
    %c1_109 = arith.constant 1 : index
    %c0_110 = arith.constant 0 : index
    %c0_111 = arith.constant 0 : index
    %238 = vector.load %arg7[%c1_109, %c0_110, %c0_111] : memref<2x1x64xf32, #tpu.memory_space<vmem>>, vector<1x1x64xf32>
    %239 = vector.shape_cast %238 : vector<1x1x64xf32> to vector<1x64xf32>
    %240 = vector.broadcast %239 : vector<1x64xf32> to vector<48x64xf32>
    %241 = arith.addf %237, %240 : vector<48x64xf32>
    %242 = vector.shape_cast %234 : vector<48x32xf32> to vector<2x24x32xf32>
    %243 = arith.truncf %242 : vector<2x24x32xf32> to vector<2x24x32xbf16>
    %244 = vector.extract_strided_slice %241 {offsets = [0, 0], sizes = [48, 32], strides = [1, 1]} : vector<48x64xf32> to vector<48x32xf32>
    %245 = vector.shape_cast %244 : vector<48x32xf32> to vector<2x24x32xf32>
    %246 = arith.truncf %245 : vector<2x24x32xf32> to vector<2x24x32xbf16>
    %247 = vector.extract_strided_slice %241 {offsets = [0, 32], sizes = [48, 32], strides = [1, 1]} : vector<48x64xf32> to vector<48x32xf32>
    %248 = vector.shape_cast %247 : vector<48x32xf32> to vector<2x24x32xf32>
    %249 = arith.truncf %248 : vector<2x24x32xf32> to vector<2x24x32xbf16>
    %250 = vector.extract_strided_slice %243 {offsets = [0, 0, 0], sizes = [2, 24, 8], strides = [1, 1, 1]} : vector<2x24x32xbf16> to vector<2x24x8xbf16>
    %251 = vector.extract_strided_slice %246 {offsets = [0, 0, 0], sizes = [2, 24, 8], strides = [1, 1, 1]} : vector<2x24x32xbf16> to vector<2x24x8xbf16>
    "tpu.trace_start"() <{level = 10 : i32, message = "bqc,bkc->bqk"}> : () -> ()
    %cst_112 = arith.constant dense<0.000000e+00> : vector<2x24x24xf32>
    %252 = tpu.matmul %250, %251, %cst_112 {dimension_numbers = #tpu.dot_dimension_numbers<[2], [2], [1], [1], [0, 0, 0, 1, 1, 1], [0], [0]>} : vector<2x24x8xbf16>, vector<2x24x8xbf16>, vector<2x24x24xf32> -> vector<2x24x24xf32>
    "tpu.trace_stop"() : () -> ()
    %253 = arith.addf %252, %1 : vector<2x24x24xf32>
    %cst_113 = arith.constant dense<0xFF800000> : vector<2x24xf32>
    %254 = vector.multi_reduction <maximumf>, %253, %cst_113 [2] : vector<2x24x24xf32> to vector<2x24xf32>
    %255 = vector.shape_cast %254 : vector<2x24xf32> to vector<2x24x1xf32>
    %256 = vector.broadcast %255 : vector<2x24x1xf32> to vector<2x24x24xf32>
    %257 = arith.subf %253, %256 : vector<2x24x24xf32>
    %258 = math.exp %257 : vector<2x24x24xf32>
    %cst_114 = arith.constant dense<0.000000e+00> : vector<2x24xf32>
    %259 = vector.multi_reduction <add>, %258, %cst_114 [2] : vector<2x24x24xf32> to vector<2x24xf32>
    %260 = vector.shape_cast %259 : vector<2x24xf32> to vector<2x24x1xf32>
    %261 = tpu.reciprocal %260 {approx = true} : vector<2x24x1xf32> -> vector<2x24x1xf32>
    %262 = vector.broadcast %261 : vector<2x24x1xf32> to vector<2x24x24xf32>
    %263 = arith.mulf %258, %262 : vector<2x24x24xf32>
    %264 = arith.truncf %263 : vector<2x24x24xf32> to vector<2x24x24xbf16>
    %265 = vector.extract_strided_slice %249 {offsets = [0, 0, 0], sizes = [2, 24, 8], strides = [1, 1, 1]} : vector<2x24x32xbf16> to vector<2x24x8xbf16>
    "tpu.trace_start"() <{level = 10 : i32, message = "bqk,bkc->bqc"}> : () -> ()
    %cst_115 = arith.constant dense<0.000000e+00> : vector<2x24x8xf32>
    %266 = tpu.matmul %264, %265, %cst_115 {dimension_numbers = #tpu.dot_dimension_numbers<[2], [1], [1], [2], [0, 0, 0, 1, 1, 2], [0], [0]>} : vector<2x24x24xbf16>, vector<2x24x8xbf16>, vector<2x24x8xf32> -> vector<2x24x8xf32>
    "tpu.trace_stop"() : () -> ()
    %267 = vector.extract_strided_slice %243 {offsets = [0, 0, 8], sizes = [2, 24, 8], strides = [1, 1, 1]} : vector<2x24x32xbf16> to vector<2x24x8xbf16>
    %268 = vector.extract_strided_slice %246 {offsets = [0, 0, 8], sizes = [2, 24, 8], strides = [1, 1, 1]} : vector<2x24x32xbf16> to vector<2x24x8xbf16>
    "tpu.trace_start"() <{level = 10 : i32, message = "bqc,bkc->bqk"}> : () -> ()
    %cst_116 = arith.constant dense<0.000000e+00> : vector<2x24x24xf32>
    %269 = tpu.matmul %267, %268, %cst_116 {dimension_numbers = #tpu.dot_dimension_numbers<[2], [2], [1], [1], [0, 0, 0, 1, 1, 1], [0], [0]>} : vector<2x24x8xbf16>, vector<2x24x8xbf16>, vector<2x24x24xf32> -> vector<2x24x24xf32>
    "tpu.trace_stop"() : () -> ()
    %270 = arith.addf %269, %1 : vector<2x24x24xf32>
    %cst_117 = arith.constant dense<0xFF800000> : vector<2x24xf32>
    %271 = vector.multi_reduction <maximumf>, %270, %cst_117 [2] : vector<2x24x24xf32> to vector<2x24xf32>
    %272 = vector.shape_cast %271 : vector<2x24xf32> to vector<2x24x1xf32>
    %273 = vector.broadcast %272 : vector<2x24x1xf32> to vector<2x24x24xf32>
    %274 = arith.subf %270, %273 : vector<2x24x24xf32>
    %275 = math.exp %274 : vector<2x24x24xf32>
    %cst_118 = arith.constant dense<0.000000e+00> : vector<2x24xf32>
    %276 = vector.multi_reduction <add>, %275, %cst_118 [2] : vector<2x24x24xf32> to vector<2x24xf32>
    %277 = vector.shape_cast %276 : vector<2x24xf32> to vector<2x24x1xf32>
    %278 = tpu.reciprocal %277 {approx = true} : vector<2x24x1xf32> -> vector<2x24x1xf32>
    %279 = vector.broadcast %278 : vector<2x24x1xf32> to vector<2x24x24xf32>
    %280 = arith.mulf %275, %279 : vector<2x24x24xf32>
    %281 = arith.truncf %280 : vector<2x24x24xf32> to vector<2x24x24xbf16>
    %282 = vector.extract_strided_slice %249 {offsets = [0, 0, 8], sizes = [2, 24, 8], strides = [1, 1, 1]} : vector<2x24x32xbf16> to vector<2x24x8xbf16>
    "tpu.trace_start"() <{level = 10 : i32, message = "bqk,bkc->bqc"}> : () -> ()
    %cst_119 = arith.constant dense<0.000000e+00> : vector<2x24x8xf32>
    %283 = tpu.matmul %281, %282, %cst_119 {dimension_numbers = #tpu.dot_dimension_numbers<[2], [1], [1], [2], [0, 0, 0, 1, 1, 2], [0], [0]>} : vector<2x24x24xbf16>, vector<2x24x8xbf16>, vector<2x24x8xf32> -> vector<2x24x8xf32>
    "tpu.trace_stop"() : () -> ()
    %284 = vector.extract_strided_slice %243 {offsets = [0, 0, 16], sizes = [2, 24, 8], strides = [1, 1, 1]} : vector<2x24x32xbf16> to vector<2x24x8xbf16>
    %285 = vector.extract_strided_slice %246 {offsets = [0, 0, 16], sizes = [2, 24, 8], strides = [1, 1, 1]} : vector<2x24x32xbf16> to vector<2x24x8xbf16>
    "tpu.trace_start"() <{level = 10 : i32, message = "bqc,bkc->bqk"}> : () -> ()
    %cst_120 = arith.constant dense<0.000000e+00> : vector<2x24x24xf32>
    %286 = tpu.matmul %284, %285, %cst_120 {dimension_numbers = #tpu.dot_dimension_numbers<[2], [2], [1], [1], [0, 0, 0, 1, 1, 1], [0], [0]>} : vector<2x24x8xbf16>, vector<2x24x8xbf16>, vector<2x24x24xf32> -> vector<2x24x24xf32>
    "tpu.trace_stop"() : () -> ()
    %287 = arith.addf %286, %1 : vector<2x24x24xf32>
    %cst_121 = arith.constant dense<0xFF800000> : vector<2x24xf32>
    %288 = vector.multi_reduction <maximumf>, %287, %cst_121 [2] : vector<2x24x24xf32> to vector<2x24xf32>
    %289 = vector.shape_cast %288 : vector<2x24xf32> to vector<2x24x1xf32>
    %290 = vector.broadcast %289 : vector<2x24x1xf32> to vector<2x24x24xf32>
    %291 = arith.subf %287, %290 : vector<2x24x24xf32>
    %292 = math.exp %291 : vector<2x24x24xf32>
    %cst_122 = arith.constant dense<0.000000e+00> : vector<2x24xf32>
    %293 = vector.multi_reduction <add>, %292, %cst_122 [2] : vector<2x24x24xf32> to vector<2x24xf32>
    %294 = vector.shape_cast %293 : vector<2x24xf32> to vector<2x24x1xf32>
    %295 = tpu.reciprocal %294 {approx = true} : vector<2x24x1xf32> -> vector<2x24x1xf32>
    %296 = vector.broadcast %295 : vector<2x24x1xf32> to vector<2x24x24xf32>
    %297 = arith.mulf %292, %296 : vector<2x24x24xf32>
    %298 = arith.truncf %297 : vector<2x24x24xf32> to vector<2x24x24xbf16>
    %299 = vector.extract_strided_slice %249 {offsets = [0, 0, 16], sizes = [2, 24, 8], strides = [1, 1, 1]} : vector<2x24x32xbf16> to vector<2x24x8xbf16>
    "tpu.trace_start"() <{level = 10 : i32, message = "bqk,bkc->bqc"}> : () -> ()
    %cst_123 = arith.constant dense<0.000000e+00> : vector<2x24x8xf32>
    %300 = tpu.matmul %298, %299, %cst_123 {dimension_numbers = #tpu.dot_dimension_numbers<[2], [1], [1], [2], [0, 0, 0, 1, 1, 2], [0], [0]>} : vector<2x24x24xbf16>, vector<2x24x8xbf16>, vector<2x24x8xf32> -> vector<2x24x8xf32>
    "tpu.trace_stop"() : () -> ()
    %301 = vector.extract_strided_slice %243 {offsets = [0, 0, 24], sizes = [2, 24, 8], strides = [1, 1, 1]} : vector<2x24x32xbf16> to vector<2x24x8xbf16>
    %302 = vector.extract_strided_slice %246 {offsets = [0, 0, 24], sizes = [2, 24, 8], strides = [1, 1, 1]} : vector<2x24x32xbf16> to vector<2x24x8xbf16>
    "tpu.trace_start"() <{level = 10 : i32, message = "bqc,bkc->bqk"}> : () -> ()
    %cst_124 = arith.constant dense<0.000000e+00> : vector<2x24x24xf32>
    %303 = tpu.matmul %301, %302, %cst_124 {dimension_numbers = #tpu.dot_dimension_numbers<[2], [2], [1], [1], [0, 0, 0, 1, 1, 1], [0], [0]>} : vector<2x24x8xbf16>, vector<2x24x8xbf16>, vector<2x24x24xf32> -> vector<2x24x24xf32>
    "tpu.trace_stop"() : () -> ()
    %304 = arith.addf %303, %1 : vector<2x24x24xf32>
    %cst_125 = arith.constant dense<0xFF800000> : vector<2x24xf32>
    %305 = vector.multi_reduction <maximumf>, %304, %cst_125 [2] : vector<2x24x24xf32> to vector<2x24xf32>
    %306 = vector.shape_cast %305 : vector<2x24xf32> to vector<2x24x1xf32>
    %307 = vector.broadcast %306 : vector<2x24x1xf32> to vector<2x24x24xf32>
    %308 = arith.subf %304, %307 : vector<2x24x24xf32>
    %309 = math.exp %308 : vector<2x24x24xf32>
    %cst_126 = arith.constant dense<0.000000e+00> : vector<2x24xf32>
    %310 = vector.multi_reduction <add>, %309, %cst_126 [2] : vector<2x24x24xf32> to vector<2x24xf32>
    %311 = vector.shape_cast %310 : vector<2x24xf32> to vector<2x24x1xf32>
    %312 = tpu.reciprocal %311 {approx = true} : vector<2x24x1xf32> -> vector<2x24x1xf32>
    %313 = vector.broadcast %312 : vector<2x24x1xf32> to vector<2x24x24xf32>
    %314 = arith.mulf %309, %313 : vector<2x24x24xf32>
    %315 = arith.truncf %314 : vector<2x24x24xf32> to vector<2x24x24xbf16>
    %316 = vector.extract_strided_slice %249 {offsets = [0, 0, 24], sizes = [2, 24, 8], strides = [1, 1, 1]} : vector<2x24x32xbf16> to vector<2x24x8xbf16>
    "tpu.trace_start"() <{level = 10 : i32, message = "bqk,bkc->bqc"}> : () -> ()
    %cst_127 = arith.constant dense<0.000000e+00> : vector<2x24x8xf32>
    %317 = tpu.matmul %315, %316, %cst_127 {dimension_numbers = #tpu.dot_dimension_numbers<[2], [1], [1], [2], [0, 0, 0, 1, 1, 2], [0], [0]>} : vector<2x24x24xbf16>, vector<2x24x8xbf16>, vector<2x24x8xf32> -> vector<2x24x8xf32>
    "tpu.trace_stop"() : () -> ()
    %318 = tpu.concatenate %266, %283, %300, %317 in 2 : vector<2x24x8xf32>, vector<2x24x8xf32>, vector<2x24x8xf32>, vector<2x24x8xf32> -> vector<2x24x32xf32>
    %319 = vector.shape_cast %318 : vector<2x24x32xf32> to vector<48x32xf32>
    %320 = arith.truncf %319 : vector<48x32xf32> to vector<48x32xbf16>
    %c1_128 = arith.constant 1 : index
    %c0_129 = arith.constant 0 : index
    %c0_130 = arith.constant 0 : index
    %321 = vector.load %arg8[%c1_128, %c0_129, %c0_130] : memref<2x32x32xbf16, #tpu.memory_space<vmem>>, vector<1x32x32xbf16>
    %322 = vector.shape_cast %321 : vector<1x32x32xbf16> to vector<32x32xbf16>
    %cst_131 = arith.constant dense<0.000000e+00> : vector<48x32xf32>
    %323 = tpu.matmul %320, %322, %cst_131 {dimension_numbers = #tpu.dot_dimension_numbers<[1], [0], [0], [1], [0, 0, 1, 1], [], []>} : vector<48x32xbf16>, vector<32x32xbf16>, vector<48x32xf32> -> vector<48x32xf32>
    %c1_132 = arith.constant 1 : index
    %c0_133 = arith.constant 0 : index
    %c0_134 = arith.constant 0 : index
    %324 = vector.load %arg9[%c1_132, %c0_133, %c0_134] : memref<2x1x32xf32, #tpu.memory_space<vmem>>, vector<1x1x32xf32>
    %325 = vector.shape_cast %324 : vector<1x1x32xf32> to vector<1x32xf32>
    %326 = vector.broadcast %325 : vector<1x32xf32> to vector<48x32xf32>
    %327 = arith.addf %323, %326 : vector<48x32xf32>
    %328 = arith.addf %327, %200 : vector<48x32xf32>
    %c1_135 = arith.constant 1 : index
    %c0_136 = arith.constant 0 : index
    %c0_137 = arith.constant 0 : index
    %329 = vector.load %arg10[%c1_135, %c0_136, %c0_137] : memref<2x1x32xf32, #tpu.memory_space<vmem>>, vector<1x1x32xf32>
    %330 = vector.shape_cast %329 : vector<1x1x32xf32> to vector<1x32xf32>
    %c1_138 = arith.constant 1 : index
    %c0_139 = arith.constant 0 : index
    %c0_140 = arith.constant 0 : index
    %331 = vector.load %arg11[%c1_138, %c0_139, %c0_140] : memref<2x1x32xf32, #tpu.memory_space<vmem>>, vector<1x1x32xf32>
    %332 = vector.shape_cast %331 : vector<1x1x32xf32> to vector<1x32xf32>
    %cst_141 = arith.constant dense<0.000000e+00> : vector<48xf32>
    %333 = vector.multi_reduction <add>, %328, %cst_141 [1] : vector<48x32xf32> to vector<48xf32>
    %334 = vector.shape_cast %333 : vector<48xf32> to vector<48x1xf32>
    %cst_142 = arith.constant 3.200000e+01 : f32
    %335 = vector.broadcast %cst_142 : f32 to vector<48x1xf32>
    %336 = arith.divf %334, %335 : vector<48x1xf32>
    %337 = vector.broadcast %336 : vector<48x1xf32> to vector<48x32xf32>
    %338 = arith.subf %328, %337 : vector<48x32xf32>
    %339 = arith.mulf %338, %338 : vector<48x32xf32>
    %cst_143 = arith.constant dense<0.000000e+00> : vector<48xf32>
    %340 = vector.multi_reduction <add>, %339, %cst_143 [1] : vector<48x32xf32> to vector<48xf32>
    %341 = vector.shape_cast %340 : vector<48xf32> to vector<48x1xf32>
    %cst_144 = arith.constant 3.200000e+01 : f32
    %342 = vector.broadcast %cst_144 : f32 to vector<48x1xf32>
    %343 = arith.divf %341, %342 : vector<48x1xf32>
    %344 = vector.broadcast %336 : vector<48x1xf32> to vector<48x32xf32>
    %345 = arith.subf %328, %344 : vector<48x32xf32>
    %cst_145 = arith.constant 9.99999974E-6 : f32
    %346 = vector.broadcast %cst_145 : f32 to vector<48x1xf32>
    %347 = arith.addf %343, %346 : vector<48x1xf32>
    %348 = math.rsqrt %347 : vector<48x1xf32>
    %349 = vector.broadcast %348 : vector<48x1xf32> to vector<48x32xf32>
    %350 = arith.mulf %345, %349 : vector<48x32xf32>
    %351 = vector.broadcast %330 : vector<1x32xf32> to vector<48x32xf32>
    %352 = arith.mulf %350, %351 : vector<48x32xf32>
    %353 = vector.broadcast %332 : vector<1x32xf32> to vector<48x32xf32>
    %354 = arith.addf %352, %353 : vector<48x32xf32>
    %355 = arith.truncf %354 : vector<48x32xf32> to vector<48x32xbf16>
    %c1_146 = arith.constant 1 : index
    %c0_147 = arith.constant 0 : index
    %c0_148 = arith.constant 0 : index
    %356 = vector.load %arg12[%c1_146, %c0_147, %c0_148] : memref<2x32x64xbf16, #tpu.memory_space<vmem>>, vector<1x32x64xbf16>
    %357 = vector.shape_cast %356 : vector<1x32x64xbf16> to vector<32x64xbf16>
    %cst_149 = arith.constant dense<0.000000e+00> : vector<48x64xf32>
    %358 = tpu.matmul %355, %357, %cst_149 {dimension_numbers = #tpu.dot_dimension_numbers<[1], [0], [0], [1], [0, 0, 1, 1], [], []>} : vector<48x32xbf16>, vector<32x64xbf16>, vector<48x64xf32> -> vector<48x64xf32>
    %c1_150 = arith.constant 1 : index
    %c0_151 = arith.constant 0 : index
    %c0_152 = arith.constant 0 : index
    %359 = vector.load %arg13[%c1_150, %c0_151, %c0_152] : memref<2x1x64xf32, #tpu.memory_space<vmem>>, vector<1x1x64xf32>
    %360 = vector.shape_cast %359 : vector<1x1x64xf32> to vector<1x64xf32>
    %361 = vector.broadcast %360 : vector<1x64xf32> to vector<48x64xf32>
    %362 = arith.addf %358, %361 : vector<48x64xf32>
    %cst_153 = arith.constant 0.000000e+00 : f32
    %363 = vector.broadcast %cst_153 : f32 to vector<48x64xf32>
    %364 = arith.maximumf %362, %363 : vector<48x64xf32>
    %365 = arith.truncf %364 : vector<48x64xf32> to vector<48x64xbf16>
    %c1_154 = arith.constant 1 : index
    %c0_155 = arith.constant 0 : index
    %c0_156 = arith.constant 0 : index
    %366 = vector.load %arg14[%c1_154, %c0_155, %c0_156] : memref<2x64x32xbf16, #tpu.memory_space<vmem>>, vector<1x64x32xbf16>
    %367 = vector.shape_cast %366 : vector<1x64x32xbf16> to vector<64x32xbf16>
    %cst_157 = arith.constant dense<0.000000e+00> : vector<48x32xf32>
    %368 = tpu.matmul %365, %367, %cst_157 {dimension_numbers = #tpu.dot_dimension_numbers<[1], [0], [0], [1], [0, 0, 1, 1], [], []>} : vector<48x64xbf16>, vector<64x32xbf16>, vector<48x32xf32> -> vector<48x32xf32>
    %c1_158 = arith.constant 1 : index
    %c0_159 = arith.constant 0 : index
    %c0_160 = arith.constant 0 : index
    %369 = vector.load %arg15[%c1_158, %c0_159, %c0_160] : memref<2x1x32xf32, #tpu.memory_space<vmem>>, vector<1x1x32xf32>
    %370 = vector.shape_cast %369 : vector<1x1x32xf32> to vector<1x32xf32>
    %371 = vector.broadcast %370 : vector<1x32xf32> to vector<48x32xf32>
    %372 = arith.addf %368, %371 : vector<48x32xf32>
    %373 = arith.addf %372, %328 : vector<48x32xf32>
    %c1_161 = arith.constant 1 : index
    %c0_162 = arith.constant 0 : index
    %c0_163 = arith.constant 0 : index
    %374 = vector.load %arg16[%c1_161, %c0_162, %c0_163] : memref<2x1x32xf32, #tpu.memory_space<vmem>>, vector<1x1x32xf32>
    %375 = vector.shape_cast %374 : vector<1x1x32xf32> to vector<1x32xf32>
    %c1_164 = arith.constant 1 : index
    %c0_165 = arith.constant 0 : index
    %c0_166 = arith.constant 0 : index
    %376 = vector.load %arg17[%c1_164, %c0_165, %c0_166] : memref<2x1x32xf32, #tpu.memory_space<vmem>>, vector<1x1x32xf32>
    %377 = vector.shape_cast %376 : vector<1x1x32xf32> to vector<1x32xf32>
    %cst_167 = arith.constant dense<0.000000e+00> : vector<48xf32>
    %378 = vector.multi_reduction <add>, %373, %cst_167 [1] : vector<48x32xf32> to vector<48xf32>
    %379 = vector.shape_cast %378 : vector<48xf32> to vector<48x1xf32>
    %cst_168 = arith.constant 3.200000e+01 : f32
    %380 = vector.broadcast %cst_168 : f32 to vector<48x1xf32>
    %381 = arith.divf %379, %380 : vector<48x1xf32>
    %382 = vector.broadcast %381 : vector<48x1xf32> to vector<48x32xf32>
    %383 = arith.subf %373, %382 : vector<48x32xf32>
    %384 = arith.mulf %383, %383 : vector<48x32xf32>
    %cst_169 = arith.constant dense<0.000000e+00> : vector<48xf32>
    %385 = vector.multi_reduction <add>, %384, %cst_169 [1] : vector<48x32xf32> to vector<48xf32>
    %386 = vector.shape_cast %385 : vector<48xf32> to vector<48x1xf32>
    %cst_170 = arith.constant 3.200000e+01 : f32
    %387 = vector.broadcast %cst_170 : f32 to vector<48x1xf32>
    %388 = arith.divf %386, %387 : vector<48x1xf32>
    %389 = vector.broadcast %381 : vector<48x1xf32> to vector<48x32xf32>
    %390 = arith.subf %373, %389 : vector<48x32xf32>
    %cst_171 = arith.constant 9.99999974E-6 : f32
    %391 = vector.broadcast %cst_171 : f32 to vector<48x1xf32>
    %392 = arith.addf %388, %391 : vector<48x1xf32>
    %393 = math.rsqrt %392 : vector<48x1xf32>
    %394 = vector.broadcast %393 : vector<48x1xf32> to vector<48x32xf32>
    %395 = arith.mulf %390, %394 : vector<48x32xf32>
    %396 = vector.broadcast %375 : vector<1x32xf32> to vector<48x32xf32>
    %397 = arith.mulf %395, %396 : vector<48x32xf32>
    %398 = vector.broadcast %377 : vector<1x32xf32> to vector<48x32xf32>
    %399 = arith.addf %397, %398 : vector<48x32xf32>
    %c0_172 = arith.constant 0 : index
    %c0_173 = arith.constant 0 : index
    %400 = vector.load %arg18[%c0_172, %c0_173] : memref<48x32xf32, #tpu.memory_space<vmem>>, vector<48x32xf32>
    tpu.vector_store %arg18[%c0_172, %c0_173], %399 {strides = array<i32>} : memref<48x32xf32, #tpu.memory_space<vmem>>, vector<48x32xf32>,
    return
  }
}

</mosaic_0001>

<bundles_post_ra>
// kernel: emformer_forward.1
= control target key start
LH: loop header
LB: loop body
LE: loop exit
PB: predicated region body
PF: predicated region fallthrough
CT: control target
= control target key end

     0   :  { %vm74_vm0 = vcmask 261120   ;;  %v5744_v42 = vmov 0.0   ;;  %vm5745_vm1 = vmmov 0   ;;  %vm358_vm2 = vcmask 64512   ;;  %s5746_s19 = smov 96   ;;  %s5748_s20 = smov 88   ;;  %s7280_s0 = inlined_call_operand.vmem [shape: f32[48,32], index: 0, kind: input, shape index: {}]   ;;  %s7281_s4 = inlined_call_operand.vmem [shape: bf16[2,32,32], index: 4, kind: input, shape index: {}]   ;;  %s7282_s6 = inlined_call_operand.vmem [shape: bf16[2,32,64], index: 6, kind: input, shape index: {}]   ;;  %s7283_s2 = inlined_call_operand.vmem [shape: f32[2,1,32], index: 2, kind: input, shape index: {}]   ;;  %s7284_s3 = inlined_call_operand.vmem [shape: f32[2,1,32], index: 3, kind: input, shape index: {}]   ;;  %s7285_s5 = inlined_call_operand.vmem [shape: f32[2,1,32], index: 5, kind: input, shape index: {}]   ;;  %s7286_s7 = inlined_call_operand.vmem [shape: f32[2,1,64], index: 7, kind: input, shape index: {}]   ;;  %s7287_s1 = inlined_call_operand.vmem [shape: f32[2,24,24], index: 1, kind: input, shape index: {}]   ;;  %s7288_s8 = inlined_call_operand.vmem [shape: bf16[2,32,32], index: 8, kind: input, shape index: {}]   ;;  %s7289_s9 = inlined_call_operand.vmem [shape: f32[2,1,32], index: 9, kind: input, shape index: {}]   ;;  %s7290_s12 = inlined_call_operand.vmem [shape: bf16[2,32,64], index: 12, kind: input, shape index: {}]   ;;  %s7291_s14 = inlined_call_operand.vmem [shape: bf16[2,64,32], index: 14, kind: input, shape index: {}]   ;;  %s7292_s10 = inlined_call_operand.vmem [shape: f32[2,1,32], index: 10, kind: input, shape index: {}]   ;;  %s7293_s11 = inlined_call_operand.vmem [shape: f32[2,1,32], index: 11, kind: input, shape index: {}]   ;;  %s7294_s13 = inlined_call_operand.vmem [shape: f32[2,1,64], index: 13, kind: input, shape index: {}]   ;;  %s7295_s15 = inlined_call_operand.vmem [shape: f32[2,1,32], index: 15, kind: input, shape index: {}]   ;;  %s7296_s16 = inlined_call_operand.vmem [shape: f32[2,1,32], index: 16, kind: input, shape index: {}]   ;;  %s7297_s17 = inlined_call_operand.vmem [shape: f32[2,1,32], index: 17, kind: input, shape index: {}]   ;;  %s7298_s18 = inlined_call_operand.vmem [shape: f32[48,32], index: 18, kind: output, shape index: {}]  }
   0x1   :  { %7312 = sst [smem:[#allocation2_spill]] %s7280_s0  ;;  %4870 = vmatprep.subr.bf16.mxu0 %v5744_v42  ;;  %4886 = vmatprep.subr.bf16.mxu1 %v5744_v42  ;;  %vm479_vm3 = vcmask 195584   ;;  %vm563_vm4 = vcmask 1043456   ;;  %s5749_s21 = smov 112   ;;  %vm1751_vm5 = vcmask 130048   ;;  %vm2106_vm6 = vcmask 523264  }
   0x2   :  { %7313 = sst [smem:[#allocation3_spill]] %s7281_s4  ;;  %s7315_s29 = sld [smem:[#allocation2_spill]]  ;;  %4874 = vmatprep.mubr.msk.bf16.mxu0 %vm5745_vm1, %v5744_v42  ;;  %4890 = vmatprep.mubr.msk.bf16.mxu1 %vm5745_vm1, %v5744_v42 }
   0x3   :  { %7314 = sst [smem:[#allocation4_spill]] %s7282_s6  ;;  %s7316_s27 = sld [smem:[#allocation3_spill]] }
   0x4   :  { %s7317_s0 = sld [smem:[#allocation4_spill]]  ;;  %s5747_s4 = smov 120  }
   0x5   :  { %s5750_s22 = smov 80   ;;  %s7310_s6 = smov 104  }
   0x6   :  { %s7302_s23 = smov 72   ;;  %s7306_s24 = smov 8  }
   0x7   :  { %s7308_s25 = smov 16   ;;  %s7304_s26 = smov 24  }
   0x8   :  { %v60_v0 = vld [vmem:[%s7315_s29] sm:$0xff]  ;;  %v62_v1 = vld [vmem:[%s7315_s29 + $0x10] sm:$0xff]  ;;  %v61_v2 = vld [vmem:[%s7315_s29 + $0x8] sm:$0xff] }
   0x9   :  { %v75_v3 = vsel %vm74_vm0, %v60_v0, 0.0  ;;  %v81_v4 = vsel %vm74_vm0, %v62_v1, 0.0  ;;  %v63_v5 = vld [vmem:[%s7315_s29 + $0x18] sm:$0xff]  ;;  %v78_v6 = vsel %vm74_vm0, %v61_v2, 0.0  ;;  %v64_v8 = vld [vmem:[%s7315_s29 + $0x20] sm:$0xff]  ;;  %v65_v9 = vld [vmem:[%s7315_s29 + $0x28] sm:$0xff] }
   0xa   :  { %76 = vadd.xlane.f32.xlu0 %v75_v3  ;;  %82 = vadd.xlane.f32.xlu1 %v81_v4  ;;  %v84_v7 = vsel %vm74_vm0, %v63_v5, 0.0  ;;  %v87_v10 = vsel %vm74_vm0, %v64_v8, 0.0  ;;  %v90_v11 = vsel %vm74_vm0, %v65_v9, 0.0  ;;  %v5444_v43 = vld [vmem:[%s7316_s27] sm:$0xff]   ;;  %v5446_v45 = vld [vmem:[%s7316_s27 + $0x8] sm:$0xff]  }
   0xb   :  { %v5445_v44 = vld [vmem:[%s7317_s0] sm:$0xff]   ;;  %4871 = vmatpush3.bf16.msra.mxu0 %v5444_v43  ;;  %v5447_v46 = vld [vmem:[%s7317_s0 + $0x8] sm:$0xff]  }
   0xc   :  { %4887 = vmatpush3.bf16.msra.mxu1 %v5445_v44  ;;  %4872 = vmatprep.subr.bf16.mxu0 %v5744_v42  ;;  %v4513_v3 = vld [vmem:[%s7283_s2] ss:$0 sm:$0xff] }
   0xd   :  { %4888 = vmatprep.subr.bf16.mxu1 %v5744_v42 }
   0xe   :  { %79 = vadd.xlane.f32.xlu0 %v78_v6  ;;  %85 = vadd.xlane.f32.xlu1 %v84_v7 }
   0xf   :  { %4873 = vmatpush3.bf16.msra.mxu0 %v5446_v45 }
  0x10   :  { %4889 = vmatpush3.bf16.msra.mxu1 %v5447_v46 }
  0x12   :  { %88 = vadd.xlane.f32.xlu0 %v87_v10  ;;  %91 = vadd.xlane.f32.xlu1 %v90_v11 }
  0x97   :  { %v77_v12 = vpop.xlane.xlu0 %76  ;;  %v83_v13 = vpop.xlane.xlu1 %82 }
  0x98   :  { %v94_v14 = vmul.f32 0.03125, %v77_v12  ;;  %v96_v15 = vmul.f32 0.03125, %v83_v13 }
  0x9a   :  { %v5875_v16 = vsub.f32 %v60_v0, %v94_v14  ;;  %v5877_v17 = vsub.f32 %v62_v1, %v96_v15 }
  0x9b   :  { %v80_v18 = vpop.xlane.xlu0 %79  ;;  %v86_v19 = vpop.xlane.xlu1 %85 }
  0x9c   :  { %v95_v20 = vmul.f32 0.03125, %v80_v18  ;;  %v97_v21 = vmul.f32 0.03125, %v86_v19  ;;  %v106_v22 = vmul.f32 %v5875_v16, %v5875_v16  ;;  %v108_v23 = vmul.f32 %v5877_v17, %v5877_v17 }
  0x9e   :  { %v5883_v24 = vsub.f32 %v61_v2, %v95_v20  ;;  %v5885_v25 = vsub.f32 %v63_v5, %v97_v21  ;;  %v112_v26 = vsel %vm74_vm0, %v106_v22, 0.0  ;;  %v118_v29 = vsel %vm74_vm0, %v108_v23, 0.0 }
  0x9f   :  { %113 = vadd.xlane.f32.xlu0 %v112_v26  ;;  %v89_v27 = vpop.xlane.xlu0 %88  ;;  %v92_v28 = vpop.xlane.xlu1 %91 }
  0xa0   :  { %v98_v30 = vmul.f32 0.03125, %v89_v27  ;;  %v99_v31 = vmul.f32 0.03125, %v92_v28  ;;  %v107_v32 = vmul.f32 %v5883_v24, %v5883_v24  ;;  %v109_v33 = vmul.f32 %v5885_v25, %v5885_v25 }
  0xa2   :  { %v5893_v34 = vsub.f32 %v64_v8, %v98_v30  ;;  %v5895_v35 = vsub.f32 %v65_v9, %v99_v31  ;;  %v115_v36 = vsel %vm74_vm0, %v107_v32, 0.0  ;;  %v121_v37 = vsel %vm74_vm0, %v109_v33, 0.0  ;;  %v4514_v8 = vld [vmem:[%s7284_s3] ss:$0 sm:$0xff] }
  0xa3   :  { %119 = vadd.xlane.f32.xlu0 %v118_v29  ;;  %116 = vadd.xlane.f32.xlu1 %v115_v36  ;;  %v4515_v30 = vld [vmem:[%s7285_s5] ss:$0 sm:$0xff] }
  0xa4   :  { %v110_v38 = vmul.f32 %v5893_v34, %v5893_v34  ;;  %v111_v39 = vmul.f32 %v5895_v35, %v5895_v35  ;;  %v4521_v32 = vld [vmem:[%s7286_s7] ss:$0 sm:$0xff] }
  0xa6   :  { %v124_v40 = vsel %vm74_vm0, %v110_v38, 0.0  ;;  %v127_v41 = vsel %vm74_vm0, %v111_v39, 0.0 }
  0xa7   :  { %122 = vadd.xlane.f32.xlu1 %v121_v37  ;;  %125 = vadd.xlane.f32.xlu0 %v124_v40 }
  0xab   :  { %128 = vadd.xlane.f32.xlu1 %v127_v41 }
 0x12c   :  { %v114_v47 = vpop.xlane.xlu0 %113 }
 0x12d   :  { %v130_v48 = vmul.f32 0.03125, %v114_v47 }
 0x12f   :  { %v136_v49 = vadd.f32 1e-05, %v130_v48 }
 0x130   :  { %v117_v50 = vpop.xlane.xlu1 %116  ;;  %v120_v51 = vpop.xlane.xlu0 %119 }
 0x131   :  { %5468 = vrsqrt.f32 %v136_v49  ;;  %v131_v52 = vmul.f32 0.03125, %v117_v50  ;;  %v132_v53 = vmul.f32 0.03125, %v120_v51 }
 0x133   :  { %v137_v54 = vadd.f32 1e-05, %v131_v52  ;;  %v138_v55 = vadd.f32 1e-05, %v132_v53 }
 0x134   :  { %v123_v56 = vpop.xlane.xlu1 %122  ;;  %v126_v57 = vpop.xlane.xlu0 %125 }
 0x135   :  { %5470 = vrsqrt.f32 %v137_v54  ;;  %v133_v58 = vmul.f32 0.03125, %v123_v56  ;;  %v134_v60 = vmul.f32 0.03125, %v126_v57 }
 0x136   :  { %5472 = vrsqrt.f32 %v138_v55 }
 0x137   :  { %v139_v59 = vadd.f32 1e-05, %v133_v58  ;;  %v140_v0 = vadd.f32 1e-05, %v134_v60 }
 0x138   :  { %v129_v61 = vpop.xlane.xlu1 %128 }
 0x139   :  { %5474 = vrsqrt.f32 %v139_v59  ;;  %v135_v62 = vmul.f32 0.03125, %v129_v61 }
 0x13b   :  { %v5469_v63 = vpop.eup %5468  ;;  %v141_v1 = vadd.f32 1e-05, %v135_v62 }
 0x13c   :  { %v148_v2 = vmul.f32 %v5469_v63, %v5875_v16 }
 0x13d   :  { %5476 = vrsqrt.f32 %v141_v1 }
 0x13e   :  { %5478 = vrsqrt.f32 %v140_v0  ;;  %v160_v6 = vmul.f32 %v4513_v3, %v148_v2 }
 0x13f   :  { %v5471_v4 = vpop.eup %5470 }
 0x140   :  { %v149_v5 = vmul.f32 %v5471_v4, %v5883_v24  ;;  %v5473_v7 = vpop.eup %5472  ;;  %v172_v11 = vadd.f32 %v4514_v8, %v160_v6 }
 0x141   :  { %v150_v13 = vmul.f32 %v5473_v7, %v5877_v17 }
 0x142   :  { %v161_v9 = vmul.f32 %v4513_v3, %v149_v5 }
 0x143   :  { %v5475_v10 = vpop.eup %5474  ;;  %v162_v19 = vmul.f32 %v4513_v3, %v150_v13 }
 0x144   :  { %v173_v12 = vadd.f32 %v4514_v8, %v161_v9  ;;  %v151_v14 = vmul.f32 %v5475_v10, %v5885_v25 }
 0x145   :  { %v174_v22 = vadd.f32 %v4514_v8, %v162_v19 }
 0x146   :  { %v178_v15 = vpack.c.bf16 %v173_v12, %v172_v11  ;;  %v163_v16 = vmul.f32 %v4513_v3, %v151_v14 }
 0x147   :  { %v5477_v18 = vpop.eup %5476 }
 0x148   :  { %4875 = vmatmul.mubr.msk.bf16.vlgmr.msra.gmra.mrb[0].mxu0 %vm74_vm0, %v178_v15  ;;  %4891 = vmatmul.mubr.msk.bf16.vlgmr.msra.gmra.mrb[0].mxu1 %vm74_vm0, %v178_v15  ;;  %v5479_v20 = vpop.eup %5478  ;;  %v175_v21 = vadd.f32 %v4514_v8, %v163_v16  ;;  %v153_v17 = vmul.f32 %v5477_v18, %v5895_v35  ;;  %v6000_v18 = vld [vmem:[%s7287_s1] sm:$0xff] }
 0x149   :  { %4878 = vmatprep.mubr.msk.bf16.mxu0 %vm5745_vm1, %v5744_v42  ;;  %4894 = vmatprep.mubr.msk.bf16.mxu1 %vm5745_vm1, %v5744_v42  ;;  %v152_v23 = vmul.f32 %v5479_v20, %v5893_v34  ;;  %v6005_v20 = vld [vmem:[%s7287_s1 + $0x10] sm:$0xff] }
 0x14a   :  { %v179_v24 = vpack.c.bf16 %v175_v21, %v174_v22  ;;  %v165_v25 = vmul.f32 %v4513_v3, %v153_v17  ;;  %v6010_v17 = vld [vmem:[%s7287_s1 + $0x8] sm:$0xff] }
 0x14b   :  { %v164_v26 = vmul.f32 %v4513_v3, %v152_v23 }
 0x14c   :  { %v177_v27 = vadd.f32 %v4514_v8, %v165_v25 }
 0x14d   :  { %v176_v28 = vadd.f32 %v4514_v8, %v164_v26 }
 0x14f   :  { %v180_v29 = vpack.c.bf16 %v177_v27, %v176_v28 }
 0x150   :  { %4879 = vmatmul.mubr.msk.bf16.gmra.mrb[4].mxu0 %vm74_vm0, %v179_v24  ;;  %4895 = vmatmul.mubr.msk.bf16.gmra.mrb[4].mxu1 %vm74_vm0, %v179_v24 }
 0x151   :  { %4882 = vmatprep.mubr.msk.bf16.mxu0 %vm5745_vm1, %v5744_v42  ;;  %4898 = vmatprep.mubr.msk.bf16.mxu1 %vm5745_vm1, %v5744_v42 }
 0x158   :  { %4883 = vmatmul.mubr.msk.bf16.gmra.mrb[8].mxu0 %vm74_vm0, %v180_v29  ;;  %4899 = vmatmul.mubr.msk.bf16.gmra.mrb[8].mxu1 %vm74_vm0, %v180_v29 }
 0x21b   :  { %v247_v31 = vpop.f32.mrb[0].mxu0  ;;  %v327_v33 = vpop.f32.mrb[0].mxu1 }
 0x21c   :  { %v4876_v34 = vpop.f32.mrb[1].mxu0  ;;  %v4892_v35 = vpop.f32.mrb[1].mxu1  ;;  %v248_v38 = vadd.f32 %v4515_v30, %v247_v31  ;;  %v328_v39 = vadd.f32 %v4521_v32, %v327_v33 }
 0x21d   :  { %v250_v36 = vpop.f32.mrb[2].mxu0  ;;  %v330_v37 = vpop.f32.mrb[2].mxu1  ;;  %v6031_v34 = vld [vmem:[%s7287_s1 + $0x20] sm:$0xff] }
 0x21e   :  { %v251_v40 = vadd.f32 %v4515_v30, %v250_v36  ;;  %v331_v41 = vadd.f32 %v4521_v32, %v330_v37  ;;  %v4877_v43 = vpop.f32.mrb[3].mxu0  ;;  %v4893_v44 = vpop.f32.mrb[3].mxu1 }
 0x220   :  { %v5957_v45 = vpack.c.bf16 %v251_v40, %v248_v38  ;;  %v5959_v46 = vpack.c.bf16 %v331_v41, %v328_v39 }
 0x222   :  { %5294 = vmatprep.subr.msk.bf16.mxu0 %vm358_vm2, %v5959_v46  ;;  %4906 = vmatprep.mubr.msk.bf16.mxu0 %vm358_vm2, %v5957_v45  ;;  %v366_v47 = vsel %vm358_vm2, %v5959_v46, 0 }
 0x223   :  { %v255_v48 = vpop.f32.mrb[4].mxu0  ;;  %v335_v49 = vpop.f32.mrb[4].mxu1  ;;  %4903 = vmatpush3.bf16.xpose.msra.mxu0 %v366_v47 }
 0x224   :  { %v336_v50 = vadd.f32 %v4521_v32, %v335_v49  ;;  %v4880_v51 = vpop.f32.mrb[5].mxu0  ;;  %v4896_v52 = vpop.f32.mrb[5].mxu1  ;;  %v256_v59 = vadd.f32 %v4515_v30, %v255_v48 }
 0x225   :  { %v258_v53 = vpop.f32.mrb[6].mxu0  ;;  %v338_v54 = vpop.f32.mrb[6].mxu1 }
 0x226   :  { %v5967_v55 = vpack.c.bf16 %v336_v50, %v336_v50  ;;  %v4881_v56 = vpop.f32.mrb[7].mxu0  ;;  %v4897_v57 = vpop.f32.mrb[7].mxu1  ;;  %v259_v62 = vadd.f32 %v4515_v30, %v258_v53  ;;  %v339_v63 = vadd.f32 %v4521_v32, %v338_v54  ;;  %v5977_v11 = vpack.c.bf16 %v256_v59, %v256_v59 }
 0x228   :  { %5295 = vmatprep.subr.msk.bf16.mxu0 %vm358_vm2, %v5967_v55  ;;  %v369_v58 = vsel %vm358_vm2, %v5967_v55, 0 }
 0x22b   :  { %v263_v60 = vpop.f32.mrb[8].mxu0  ;;  %v343_v61 = vpop.f32.mrb[8].mxu1  ;;  %4905 = vmatpush3.bf16.xpose.msra.mxu0 %v369_v58 }
 0x22c   :  { %v264_v0 = vadd.f32 %v4515_v30, %v263_v60  ;;  %v344_v1 = vadd.f32 %v4521_v32, %v343_v61  ;;  %v4884_v2 = vpop.f32.mrb[9].mxu0  ;;  %v4900_v3 = vpop.f32.mrb[9].mxu1 }
 0x22d   :  { %v266_v4 = vpop.f32.mrb[10].mxu0  ;;  %v346_v5 = vpop.f32.mrb[10].mxu1 }
 0x22e   :  { %v5973_v6 = vpack.c.bf16 %v264_v0, %v259_v62  ;;  %v5975_v7 = vpack.c.bf16 %v344_v1, %v339_v63  ;;  %v347_v8 = vadd.f32 %v4521_v32, %v346_v5  ;;  %v4885_v9 = vpop.f32.mrb[11].mxu0  ;;  %v4901_v10 = vpop.f32.mrb[11].mxu1  ;;  %v267_v15 = vadd.f32 %v4515_v30, %v266_v4  ;;  %v6021_v30 = vld [vmem:[%s7287_s1 + $0x18] sm:$0xff]  ;;  %v6026_v32 = vld [vmem:[%s7287_s1 + $0x28] sm:$0xff] }
 0x230   :  { %v5979_v12 = vpack.c.bf16 %v347_v8, %v347_v8  ;;  %5296 = vmatprep.subr.msk.bf16.mxu1 %vm358_vm2, %v5975_v7  ;;  %4914 = vmatprep.mubr.msk.bf16.mxu1 %vm358_vm2, %v5973_v6  ;;  %v426_v13 = vsel %vm358_vm2, %v5975_v7, 0  ;;  %v5993_v16 = vpack.c.bf16 %v267_v15, %v267_v15 }
 0x231   :  { %4911 = vmatpush3.bf16.xpose.msra.mxu1 %v426_v13 }
 0x232   :  { %4907 = vmatmul.mubr.msk.bf16.vlgmr.msra.gmra.mrb[12].mxu0 %vm358_vm2, %v5977_v11  ;;  %5297 = vmatprep.subr.msk.bf16.mxu1 %vm358_vm2, %v5979_v12  ;;  %v429_v14 = vsel %vm358_vm2, %v5979_v12, 0 }
 0x239   :  { %4913 = vmatpush3.bf16.xpose.msra.mxu1 %v429_v14 }
 0x240   :  { %4915 = vmatmul.mubr.msk.bf16.vlgmr.msra.gmra.mrb[12].mxu1 %vm358_vm2, %v5993_v16 }
 0x305   :  { %v4908_v19 = vpop.f32.mrb[12].mxu0 }
 0x306   :  { %v405_v21 = vpop.f32.mrb[13].mxu0  ;;  %v414_v25 = vadd.f32 %v4908_v19, %v6005_v20 }
 0x307   :  { %v406_v22 = vadd.f32 %v405_v21, %v6000_v18  ;;  %v4909_v23 = vpop.f32.mrb[14].mxu0 }
 0x308   :  { %v408_v24 = vpop.f32.mrb[15].mxu0  ;;  %v486_v29 = vsel %vm479_vm3, %v414_v25, -inf }
 0x309   :  { %v409_v26 = vadd.f32 %v408_v24, %v6010_v17  ;;  %v480_v27 = vsel %vm479_vm3, %v406_v22, -inf }
 0x30a   :  { %481 = vmax.xlane.f32.xlu0 %v480_v27 }
 0x30b   :  { %v483_v28 = vsel %vm479_vm3, %v409_v26, -inf }
 0x30c   :  { %484 = vmax.xlane.f32.xlu1 %v483_v28 }
 0x30e   :  { %487 = vmax.xlane.f32.xlu0 %v486_v29 }
 0x313   :  { %v4916_v31 = vpop.f32.mrb[12].mxu1 }
 0x314   :  { %v465_v33 = vpop.f32.mrb[13].mxu1  ;;  %v474_v38 = vadd.f32 %v4916_v31, %v6026_v32 }
 0x315   :  { %v466_v35 = vadd.f32 %v465_v33, %v6021_v30  ;;  %v4917_v36 = vpop.f32.mrb[14].mxu1 }
 0x316   :  { %v468_v37 = vpop.f32.mrb[15].mxu1  ;;  %v495_v43 = vsel %vm479_vm3, %v474_v38, -inf }
 0x317   :  { %v6036_v39 = vadd.f32 %v468_v37, %v6031_v34  ;;  %v489_v40 = vsel %vm479_vm3, %v466_v35, -inf }
 0x318   :  { %490 = vmax.xlane.f32.xlu1 %v489_v40 }
 0x319   :  { %v492_v41 = vsel %vm479_vm3, %v6036_v39, -inf }
 0x31a   :  { %493 = vmax.xlane.f32.xlu0 %v492_v41 }
 0x31c   :  { %496 = vmax.xlane.f32.xlu1 %v495_v43 }
 0x32d   :  { %554 = vrot.lane.b32.xlu1 %v5967_v55, %s5746_s19 }
 0x330   :  { %552 = vrot.lane.b32.xlu0 %v5959_v46, %s5746_s19 }
 0x331   :  { %617 = vrot.lane.b32.xlu1 %v5975_v7, %s5746_s19 }
 0x335   :  { %685 = vrot.lane.b32.xlu1 %v5959_v46, %s5747_s4 }
 0x339   :  { %687 = vrot.lane.b32.xlu1 %v5967_v55, %s5747_s4 }
 0x397   :  { %v482_v44 = vpop.xlane.xlu0 %481 }
 0x398   :  { %v498_v48 = vsub.f32 %v406_v22, %v482_v44 }
 0x399   :  { %v485_v47 = vpop.xlane.xlu1 %484 }
 0x39a   :  { %v499_v49 = vsub.f32 %v409_v26, %v485_v47  ;;  %v504_v53 = vmul.f32 1.442695, %v498_v48 }
 0x39b   :  { %v488_v50 = vpop.xlane.xlu0 %487 }
 0x39c   :  { %v506_v51 = vmul.f32 1.442695, %v499_v49  ;;  %v500_v52 = vsub.f32 %v414_v25, %v488_v50 }
 0x39e   :  { %5480 = vpow2.f32 %v506_v51  ;;  %v508_v54 = vmul.f32 1.442695, %v500_v52 }
 0x3a0   :  { %5482 = vpow2.f32 %v508_v54 }
 0x3a1   :  { %5484 = vpow2.f32 %v504_v53 }
 0x3a5   :  { %v491_v56 = vpop.xlane.xlu1 %490 }
 0x3a6   :  { %v501_v59 = vsub.f32 %v466_v35, %v491_v56 }
 0x3a7   :  { %v494_v57 = vpop.xlane.xlu0 %493 }
 0x3a8   :  { %v6052_v58 = vpop.eup %5480  ;;  %v510_v3 = vmul.f32 1.442695, %v501_v59  ;;  %v502_v22 = vsub.f32 %v6036_v39, %v494_v57 }
 0x3a9   :  { %v497_v60 = vpop.xlane.xlu1 %496  ;;  %v519_v61 = vsel %vm479_vm3, %v6052_v58, 0.0 }
 0x3aa   :  { %v5483_v62 = vpop.eup %5482  ;;  %v503_v63 = vsub.f32 %v474_v38, %v497_v60  ;;  %520 = vadd.xlane.f32.xlu1 %v519_v61  ;;  %v512_v23 = vmul.f32 1.442695, %v502_v22 }
 0x3ab   :  { %v553_v0 = vpop.permute.xlu0 %552  ;;  %v522_v1 = vsel %vm479_vm3, %v5483_v62, 0.0  ;;  %v5485_v2 = vpop.eup %5484 }
 0x3ac   :  { %v514_v4 = vmul.f32 1.442695, %v503_v63  ;;  %523 = vadd.xlane.f32.xlu0 %v522_v1  ;;  %4918 = vmatprep.subr.bf16.mxu0 %v553_v0  ;;  %v516_v8 = vsel %vm479_vm3, %v5485_v2, 0.0 }
 0x3ad   :  { %v555_v5 = vpop.permute.xlu1 %554  ;;  %4919 = vmatpush3.bf16.msra.mxu0 %v553_v0 }
 0x3ae   :  { %5486 = vpow2.f32 %v514_v4  ;;  %5298 = vmatprep.subr.msk.bf16.mxu0 %vm563_vm4, %v555_v5  ;;  %v565_v9 = vsel %vm563_vm4, %v555_v5, 0 }
 0x3af   :  { %5488 = vpow2.f32 %v510_v3 }
 0x3b0   :  { %517 = vadd.xlane.f32.xlu0 %v516_v8  ;;  %5490 = vpow2.f32 %v512_v23 }
 0x3b1   :  { %v618_v10 = vpop.permute.xlu1 %617  ;;  %4921 = vmatpush3.bf16.msra.mxu0 %v565_v9 }
 0x3b2   :  { %4926 = vmatprep.subr.bf16.mxu1 %v618_v10 }
 0x3b3   :  { %4927 = vmatpush3.bf16.msra.mxu1 %v618_v10 }
 0x3b5   :  { %v686_v13 = vpop.permute.xlu1 %685 }
 0x3b6   :  { %5300 = vmatprep.subr.msk.bf16.mxu0 %vm358_vm2, %v686_v13  ;;  %v696_v48 = vsel %vm358_vm2, %v686_v13, 0 }
 0x3b8   :  { %v5487_v14 = vpop.eup %5486 }
 0x3b9   :  { %v531_v15 = vsel %vm479_vm3, %v5487_v14, 0.0  ;;  %v5489_v19 = vpop.eup %5488  ;;  %v688_v26 = vpop.permute.xlu1 %687 }
 0x3ba   :  { %532 = vadd.xlane.f32.xlu1 %v531_v15  ;;  %v525_v21 = vsel %vm479_vm3, %v5489_v19, 0.0  ;;  %v5491_v24 = vpop.eup %5490  ;;  %v699_v50 = vsel %vm358_vm2, %v688_v26, 0 }
 0x3bb   :  { %v528_v25 = vsel %vm479_vm3, %v5491_v24, 0.0 }
 0x3be   :  { %526 = vadd.xlane.f32.xlu1 %v525_v21 }
 0x3c6   :  { %619 = vrot.lane.b32.xlu0 %v5979_v12, %s5746_s19 }
 0x3cf   :  { %681 = vrot.lane.b32.xlu1 %v5957_v45, %s5747_s4 }
 0x3d3   :  { %757 = vrot.lane.b32.xlu1 %v5979_v12, %s5747_s4 }
 0x3d7   :  { %753 = vrot.lane.b32.xlu1 %v5993_v16, %s5747_s4 }
 0x3e5   :  { %529 = vadd.xlane.f32.xlu0 %v528_v25 }
 0x3fb   :  { %755 = vrot.lane.b32.xlu0 %v5975_v7, %s5747_s4 }
 0x3ff   :  { %683 = vrot.lane.b32.xlu0 %v5977_v11, %s5747_s4 }
 0x403   :  { %751 = vrot.lane.b32.xlu0 %v5973_v6, %s5747_s4 }
 0x437   :  { %v521_v27 = vpop.xlane.xlu1 %520 }
 0x439   :  { %v524_v28 = vpop.xlane.xlu0 %523 }
 0x43a   :  { %5492 = vrcp.f32 %v524_v28 }
 0x43b   :  { %5494 = vrcp.f32 %v521_v27 }
 0x43d   :  { %v518_v29 = vpop.xlane.xlu0 %517 }
 0x43e   :  { %5496 = vrcp.f32 %v518_v29 }
 0x441   :  { %v620_v31 = vpop.permute.xlu0 %619 }
 0x442   :  { %5299 = vmatprep.subr.msk.bf16.mxu1 %vm563_vm4, %v620_v31  ;;  %v629_v33 = vsel %vm563_vm4, %v620_v31, 0 }
 0x443   :  { %4929 = vmatpush3.bf16.msra.mxu1 %v629_v33 }
 0x444   :  { %v5493_v35 = vpop.eup %5492 }
 0x445   :  { %v5495_v36 = vpop.eup %5494  ;;  %v542_v39 = vmul.f32 %v5493_v35, %v5483_v62 }
 0x446   :  { %v541_v41 = vmul.f32 %v5495_v36, %v6052_v58 }
 0x447   :  { %v533_v37 = vpop.xlane.xlu1 %532  ;;  %v547_v47 = vpack.c.bf16 %v542_v39, %v542_v39 }
 0x448   :  { %v5497_v38 = vpop.eup %5496  ;;  %5498 = vrcp.f32 %v533_v37 }
 0x449   :  { %v540_v40 = vmul.f32 %v5497_v38, %v5485_v2 }
 0x44b   :  { %v527_v43 = vpop.xlane.xlu1 %526  ;;  %v546_v44 = vpack.c.bf16 %v541_v41, %v540_v40 }
 0x44c   :  { %5500 = vrcp.f32 %v527_v43 }
 0x44d   :  { %4922 = vmatprep.mubr.msk.bf16.mxu0 %vm479_vm3, %v546_v44 }
 0x44e   :  { %4923 = vmatmul.mubr.msk.bf16.vlgmr.msra.gmra.mrb[16].mxu0 %vm479_vm3, %v547_v47 }
 0x44f   :  { %4935 = vmatpush3.bf16.xpose.msra.mxu0 %v696_v48  ;;  %v682_v49 = vpop.permute.xlu1 %681 }
 0x450   :  { %5301 = vmatprep.subr.msk.bf16.mxu0 %vm358_vm2, %v688_v26  ;;  %4938 = vmatprep.mubr.msk.bf16.mxu0 %vm358_vm2, %v682_v49 }
 0x452   :  { %v5499_v53 = vpop.eup %5498 }
 0x453   :  { %v545_v58 = vmul.f32 %v5499_v53, %v5487_v14  ;;  %v758_v1 = vpop.permute.xlu1 %757 }
 0x454   :  { %v769_v2 = vsel %vm358_vm2, %v758_v1, 0 }
 0x455   :  { %v549_v62 = vpack.c.bf16 %v545_v58, %v545_v58 }
 0x456   :  { %v5501_v56 = vpop.eup %5500 }
 0x457   :  { %4937 = vmatpush3.bf16.xpose.msra.mxu0 %v699_v50  ;;  %v543_v59 = vmul.f32 %v5501_v56, %v5489_v19  ;;  %v754_v3 = vpop.permute.xlu1 %753 }
 0x472   :  { %v530_v51 = vpop.xlane.xlu0 %529 }
 0x473   :  { %5502 = vrcp.f32 %v530_v51 }
 0x476   :  { %v756_v52 = vpop.permute.xlu0 %755 }
 0x477   :  { %5302 = vmatprep.subr.msk.bf16.mxu1 %vm358_vm2, %v756_v52  ;;  %v766_v0 = vsel %vm358_vm2, %v756_v52, 0 }
 0x47a   :  { %v684_v54 = vpop.permute.xlu0 %683 }
 0x47b   :  { %4939 = vmatmul.mubr.msk.bf16.vlgmr.msra.gmra.mrb[20].mxu0 %vm358_vm2, %v684_v54 }
 0x47d   :  { %v5503_v57 = vpop.eup %5502 }
 0x47e   :  { %v544_v60 = vmul.f32 %v5503_v57, %v5491_v24  ;;  %v752_v63 = vpop.permute.xlu0 %751 }
 0x480   :  { %v548_v61 = vpack.c.bf16 %v544_v60, %v543_v59 }
 0x482   :  { %4930 = vmatprep.mubr.msk.bf16.mxu1 %vm479_vm3, %v548_v61 }
 0x483   :  { %4931 = vmatmul.mubr.msk.bf16.vlgmr.msra.gmra.mrb[16].mxu1 %vm479_vm3, %v549_v62 }
 0x484   :  { %4943 = vmatpush3.bf16.xpose.msra.mxu1 %v766_v0  ;;  %4946 = vmatprep.mubr.msk.bf16.mxu1 %vm358_vm2, %v752_v63 }
 0x485   :  { %5303 = vmatprep.subr.msk.bf16.mxu1 %vm358_vm2, %v758_v1 }
 0x48c   :  { %4945 = vmatpush3.bf16.xpose.msra.mxu1 %v769_v2 }
 0x493   :  { %4947 = vmatmul.mubr.msk.bf16.vlgmr.msra.gmra.mrb[20].mxu1 %vm358_vm2, %v754_v3 }
 0x521   :  { %v6097_v4 = vpop.f32.mrb[16].mxu0 }
 0x522   :  { %v6099_v5 = vpop.f32.mrb[17].mxu0 }
 0x523   :  { %v4925_v8 = vpop.f32.mrb[18].mxu0 }
 0x524   :  { %v6101_v9 = vpop.f32.mrb[19].mxu0 }
 0x54e   :  { %v4940_v10 = vpop.f32.mrb[20].mxu0 }
 0x54f   :  { %v735_v13 = vpop.f32.mrb[21].mxu0  ;;  %v744_v21 = vadd.f32 %v4940_v10, %v6005_v20 }
 0x550   :  { %v736_v14 = vadd.f32 %v735_v13, %v6000_v18  ;;  %v4941_v15 = vpop.f32.mrb[22].mxu0 }
 0x551   :  { %v738_v19 = vpop.f32.mrb[23].mxu0  ;;  %v825_v26 = vsel %vm479_vm3, %v744_v21, -inf }
 0x552   :  { %v739_v22 = vadd.f32 %v738_v19, %v6010_v17  ;;  %v819_v23 = vsel %vm479_vm3, %v736_v14, -inf }
 0x553   :  { %820 = vmax.xlane.f32.xlu0 %v819_v23 }
 0x554   :  { %v822_v24 = vsel %vm479_vm3, %v739_v22, -inf }
 0x555   :  { %823 = vmax.xlane.f32.xlu1 %v822_v24 }
 0x556   :  { %v6108_v25 = vpop.f32.mrb[16].mxu1 }
 0x557   :  { %v6111_v27 = vpop.f32.mrb[17].mxu1  ;;  %826 = vmax.xlane.f32.xlu0 %v825_v26 }
 0x558   :  { %v4933_v28 = vpop.f32.mrb[18].mxu1 }
 0x559   :  { %v6113_v29 = vpop.f32.mrb[19].mxu1 }
 0x566   :  { %v4948_v31 = vpop.f32.mrb[20].mxu1 }
 0x567   :  { %v814_v33 = vadd.f32 %v4948_v31, %v6026_v32  ;;  %v805_v35 = vpop.f32.mrb[21].mxu1 }
 0x568   :  { %v806_v36 = vadd.f32 %v805_v35, %v6021_v30  ;;  %v4949_v37 = vpop.f32.mrb[22].mxu1 }
 0x569   :  { %v808_v38 = vpop.f32.mrb[23].mxu1  ;;  %v834_v39 = vsel %vm479_vm3, %v814_v33, -inf }
 0x56a   :  { %v6119_v40 = vadd.f32 %v808_v38, %v6031_v34  ;;  %835 = vmax.xlane.f32.xlu1 %v834_v39  ;;  %v828_v41 = vsel %vm479_vm3, %v806_v36, -inf }
 0x56b   :  { %829 = vmax.xlane.f32.xlu0 %v828_v41 }
 0x56c   :  { %v831_v43 = vsel %vm479_vm3, %v6119_v40, -inf }
 0x56f   :  { %832 = vmax.xlane.f32.xlu0 %v831_v43 }
 0x57b   :  { %891 = vrot.lane.b32.xlu1 %v5967_v55, %s5748_s20 }
 0x57f   :  { %951 = vrot.lane.b32.xlu1 %v5975_v7, %s5748_s20 }
 0x583   :  { %1017 = vrot.lane.b32.xlu1 %v5959_v46, %s5749_s21 }
 0x585   :  { %889 = vrot.lane.b32.xlu0 %v5959_v46, %s5748_s20 }
 0x587   :  { %1019 = vrot.lane.b32.xlu1 %v5967_v55, %s5749_s21 }
 0x5e0   :  { %v821_v44 = vpop.xlane.xlu0 %820 }
 0x5e1   :  { %v837_v48 = vsub.f32 %v736_v14, %v821_v44 }
 0x5e2   :  { %v824_v47 = vpop.xlane.xlu1 %823 }
 0x5e3   :  { %v838_v49 = vsub.f32 %v739_v22, %v824_v47  ;;  %v843_v53 = vmul.f32 1.442695, %v837_v48 }
 0x5e4   :  { %v827_v50 = vpop.xlane.xlu0 %826 }
 0x5e5   :  { %v845_v51 = vmul.f32 1.442695, %v838_v49  ;;  %v839_v52 = vsub.f32 %v744_v21, %v827_v50 }
 0x5e7   :  { %5504 = vpow2.f32 %v845_v51  ;;  %v847_v54 = vmul.f32 1.442695, %v839_v52 }
 0x5e9   :  { %5506 = vpow2.f32 %v847_v54 }
 0x5ea   :  { %5508 = vpow2.f32 %v843_v53 }
 0x5f1   :  { %v6134_v56 = vpop.eup %5504 }
 0x5f2   :  { %v858_v57 = vsel %vm479_vm3, %v6134_v56, 0.0 }
 0x5f3   :  { %v5507_v58 = vpop.eup %5506  ;;  %859 = vadd.xlane.f32.xlu1 %v858_v57 }
 0x5f4   :  { %v861_v59 = vsel %vm479_vm3, %v5507_v58, 0.0  ;;  %v5509_v60 = vpop.eup %5508 }
 0x5f5   :  { %862 = vadd.xlane.f32.xlu0 %v861_v59  ;;  %v855_v0 = vsel %vm479_vm3, %v5509_v60, 0.0 }
 0x5f7   :  { %v836_v61 = vpop.xlane.xlu1 %835 }
 0x5f8   :  { %v842_v62 = vsub.f32 %v814_v33, %v836_v61  ;;  %v830_v63 = vpop.xlane.xlu0 %829 }
 0x5f9   :  { %v840_v1 = vsub.f32 %v806_v36, %v830_v63  ;;  %856 = vadd.xlane.f32.xlu0 %v855_v0 }
 0x5fa   :  { %v853_v2 = vmul.f32 1.442695, %v842_v62 }
 0x5fb   :  { %v849_v3 = vmul.f32 1.442695, %v840_v1  ;;  %v892_v8 = vpop.permute.xlu1 %891 }
 0x5fc   :  { %5510 = vpow2.f32 %v853_v2  ;;  %v833_v10 = vpop.xlane.xlu0 %832  ;;  %v901_v15 = vsel %vm563_vm4, %v892_v8, 0 }
 0x5fd   :  { %5512 = vpow2.f32 %v849_v3  ;;  %v841_v26 = vsub.f32 %v6119_v40, %v833_v10 }
 0x5ff   :  { %v952_v13 = vpop.permute.xlu1 %951  ;;  %v851_v28 = vmul.f32 1.442695, %v841_v26 }
 0x600   :  { %4958 = vmatprep.subr.bf16.mxu1 %v952_v13  ;;  %v890_v14 = vpop.permute.xlu0 %889 }
 0x601   :  { %4950 = vmatprep.subr.bf16.mxu0 %v890_v14  ;;  %4959 = vmatpush3.bf16.msra.mxu1 %v952_v13  ;;  %5514 = vpow2.f32 %v851_v28 }
 0x602   :  { %4951 = vmatpush3.bf16.msra.mxu0 %v890_v14 }
 0x603   :  { %5304 = vmatprep.subr.msk.bf16.mxu0 %vm563_vm4, %v892_v8  ;;  %v1018_v21 = vpop.permute.xlu1 %1017 }
 0x604   :  { %v1028_v53 = vsel %vm358_vm2, %v1018_v21, 0 }
 0x606   :  { %v6142_v19 = vpop.eup %5510  ;;  %4953 = vmatpush3.bf16.msra.mxu0 %v901_v15 }
 0x607   :  { %5306 = vmatprep.subr.msk.bf16.mxu0 %vm358_vm2, %v1018_v21  ;;  %v870_v22 = vsel %vm479_vm3, %v6142_v19, 0.0  ;;  %v5513_v23 = vpop.eup %5512  ;;  %v1020_v35 = vpop.permute.xlu1 %1019 }
 0x608   :  { %871 = vadd.xlane.f32.xlu1 %v870_v22  ;;  %v864_v24 = vsel %vm479_vm3, %v5513_v23, 0.0 }
 0x60b   :  { %v5515_v31 = vpop.eup %5514 }
 0x60c   :  { %865 = vadd.xlane.f32.xlu1 %v864_v24  ;;  %v867_v33 = vsel %vm479_vm3, %v5515_v31, 0.0 }
 0x60f   :  { %953 = vrot.lane.b32.xlu0 %v5979_v12, %s5748_s20 }
 0x61d   :  { %1013 = vrot.lane.b32.xlu1 %v5957_v45, %s5749_s21 }
 0x621   :  { %1087 = vrot.lane.b32.xlu1 %v5979_v12, %s5749_s21 }
 0x625   :  { %1083 = vrot.lane.b32.xlu1 %v5993_v16, %s5749_s21 }
 0x62e   :  { %868 = vadd.xlane.f32.xlu0 %v867_v33 }
 0x644   :  { %1085 = vrot.lane.b32.xlu0 %v5975_v7, %s5749_s21 }
 0x648   :  { %1015 = vrot.lane.b32.xlu0 %v5977_v11, %s5749_s21 }
 0x64c   :  { %1081 = vrot.lane.b32.xlu0 %v5973_v6, %s5749_s21 }
 0x680   :  { %v860_v36 = vpop.xlane.xlu1 %859 }
 0x682   :  { %v863_v37 = vpop.xlane.xlu0 %862 }
 0x683   :  { %5516 = vrcp.f32 %v863_v37 }
 0x684   :  { %5518 = vrcp.f32 %v860_v36 }
 0x686   :  { %v857_v38 = vpop.xlane.xlu0 %856 }
 0x687   :  { %5520 = vrcp.f32 %v857_v38 }
 0x68a   :  { %v954_v39 = vpop.permute.xlu0 %953 }
 0x68b   :  { %5305 = vmatprep.subr.msk.bf16.mxu1 %vm563_vm4, %v954_v39  ;;  %v963_v40 = vsel %vm563_vm4, %v954_v39, 0 }
 0x68c   :  { %4961 = vmatpush3.bf16.msra.mxu1 %v963_v40 }
 0x68d   :  { %v5517_v41 = vpop.eup %5516 }
 0x68e   :  { %v5519_v43 = vpop.eup %5518  ;;  %v881_v47 = vmul.f32 %v5517_v41, %v5507_v58  ;;  %v1031_v58 = vsel %vm358_vm2, %v1020_v35, 0 }
 0x68f   :  { %v880_v49 = vmul.f32 %v5519_v43, %v6134_v56 }
 0x690   :  { %v886_v52 = vpack.c.bf16 %v881_v47, %v881_v47 }
 0x691   :  { %v5521_v44 = vpop.eup %5520 }
 0x692   :  { %v879_v48 = vmul.f32 %v5521_v44, %v5509_v60 }
 0x694   :  { %v885_v50 = vpack.c.bf16 %v880_v49, %v879_v48 }
 0x695   :  { %v872_v51 = vpop.xlane.xlu1 %871 }
 0x696   :  { %4954 = vmatprep.mubr.msk.bf16.mxu0 %vm479_vm3, %v885_v50  ;;  %5522 = vrcp.f32 %v872_v51 }
 0x697   :  { %4955 = vmatmul.mubr.msk.bf16.vlgmr.msra.gmra.mrb[24].mxu0 %vm479_vm3, %v886_v52 }
 0x698   :  { %4967 = vmatpush3.bf16.xpose.msra.mxu0 %v1028_v53 }
 0x699   :  { %v866_v54 = vpop.xlane.xlu1 %865  ;;  %5307 = vmatprep.subr.msk.bf16.mxu0 %vm358_vm2, %v1020_v35 }
 0x69a   :  { %5524 = vrcp.f32 %v866_v54 }
 0x69d   :  { %v1014_v57 = vpop.permute.xlu1 %1013 }
 0x69e   :  { %4970 = vmatprep.mubr.msk.bf16.mxu0 %vm358_vm2, %v1014_v57 }
 0x6a0   :  { %4969 = vmatpush3.bf16.xpose.msra.mxu0 %v1031_v58  ;;  %v5523_v60 = vpop.eup %5522 }
 0x6a1   :  { %v884_v0 = vmul.f32 %v5523_v60, %v6142_v19  ;;  %v1088_v14 = vpop.permute.xlu1 %1087 }
 0x6a2   :  { %v1099_v15 = vsel %vm358_vm2, %v1088_v14, 0 }
 0x6a3   :  { %v888_v8 = vpack.c.bf16 %v884_v0, %v884_v0 }
 0x6a4   :  { %v5525_v62 = vpop.eup %5524 }
 0x6a5   :  { %v882_v1 = vmul.f32 %v5525_v62, %v5513_v23  ;;  %v1084_v19 = vpop.permute.xlu1 %1083 }
 0x6bb   :  { %v869_v56 = vpop.xlane.xlu0 %868 }
 0x6bc   :  { %5526 = vrcp.f32 %v869_v56 }
 0x6bf   :  { %v1086_v59 = vpop.permute.xlu0 %1085 }
 0x6c0   :  { %5308 = vmatprep.subr.msk.bf16.mxu1 %vm358_vm2, %v1086_v59  ;;  %v1096_v13 = vsel %vm358_vm2, %v1086_v59, 0 }
 0x6c3   :  { %v1016_v61 = vpop.permute.xlu0 %1015 }
 0x6c4   :  { %4971 = vmatmul.mubr.msk.bf16.vlgmr.msra.gmra.mrb[28].mxu0 %vm358_vm2, %v1016_v61 }
 0x6c6   :  { %v5527_v63 = vpop.eup %5526 }
 0x6c7   :  { %v883_v2 = vmul.f32 %v5527_v63, %v5515_v31  ;;  %v1082_v10 = vpop.permute.xlu0 %1081 }
 0x6c9   :  { %v887_v3 = vpack.c.bf16 %v883_v2, %v882_v1 }
 0x6cb   :  { %4962 = vmatprep.mubr.msk.bf16.mxu1 %vm479_vm3, %v887_v3 }
 0x6cc   :  { %4963 = vmatmul.mubr.msk.bf16.vlgmr.msra.gmra.mrb[24].mxu1 %vm479_vm3, %v888_v8 }
 0x6cd   :  { %4975 = vmatpush3.bf16.xpose.msra.mxu1 %v1096_v13  ;;  %4978 = vmatprep.mubr.msk.bf16.mxu1 %vm358_vm2, %v1082_v10 }
 0x6ce   :  { %5309 = vmatprep.subr.msk.bf16.mxu1 %vm358_vm2, %v1088_v14 }
 0x6d5   :  { %4977 = vmatpush3.bf16.xpose.msra.mxu1 %v1099_v15 }
 0x6dc   :  { %4979 = vmatmul.mubr.msk.bf16.vlgmr.msra.gmra.mrb[28].mxu1 %vm358_vm2, %v1084_v19 }
 0x76a   :  { %v6183_v21 = vpop.f32.mrb[24].mxu0 }
 0x76b   :  { %v6185_v22 = vpop.f32.mrb[25].mxu0 }
 0x76c   :  { %v4957_v23 = vpop.f32.mrb[26].mxu0 }
 0x76d   :  { %v6187_v24 = vpop.f32.mrb[27].mxu0 }
 0x76e   :  { %v5354_v26 = vpack.i.bf16 %v6187_v24, %v6185_v22 }
 0x797   :  { %v4972_v28 = vpop.f32.mrb[28].mxu0 }
 0x798   :  { %v1067_v31 = vpop.f32.mrb[29].mxu0  ;;  %v1076_v37 = vadd.f32 %v4972_v28, %v6005_v20 }
 0x799   :  { %v1068_v33 = vadd.f32 %v1067_v31, %v6000_v18  ;;  %v4973_v35 = vpop.f32.mrb[30].mxu0 }
 0x79a   :  { %v1070_v36 = vpop.f32.mrb[31].mxu0  ;;  %v1155_v43 = vsel %vm479_vm3, %v1076_v37, -inf }
 0x79b   :  { %v1071_v38 = vadd.f32 %v1070_v36, %v6010_v17  ;;  %v1149_v39 = vsel %vm479_vm3, %v1068_v33, -inf }
 0x79c   :  { %1150 = vmax.xlane.f32.xlu0 %v1149_v39 }
 0x79d   :  { %v1152_v40 = vsel %vm479_vm3, %v1071_v38, -inf }
 0x79e   :  { %1153 = vmax.xlane.f32.xlu1 %v1152_v40 }
 0x79f   :  { %v6196_v41 = vpop.f32.mrb[24].mxu1 }
 0x7a0   :  { %v6199_v44 = vpop.f32.mrb[25].mxu1  ;;  %1156 = vmax.xlane.f32.xlu0 %v1155_v43 }
 0x7a1   :  { %v5369_v47 = vpack.i.bf16 %v6199_v44, %v6183_v21  ;;  %v4965_v48 = vpop.f32.mrb[26].mxu1 }
 0x7a2   :  { %v6203_v49 = vpop.f32.mrb[27].mxu1 }
 0x7a3   :  { %v5384_v50 = vpack.i.bf16 %v6196_v41, %v6203_v49 }
 0x7af   :  { %v4980_v51 = vpop.f32.mrb[28].mxu1 }
 0x7b0   :  { %v1144_v52 = vadd.f32 %v4980_v51, %v6026_v32  ;;  %v1135_v53 = vpop.f32.mrb[29].mxu1 }
 0x7b1   :  { %v1136_v54 = vadd.f32 %v1135_v53, %v6021_v30  ;;  %v4981_v57 = vpop.f32.mrb[30].mxu1 }
 0x7b2   :  { %v1138_v58 = vpop.f32.mrb[31].mxu1  ;;  %v1164_v56 = vsel %vm479_vm3, %v1144_v52, -inf }
 0x7b3   :  { %v6211_v59 = vadd.f32 %v1138_v58, %v6031_v34  ;;  %1165 = vmax.xlane.f32.xlu1 %v1164_v56  ;;  %v1158_v60 = vsel %vm479_vm3, %v1136_v54, -inf }
 0x7b4   :  { %1159 = vmax.xlane.f32.xlu0 %v1158_v60 }
 0x7b5   :  { %v1161_v61 = vsel %vm479_vm3, %v6211_v59, -inf }
 0x7b8   :  { %1162 = vmax.xlane.f32.xlu0 %v1161_v61 }
 0x7c4   :  { %1221 = vrot.lane.b32.xlu1 %v5967_v55, %s5750_s22 }
 0x7c8   :  { %1281 = vrot.lane.b32.xlu1 %v5975_v7, %s5750_s22 }
 0x7cc   :  { %1347 = vrot.lane.b32.xlu1 %v5959_v46, %s7310_s6 }
 0x7ce   :  { %1219 = vrot.lane.b32.xlu0 %v5959_v46, %s5750_s22 }
 0x7d0   :  { %1349 = vrot.lane.b32.xlu1 %v5967_v55, %s7310_s6 }
 0x829   :  { %v1151_v62 = vpop.xlane.xlu0 %1150 }
 0x82a   :  { %v1167_v0 = vsub.f32 %v1068_v33, %v1151_v62 }
 0x82b   :  { %v1154_v63 = vpop.xlane.xlu1 %1153 }
 0x82c   :  { %v1168_v1 = vsub.f32 %v1071_v38, %v1154_v63  ;;  %v1173_v10 = vmul.f32 1.442695, %v1167_v0 }
 0x82d   :  { %v1157_v2 = vpop.xlane.xlu0 %1156 }
 0x82e   :  { %v1175_v3 = vmul.f32 1.442695, %v1168_v1  ;;  %v1169_v8 = vsub.f32 %v1076_v37, %v1157_v2 }
 0x830   :  { %5528 = vpow2.f32 %v1175_v3  ;;  %v1177_v13 = vmul.f32 1.442695, %v1169_v8 }
 0x832   :  { %5530 = vpow2.f32 %v1177_v13 }
 0x833   :  { %5532 = vpow2.f32 %v1173_v10 }
 0x83a   :  { %v6226_v14 = vpop.eup %5528 }
 0x83b   :  { %v1188_v15 = vsel %vm479_vm3, %v6226_v14, 0.0 }
 0x83c   :  { %v5531_v19 = vpop.eup %5530  ;;  %1189 = vadd.xlane.f32.xlu1 %v1188_v15 }
 0x83d   :  { %v1191_v23 = vsel %vm479_vm3, %v5531_v19, 0.0  ;;  %v5533_v28 = vpop.eup %5532 }
 0x83e   :  { %1192 = vadd.xlane.f32.xlu0 %v1191_v23  ;;  %v1185_v36 = vsel %vm479_vm3, %v5533_v28, 0.0 }
 0x840   :  { %v1166_v31 = vpop.xlane.xlu1 %1165 }
 0x841   :  { %v1172_v33 = vsub.f32 %v1144_v52, %v1166_v31  ;;  %v1160_v35 = vpop.xlane.xlu0 %1159 }
 0x842   :  { %v1170_v37 = vsub.f32 %v1136_v54, %v1160_v35  ;;  %1186 = vadd.xlane.f32.xlu0 %v1185_v36 }
 0x843   :  { %v1183_v38 = vmul.f32 1.442695, %v1172_v33 }
 0x844   :  { %v1179_v39 = vmul.f32 1.442695, %v1170_v37  ;;  %v1222_v40 = vpop.permute.xlu1 %1221 }
 0x845   :  { %5534 = vpow2.f32 %v1183_v38  ;;  %v1163_v43 = vpop.xlane.xlu0 %1162  ;;  %v1231_v52 = vsel %vm563_vm4, %v1222_v40, 0 }
 0x846   :  { %5536 = vpow2.f32 %v1179_v39  ;;  %v1171_v60 = vsub.f32 %v6211_v59, %v1163_v43 }
 0x848   :  { %v1282_v48 = vpop.permute.xlu1 %1281  ;;  %v1181_v61 = vmul.f32 1.442695, %v1171_v60 }
 0x849   :  { %4990 = vmatprep.subr.bf16.mxu1 %v1282_v48  ;;  %v1220_v51 = vpop.permute.xlu0 %1219 }
 0x84a   :  { %4982 = vmatprep.subr.bf16.mxu0 %v1220_v51  ;;  %4991 = vmatpush3.bf16.msra.mxu1 %v1282_v48  ;;  %5538 = vpow2.f32 %v1181_v61 }
 0x84b   :  { %4983 = vmatpush3.bf16.msra.mxu0 %v1220_v51 }
 0x84c   :  { %5310 = vmatprep.subr.msk.bf16.mxu0 %vm563_vm4, %v1222_v40  ;;  %v1348_v54 = vpop.permute.xlu1 %1347 }
 0x84d   :  { %v1358_v33 = vsel %vm358_vm2, %v1348_v54, 0 }
 0x84f   :  { %v6234_v53 = vpop.eup %5534  ;;  %4985 = vmatpush3.bf16.msra.mxu0 %v1231_v52 }
 0x850   :  { %5312 = vmatprep.subr.msk.bf16.mxu0 %vm358_vm2, %v1348_v54  ;;  %v1200_v57 = vsel %vm479_vm3, %v6234_v53, 0.0  ;;  %v5537_v58 = vpop.eup %5536 }
 0x851   :  { %1201 = vadd.xlane.f32.xlu1 %v1200_v57  ;;  %v1194_v56 = vsel %vm479_vm3, %v5537_v58, 0.0 }
 0x854   :  { %v5539_v62 = vpop.eup %5538 }
 0x855   :  { %1195 = vadd.xlane.f32.xlu1 %v1194_v56  ;;  %v1197_v63 = vsel %vm479_vm3, %v5539_v62, 0.0 }
 0x858   :  { %1283 = vrot.lane.b32.xlu0 %v5979_v12, %s5750_s22 }
 0x866   :  { %1343 = vrot.lane.b32.xlu1 %v5957_v45, %s7310_s6  ;;  %v1350_v45 = vpop.permute.xlu1 %1349 }
 0x86a   :  { %1417 = vrot.lane.b32.xlu1 %v5979_v12, %s7310_s6 }
 0x86e   :  { %1413 = vrot.lane.b32.xlu1 %v5993_v16, %s7310_s6 }
 0x877   :  { %1198 = vadd.xlane.f32.xlu0 %v1197_v63 }
 0x88d   :  { %1415 = vrot.lane.b32.xlu0 %v5975_v7, %s7310_s6 }
 0x891   :  { %1345 = vrot.lane.b32.xlu0 %v5977_v11, %s7310_s6 }
 0x895   :  { %1411 = vrot.lane.b32.xlu0 %v5973_v6, %s7310_s6 }
 0x8c9   :  { %v1190_v59 = vpop.xlane.xlu1 %1189 }
 0x8cb   :  { %v1193_v0 = vpop.xlane.xlu0 %1192 }
 0x8cc   :  { %5540 = vrcp.f32 %v1193_v0 }
 0x8cd   :  { %5542 = vrcp.f32 %v1190_v59 }
 0x8cf   :  { %v1187_v1 = vpop.xlane.xlu0 %1186 }
 0x8d0   :  { %5544 = vrcp.f32 %v1187_v1 }
 0x8d3   :  { %v1284_v16 = vpop.permute.xlu0 %1283 }
 0x8d4   :  { %5311 = vmatprep.subr.msk.bf16.mxu1 %vm563_vm4, %v1284_v16  ;;  %v1293_v2 = vsel %vm563_vm4, %v1284_v16, 0 }
 0x8d5   :  { %4993 = vmatpush3.bf16.msra.mxu1 %v1293_v2 }
 0x8d6   :  { %v5541_v3 = vpop.eup %5540 }
 0x8d7   :  { %v5543_v8 = vpop.eup %5542  ;;  %v1211_v11 = vmul.f32 %v5541_v3, %v5531_v19  ;;  %v1361_v19 = vsel %vm358_vm2, %v1350_v45, 0 }
 0x8d8   :  { %v1210_v6 = vmul.f32 %v5543_v8, %v6226_v14 }
 0x8d9   :  { %v1216_v31 = vpack.c.bf16 %v1211_v11, %v1211_v11 }
 0x8da   :  { %v5545_v10 = vpop.eup %5544 }
 0x8db   :  { %v1209_v13 = vmul.f32 %v5545_v10, %v5533_v28 }
 0x8dd   :  { %v1215_v15 = vpack.c.bf16 %v1210_v6, %v1209_v13 }
 0x8de   :  { %v1202_v23 = vpop.xlane.xlu1 %1201 }
 0x8df   :  { %4986 = vmatprep.mubr.msk.bf16.mxu0 %vm479_vm3, %v1215_v15  ;;  %5546 = vrcp.f32 %v1202_v23 }
 0x8e0   :  { %4987 = vmatmul.mubr.msk.bf16.vlgmr.msra.gmra.mrb[32].mxu0 %vm479_vm3, %v1216_v31 }
 0x8e1   :  { %4999 = vmatpush3.bf16.xpose.msra.mxu0 %v1358_v33 }
 0x8e2   :  { %v1196_v35 = vpop.xlane.xlu1 %1195  ;;  %5313 = vmatprep.subr.msk.bf16.mxu0 %vm358_vm2, %v1350_v45 }
 0x8e3   :  { %5548 = vrcp.f32 %v1196_v35 }
 0x8e6   :  { %v1344_v36 = vpop.permute.xlu1 %1343 }
 0x8e7   :  { %5002 = vmatprep.mubr.msk.bf16.mxu0 %vm358_vm2, %v1344_v36 }
 0x8e9   :  { %5001 = vmatpush3.bf16.xpose.msra.mxu0 %v1361_v19  ;;  %v5547_v37 = vpop.eup %5546 }
 0x8ea   :  { %v1214_v43 = vmul.f32 %v5547_v37, %v6234_v53  ;;  %v1418_v60 = vpop.permute.xlu1 %1417 }
 0x8eb   :  { %v1429_v61 = vsel %vm358_vm2, %v1418_v60, 0 }
 0x8ec   :  { %v1218_v54 = vpack.c.bf16 %v1214_v43, %v1214_v43 }
 0x8ed   :  { %v5549_v39 = vpop.eup %5548 }
 0x8ee   :  { %v1212_v48 = vmul.f32 %v5549_v39, %v5537_v58  ;;  %v1414_v53 = vpop.permute.xlu1 %1413 }
 0x904   :  { %v1199_v14 = vpop.xlane.xlu0 %1198 }
 0x905   :  { %5550 = vrcp.f32 %v1199_v14 }
 0x908   :  { %v1416_v28 = vpop.permute.xlu0 %1415 }
 0x909   :  { %5314 = vmatprep.subr.msk.bf16.mxu1 %vm358_vm2, %v1416_v28  ;;  %v1426_v56 = vsel %vm358_vm2, %v1416_v28, 0 }
 0x90c   :  { %v1346_v38 = vpop.permute.xlu0 %1345 }
 0x90d   :  { %5003 = vmatmul.mubr.msk.bf16.vlgmr.msra.gmra.mrb[36].mxu0 %vm358_vm2, %v1346_v38 }
 0x90f   :  { %v5551_v40 = vpop.eup %5550 }
 0x910   :  { %v1213_v51 = vmul.f32 %v5551_v40, %v5539_v62  ;;  %v1412_v57 = vpop.permute.xlu0 %1411 }
 0x912   :  { %v1217_v52 = vpack.c.bf16 %v1213_v51, %v1212_v48 }
 0x914   :  { %4994 = vmatprep.mubr.msk.bf16.mxu1 %vm479_vm3, %v1217_v52 }
 0x915   :  { %4995 = vmatmul.mubr.msk.bf16.vlgmr.msra.gmra.mrb[32].mxu1 %vm479_vm3, %v1218_v54 }
 0x916   :  { %5007 = vmatpush3.bf16.xpose.msra.mxu1 %v1426_v56  ;;  %5010 = vmatprep.mubr.msk.bf16.mxu1 %vm358_vm2, %v1412_v57 }
 0x917   :  { %5315 = vmatprep.subr.msk.bf16.mxu1 %vm358_vm2, %v1418_v60 }
 0x91e   :  { %5009 = vmatpush3.bf16.xpose.msra.mxu1 %v1429_v61 }
 0x925   :  { %5011 = vmatmul.mubr.msk.bf16.vlgmr.msra.gmra.mrb[36].mxu1 %vm358_vm2, %v1414_v53 }
 0x9b3   :  { %v6275_v58 = vpop.f32.mrb[32].mxu0 }
 0x9b4   :  { %v6277_v62 = vpop.f32.mrb[33].mxu0 }
 0x9b5   :  { %v4989_v63 = vpop.f32.mrb[34].mxu0 }
 0x9b6   :  { %v6279_v45 = vpop.f32.mrb[35].mxu0 }
 0x9b7   :  { %v5359_v59 = vpack.i.bf16 %v6279_v45, %v6277_v62 }
 0x9e0   :  { %v5004_v0 = vpop.f32.mrb[36].mxu0 }
 0x9e1   :  { %v1397_v1 = vpop.f32.mrb[37].mxu0  ;;  %v1406_v8 = vadd.f32 %v5004_v0, %v6005_v20 }
 0x9e2   :  { %v1398_v16 = vadd.f32 %v1397_v1, %v6000_v18  ;;  %v5005_v2 = vpop.f32.mrb[38].mxu0 }
 0x9e3   :  { %v1400_v3 = vpop.f32.mrb[39].mxu0  ;;  %v1485_v15 = vsel %vm479_vm3, %v1406_v8, -inf }
 0x9e4   :  { %v1401_v10 = vadd.f32 %v1400_v3, %v6010_v17  ;;  %v1479_v11 = vsel %vm479_vm3, %v1398_v16, -inf }
 0x9e5   :  { %1480 = vmax.xlane.f32.xlu0 %v1479_v11 }
 0x9e6   :  { %v1482_v13 = vsel %vm479_vm3, %v1401_v10, -inf }
 0x9e7   :  { %1483 = vmax.xlane.f32.xlu1 %v1482_v13 }
 0x9e8   :  { %v6288_v6 = vpop.f32.mrb[32].mxu1 }
 0x9e9   :  { %v6291_v23 = vpop.f32.mrb[33].mxu1  ;;  %1486 = vmax.xlane.f32.xlu0 %v1485_v15 }
 0x9ea   :  { %v5374_v18 = vpack.i.bf16 %v6291_v23, %v6275_v58  ;;  %v4997_v31 = vpop.f32.mrb[34].mxu1 }
 0x9eb   :  { %v6295_v20 = vpop.f32.mrb[35].mxu1 }
 0x9ec   :  { %v5389_v17 = vpack.i.bf16 %v6288_v6, %v6295_v20 }
 0x9f8   :  { %v5012_v33 = vpop.f32.mrb[36].mxu1 }
 0x9f9   :  { %v1474_v35 = vadd.f32 %v5012_v33, %v6026_v32  ;;  %v1465_v36 = vpop.f32.mrb[37].mxu1 }
 0x9fa   :  { %v1466_v19 = vadd.f32 %v1465_v36, %v6021_v30  ;;  %v5013_v14 = vpop.f32.mrb[38].mxu1 }
 0x9fb   :  { %v1468_v28 = vpop.f32.mrb[39].mxu1  ;;  %v1494_v37 = vsel %vm479_vm3, %v1474_v35, -inf }
 0x9fc   :  { %v1469_v38 = vadd.f32 %v1468_v28, %v6031_v34  ;;  %1495 = vmax.xlane.f32.xlu1 %v1494_v37  ;;  %v1488_v39 = vsel %vm479_vm3, %v1466_v19, -inf }
 0x9fd   :  { %1489 = vmax.xlane.f32.xlu0 %v1488_v39 }
 0x9fe   :  { %v1491_v40 = vsel %vm479_vm3, %v1469_v38, -inf }
 0xa01   :  { %1492 = vmax.xlane.f32.xlu0 %v1491_v40 }
 0xa72   :  { %v1481_v43 = vpop.xlane.xlu0 %1480 }
 0xa73   :  { %v1497_v51 = vsub.f32 %v1398_v16, %v1481_v43 }
 0xa74   :  { %v1484_v48 = vpop.xlane.xlu1 %1483 }
 0xa75   :  { %v1498_v32 = vsub.f32 %v1401_v10, %v1484_v48  ;;  %v1503_v57 = vmul.f32 1.442695, %v1497_v51 }
 0xa76   :  { %v1487_v52 = vpop.xlane.xlu0 %1486 }
 0xa77   :  { %v1505_v54 = vmul.f32 1.442695, %v1498_v32  ;;  %v1499_v30 = vsub.f32 %v1406_v8, %v1487_v52 }
 0xa79   :  { %5552 = vpow2.f32 %v1505_v54  ;;  %v1507_v56 = vmul.f32 1.442695, %v1499_v30 }
 0xa7b   :  { %5554 = vpow2.f32 %v1507_v56 }
 0xa7c   :  { %5556 = vpow2.f32 %v1503_v57 }
 0xa83   :  { %v5553_v34 = vpop.eup %5552 }
 0xa84   :  { %v1518_v60 = vsel %vm479_vm3, %v5553_v34, 0.0 }
 0xa85   :  { %v6306_v61 = vpop.eup %5554  ;;  %1519 = vadd.xlane.f32.xlu1 %v1518_v60  ;;  %v5448_v60 = vld [vmem:[%s7288_s8] sm:$0xff]  }
 0xa86   :  { %v1521_v53 = vsel %vm479_vm3, %v6306_v61, 0.0  ;;  %v5557_v63 = vpop.eup %5556 }
 0xa87   :  { %1522 = vadd.xlane.f32.xlu0 %v1521_v53  ;;  %v1515_v2 = vsel %vm479_vm3, %v5557_v63, 0.0 }
 0xa89   :  { %v1496_v0 = vpop.xlane.xlu1 %1495 }
 0xa8a   :  { %v1502_v1 = vsub.f32 %v1474_v35, %v1496_v0  ;;  %v1490_v16 = vpop.xlane.xlu0 %1489 }
 0xa8b   :  { %v1500_v3 = vsub.f32 %v1466_v19, %v1490_v16  ;;  %1516 = vadd.xlane.f32.xlu0 %v1515_v2 }
 0xa8c   :  { %v1513_v8 = vmul.f32 1.442695, %v1502_v1 }
 0xa8d   :  { %v1509_v10 = vmul.f32 1.442695, %v1500_v3 }
 0xa8e   :  { %5558 = vpow2.f32 %v1513_v8  ;;  %v1493_v11 = vpop.xlane.xlu0 %1492 }
 0xa8f   :  { %v1501_v13 = vsub.f32 %v1469_v38, %v1493_v11  ;;  %5560 = vpow2.f32 %v1509_v10 }
 0xa91   :  { %v1511_v15 = vmul.f32 1.442695, %v1501_v13 }
 0xa93   :  { %5562 = vpow2.f32 %v1511_v15 }
 0xa98   :  { %v5559_v31 = vpop.eup %5558 }
 0xa99   :  { %v1530_v33 = vsel %vm479_vm3, %v5559_v31, 0.0  ;;  %v5561_v36 = vpop.eup %5560 }
 0xa9a   :  { %1531 = vadd.xlane.f32.xlu1 %v1530_v33  ;;  %v1524_v35 = vsel %vm479_vm3, %v5561_v36, 0.0 }
 0xa9d   :  { %v5563_v14 = vpop.eup %5562 }
 0xa9e   :  { %1525 = vadd.xlane.f32.xlu1 %v1524_v35  ;;  %v1527_v19 = vsel %vm479_vm3, %v5563_v14, 0.0 }
 0xa9f   :  { %1528 = vadd.xlane.f32.xlu0 %v1527_v19 }
 0xaaf   :  { %1551 = vrot.lane.b32.xlu1 %v5967_v55, %s7302_s23 }
 0xab3   :  { %1611 = vrot.lane.b32.xlu1 %v5975_v7, %s7302_s23 }
 0xab5   :  { %1549 = vrot.lane.b32.xlu0 %v5959_v46, %s7302_s23 }
 0xab7   :  { %1613 = vrot.lane.b32.xlu1 %v5979_v12, %s7302_s23 }
 0xab9   :  { %5355 = vrot.lane.b32.xlu0 %v5354_v26, %s7306_s24 }
 0xabb   :  { %5360 = vrot.lane.b32.xlu1 %v5359_v59, %s7308_s25 }
 0xabf   :  { %5370 = vrot.lane.b32.xlu1 %v5369_v47, %s7306_s24 }
 0xb12   :  { %v1520_v46 = vpop.xlane.xlu1 %1519 }
 0xb13   :  { %5564 = vrcp.f32 %v1520_v46 }
 0xb14   :  { %v1523_v55 = vpop.xlane.xlu0 %1522 }
 0xb18   :  { %v1517_v7 = vpop.xlane.xlu0 %1516 }
 0xb19   :  { %5566 = vrcp.f32 %v1517_v7 }
 0xb1a   :  { %5568 = vrcp.f32 %v1523_v55 }
 0xb1d   :  { %v5565_v12 = vpop.eup %5564 }
 0xb1e   :  { %v1540_v24 = vmul.f32 %v5565_v12, %v5553_v34 }
 0xb23   :  { %v5567_v28 = vpop.eup %5566 }
 0xb24   :  { %v1539_v22 = vmul.f32 %v5567_v28, %v5557_v63  ;;  %v5569_v44 = vpop.eup %5568 }
 0xb25   :  { %v1541_v38 = vmul.f32 %v5569_v44, %v6306_v61  ;;  %v5449_v61 = vld [vmem:[%s7288_s8 + $0x8] sm:$0xff]  }
 0xb26   :  { %v1545_v26 = vpack.c.bf16 %v1540_v24, %v1539_v22 }
 0xb27   :  { %v1532_v37 = vpop.xlane.xlu1 %1531  ;;  %v1546_v32 = vpack.c.bf16 %v1541_v38, %v1541_v38 }
 0xb28   :  { %5018 = vmatprep.mubr.msk.bf16.mxu0 %vm479_vm3, %v1545_v26  ;;  %5570 = vrcp.f32 %v1532_v37 }
 0xb2b   :  { %v1526_v62 = vpop.xlane.xlu1 %1525 }
 0xb2c   :  { %5572 = vrcp.f32 %v1526_v62  ;;  %v1529_v45 = vpop.xlane.xlu0 %1528 }
 0xb2d   :  { %5574 = vrcp.f32 %v1529_v45 }
 0xb2f   :  { %v1552_v21 = vpop.permute.xlu1 %1551 }
 0xb30   :  { %v1550_v47 = vpop.permute.xlu0 %1549  ;;  %v1561_v40 = vsel %vm563_vm4, %v1552_v21, 0 }
 0xb31   :  { %5014 = vmatprep.subr.bf16.mxu0 %v1550_v47 }
 0xb32   :  { %5015 = vmatpush3.bf16.msra.mxu0 %v1550_v47  ;;  %v5571_v39 = vpop.eup %5570 }
 0xb33   :  { %v1612_v59 = vpop.permute.xlu1 %1611  ;;  %5316 = vmatprep.subr.msk.bf16.mxu0 %vm563_vm4, %v1552_v21  ;;  %v1544_v54 = vmul.f32 %v5571_v39, %v5559_v31 }
 0xb34   :  { %5022 = vmatprep.subr.bf16.mxu1 %v1612_v59  ;;  %v5356_v31 = vpop.permute.xlu0 %5355 }
 0xb35   :  { %5023 = vmatpush3.bf16.msra.mxu1 %v1612_v59  ;;  %v1548_v34 = vpack.c.bf16 %v1544_v54, %v1544_v54  ;;  %v5358_v33 = vunpack.i.h.bf16 %v5356_v31 }
 0xb36   :  { %v5573_v43 = vpop.eup %5572  ;;  %5017 = vmatpush3.bf16.msra.mxu0 %v1561_v40 }
 0xb37   :  { %v5575_v48 = vpop.eup %5574  ;;  %v1614_v51 = vpop.permute.xlu1 %1613  ;;  %v1542_v52 = vmul.f32 %v5573_v43, %v5561_v36  ;;  %5030 = vmatprep.subr.bf16.mxu0 %v5744_v42  ;;  %v5357_v36 = vunpack.i.l.bf16 %v5356_v31  ;;  %v1746_v6 = vsel %vm358_vm2, %v6101_v9, %v5358_v33  ;;  %v5734_v33 = vld [vmem:[%s7315_s29 + $0x10] sm:$0xff] }
 0xb38   :  { %5317 = vmatprep.subr.msk.bf16.mxu1 %vm563_vm4, %v1614_v51  ;;  %v1623_v30 = vsel %vm563_vm4, %v1614_v51, 0  ;;  %v1543_v57 = vmul.f32 %v5575_v48, %v5563_v14 }
 0xb39   :  { %5019 = vmatmul.mubr.msk.bf16.vlgmr.msra.gmra.mrb[40].mxu0 %vm479_vm3, %v1546_v32  ;;  %5025 = vmatpush3.bf16.msra.mxu1 %v1623_v30 }
 0xb3a   :  { %v1547_v56 = vpack.c.bf16 %v1543_v57, %v1542_v52  ;;  %5034 = vmatprep.mubr.msk.bf16.mxu0 %vm5745_vm1, %v5744_v42  ;;  %5046 = vmatprep.subr.bf16.mxu1 %v5744_v42 }
 0xb3b   :  { %5031 = vmatpush3.bf16.msra.mxu0 %v5448_v60  ;;  %v5361_v15 = vpop.permute.xlu1 %5360 }
 0xb3c   :  { %5026 = vmatprep.mubr.msk.bf16.mxu1 %vm479_vm3, %v1547_v56  ;;  %5032 = vmatprep.subr.bf16.mxu0 %v5744_v42  ;;  %v5363_v14 = vunpack.i.h.bf16 %v5361_v15  ;;  %v5362_v35 = vunpack.i.l.bf16 %v5361_v15 }
 0xb3d   :  { %5027 = vmatmul.mubr.msk.bf16.vlgmr.msra.gmra.mrb[40].mxu1 %vm479_vm3, %v1548_v34 }
 0xb3e   :  { %5050 = vmatprep.mubr.msk.bf16.mxu1 %vm5745_vm1, %v5744_v42 }
 0xb3f   :  { %5033 = vmatpush3.bf16.msra.mxu0 %v5449_v61  ;;  %v5371_v58 = vpop.permute.xlu1 %5370 }
 0xb40   :  { %5062 = vmatprep.subr.bf16.mxu0 %v5744_v42  ;;  %v5372_v19 = vunpack.i.l.bf16 %v5371_v58 }
 0xb42   :  { %v1747_v24 = vsel %vm358_vm2, %v6097_v4, %v5372_v19 }
 0xc0c   :  { %v5020_v53 = vpop.f32.mrb[40].mxu0 }
 0xc0d   :  { %v1597_v63 = vpop.f32.mrb[41].mxu0 }
 0xc0e   :  { %v5021_v0 = vpop.f32.mrb[42].mxu0 }
 0xc0f   :  { %v1600_v1 = vpop.f32.mrb[43].mxu0 }
 0xc10   :  { %v5364_v16 = vpack.i.bf16 %v1600_v1, %v1597_v63  ;;  %v5028_v2 = vpop.f32.mrb[40].mxu1  ;;  %v5732_v63 = vld [vmem:[%s7315_s29] sm:$0xff] }
 0xc11   :  { %v1659_v3 = vpop.f32.mrb[41].mxu1 }
 0xc12   :  { %v5379_v8 = vpack.i.bf16 %v1659_v3, %v5020_v53  ;;  %v5029_v10 = vpop.f32.mrb[42].mxu1  ;;  %5365 = vrot.lane.b32.xlu0 %v5364_v16, %s7304_s26 }
 0xc13   :  { %v1662_v11 = vpop.f32.mrb[43].mxu1 }
 0xc14   :  { %v5394_v13 = vpack.i.bf16 %v5028_v2, %v1662_v11  ;;  %5380 = vrot.lane.b32.xlu1 %v5379_v8, %s7304_s26  ;;  %v5733_v2 = vld [vmem:[%s7315_s29 + $0x8] sm:$0xff] }
 0xc16   :  { %5375 = vrot.lane.b32.xlu0 %v5374_v18, %s7308_s25  ;;  %v1745_v18 = vsel %vm358_vm2, %v6099_v5, %v5357_v36 }
 0xc17   :  { %v1752_v49 = vsel %vm1751_vm5, %v1745_v18, %v5362_v35 }
 0xc18   :  { %5390 = vrot.lane.b32.xlu1 %v5389_v17, %s7308_s25  ;;  %v5373_v17 = vunpack.i.h.bf16 %v5371_v58  ;;  %v5735_v58 = vld [vmem:[%s7315_s29 + $0x18] sm:$0xff] }
 0xc1a   :  { %5385 = vrot.lane.b32.xlu0 %v5384_v50, %s7306_s24  ;;  %v1753_v50 = vsel %vm1751_vm5, %v1746_v6, %v5363_v14  ;;  %v1748_v5 = vsel %vm358_vm2, %v6111_v27, %v5373_v17  ;;  %v5736_v17 = vld [vmem:[%s7315_s29 + $0x20] sm:$0xff] }
 0xc1e   :  { %5395 = vrot.lane.b32.xlu0 %v5394_v13, %s7304_s26 }
 0xc84   :  { %v5366_v23 = vpop.permute.xlu0 %5365 }
 0xc85   :  { %v5368_v20 = vunpack.i.h.bf16 %v5366_v23  ;;  %v5367_v41 = vunpack.i.l.bf16 %v5366_v23 }
 0xc86   :  { %v5381_v7 = vpop.permute.xlu1 %5380 }
 0xc87   :  { %v1758_v46 = vsel %vm479_vm3, %v1752_v49, %v5367_v41  ;;  %v1759_v55 = vsel %vm479_vm3, %v1753_v50, %v5368_v20  ;;  %v5383_v26 = vunpack.i.h.bf16 %v5381_v7  ;;  %v5382_v37 = vunpack.i.l.bf16 %v5381_v7  ;;  %v5737_v7 = vld [vmem:[%s7315_s29 + $0x28] sm:$0xff] }
 0xc88   :  { %v1764_v12 = vpack.c.bf16 %v1759_v55, %v1758_v46  ;;  %v5376_v28 = vpop.permute.xlu0 %5375 }
 0xc89   :  { %v5378_v22 = vunpack.i.h.bf16 %v5376_v28  ;;  %v5377_v9 = vunpack.i.l.bf16 %v5376_v28 }
 0xc8a   :  { %5035 = vmatmul.mubr.msk.bf16.vlgmr.msra.gmra.mrb[44].mxu0 %vm74_vm0, %v1764_v12  ;;  %v5391_v27 = vpop.permute.xlu1 %5390 }
 0xc8b   :  { %v1755_v62 = vsel %vm1751_vm5, %v1748_v5, %v5378_v22  ;;  %v1754_v45 = vsel %vm1751_vm5, %v1747_v24, %v5377_v9  ;;  %5038 = vmatprep.mubr.msk.bf16.mxu0 %vm5745_vm1, %v5744_v42  ;;  %v5393_v43 = vunpack.i.h.bf16 %v5391_v27  ;;  %v5392_v48 = vunpack.i.l.bf16 %v5391_v27 }
 0xc8c   :  { %v5386_v21 = vpop.permute.xlu0 %5385  ;;  %v1760_v44 = vsel %vm479_vm3, %v1754_v45, %v5382_v37  ;;  %v1761_v47 = vsel %vm479_vm3, %v1755_v62, %v5383_v26 }
 0xc8d   :  { %v5388_v59 = vunpack.i.h.bf16 %v5386_v21  ;;  %v5387_v38 = vunpack.i.l.bf16 %v5386_v21  ;;  %v1765_v4 = vpack.c.bf16 %v1761_v47, %v1760_v44 }
 0xc8f   :  { %v1750_v39 = vsel %vm358_vm2, %v6108_v25, %v5388_v59  ;;  %v1749_v40 = vsel %vm358_vm2, %v6113_v29, %v5387_v38  ;;  %v4559_v29 = vld [vmem:[%s7289_s9] ss:$0 sm:$0xff] }
 0xc90   :  { %v5396_v51 = vpop.permute.xlu0 %5395  ;;  %v1756_v54 = vsel %vm1751_vm5, %v1749_v40, %v5392_v48  ;;  %v1757_v30 = vsel %vm1751_vm5, %v1750_v39, %v5393_v43 }
 0xc91   :  { %v5398_v32 = vunpack.i.h.bf16 %v5396_v51  ;;  %v5397_v52 = vunpack.i.l.bf16 %v5396_v51 }
 0xc92   :  { %5039 = vmatmul.mubr.msk.bf16.gmra.mrb[48].mxu0 %vm74_vm0, %v1765_v4 }
 0xc93   :  { %v1762_v57 = vsel %vm479_vm3, %v1756_v54, %v5397_v52  ;;  %v1763_v56 = vsel %vm479_vm3, %v1757_v30, %v5398_v32  ;;  %5042 = vmatprep.mubr.msk.bf16.mxu0 %vm5745_vm1, %v5744_v42 }
 0xc94   :  { %v1766_v25 = vpack.c.bf16 %v1763_v56, %v1762_v57 }
 0xc9a   :  { %5043 = vmatmul.mubr.msk.bf16.gmra.mrb[52].mxu0 %vm74_vm0, %v1766_v25 }
 0xc9b   :  { %5070 = vmatprep.mubr.msk.bf16.mxu0 %vm5745_vm1, %v5744_v42 }
 0xd5d   :  { %v1833_v34 = vpop.f32.mrb[44].mxu0 }
 0xd5e   :  { %v1834_v60 = vadd.f32 %v4559_v29, %v1833_v34  ;;  %v5036_v61 = vpop.f32.mrb[45].mxu0 }
 0xd5f   :  { %v1836_v53 = vpop.f32.mrb[46].mxu0 }
 0xd60   :  { %v6411_v0 = vadd.f32 %v5732_v63, %v1834_v60  ;;  %v1837_v1 = vadd.f32 %v4559_v29, %v1836_v53  ;;  %v5037_v16 = vpop.f32.mrb[47].mxu0  ;;  %v5450_v53 = vld [vmem:[%s7290_s12] sm:$0xff]   ;;  %v5451_v63 = vld [vmem:[%s7290_s12 + $0x8] sm:$0xff]  }
 0xd61   :  { %5047 = vmatpush3.bf16.msra.mxu1 %v5450_v53  ;;  %v5453_v16 = vld [vmem:[%s7291_s14 + $0x8] sm:$0xff]  }
 0xd62   :  { %v6416_v3 = vadd.f32 %v5733_v2, %v1837_v1  ;;  %v1864_v8 = vsel %vm74_vm0, %v6411_v0, 0.0  ;;  %5048 = vmatprep.subr.bf16.mxu1 %v5744_v42  ;;  %v5452_v1 = vld [vmem:[%s7291_s14] sm:$0xff]  }
 0xd63   :  { %1865 = vadd.xlane.f32.xlu1 %v1864_v8  ;;  %5063 = vmatpush3.bf16.msra.mxu0 %v5452_v1 }
 0xd64   :  { %v1867_v10 = vsel %vm74_vm0, %v6416_v3, 0.0  ;;  %5064 = vmatprep.subr.bf16.mxu0 %v5744_v42 }
 0xd65   :  { %1868 = vadd.xlane.f32.xlu0 %v1867_v10  ;;  %v1841_v11 = vpop.f32.mrb[48].mxu0  ;;  %5049 = vmatpush3.bf16.msra.mxu1 %v5451_v63 }
 0xd66   :  { %v1842_v13 = vadd.f32 %v4559_v29, %v1841_v11  ;;  %v5040_v15 = vpop.f32.mrb[49].mxu0  ;;  %5082 = vmatprep.subr.bf16.mxu1 %v5744_v42 }
 0xd67   :  { %v1844_v31 = vpop.f32.mrb[50].mxu0  ;;  %5065 = vmatpush3.bf16.msra.mxu0 %v5453_v16 }
 0xd68   :  { %v6425_v36 = vadd.f32 %v5734_v33, %v1842_v13  ;;  %v1845_v14 = vadd.f32 %v4559_v29, %v1844_v31  ;;  %v5041_v35 = vpop.f32.mrb[51].mxu0  ;;  %5066 = vmatprep.subr.bf16.mxu0 %v5744_v42 }
 0xd6a   :  { %v6430_v23 = vadd.f32 %v5735_v58, %v1845_v14  ;;  %v1870_v6 = vsel %vm74_vm0, %v6425_v36, 0.0 }
 0xd6b   :  { %1871 = vadd.xlane.f32.xlu0 %v1870_v6 }
 0xd6c   :  { %v1873_v49 = vsel %vm74_vm0, %v6430_v23, 0.0 }
 0xd6d   :  { %v1849_v18 = vpop.f32.mrb[52].mxu0 }
 0xd6e   :  { %v1850_v20 = vadd.f32 %v4559_v29, %v1849_v18  ;;  %v5044_v41 = vpop.f32.mrb[53].mxu0  ;;  %v4565_v18 = vld [vmem:[%s7292_s10] ss:$0 sm:$0xff] }
 0xd6f   :  { %1874 = vadd.xlane.f32.xlu0 %v1873_v49  ;;  %v1852_v50 = vpop.f32.mrb[54].mxu0 }
 0xd70   :  { %v6439_v19 = vadd.f32 %v5736_v17, %v1850_v20  ;;  %v1853_v46 = vadd.f32 %v4559_v29, %v1852_v50  ;;  %v5045_v55 = vpop.f32.mrb[55].mxu0 }
 0xd72   :  { %v6444_v12 = vadd.f32 %v5737_v7, %v1853_v46  ;;  %v1876_v28 = vsel %vm74_vm0, %v6439_v19, 0.0 }
 0xd73   :  { %1877 = vadd.xlane.f32.xlu1 %v1876_v28 }
 0xd74   :  { %v1879_v22 = vsel %vm74_vm0, %v6444_v12, 0.0 }
 0xd75   :  { %1880 = vadd.xlane.f32.xlu0 %v1879_v22 }
 0xdf0   :  { %v1866_v9 = vpop.xlane.xlu1 %1865 }
 0xdf1   :  { %v1882_v5 = vmul.f32 0.03125, %v1866_v9  ;;  %v4566_v9 = vld [vmem:[%s7293_s11] ss:$0 sm:$0xff] }
 0xdf2   :  { %v1869_v24 = vpop.xlane.xlu0 %1868 }
 0xdf3   :  { %v6451_v26 = vsub.f32 %v6411_v0, %v1882_v5  ;;  %v1883_v37 = vmul.f32 0.03125, %v1869_v24 }
 0xdf5   :  { %v6454_v62 = vsub.f32 %v6416_v3, %v1883_v37  ;;  %v1894_v45 = vmul.f32 %v6451_v26, %v6451_v26 }
 0xdf7   :  { %v1900_v21 = vsel %vm74_vm0, %v1894_v45, 0.0  ;;  %v1895_v44 = vmul.f32 %v6454_v62, %v6454_v62 }
 0xdf8   :  { %v1872_v47 = vpop.xlane.xlu0 %1871  ;;  %1901 = vadd.xlane.f32.xlu1 %v1900_v21 }
 0xdf9   :  { %v1884_v27 = vmul.f32 0.03125, %v1872_v47  ;;  %v1903_v59 = vsel %vm74_vm0, %v1895_v44, 0.0 }
 0xdfa   :  { %1904 = vadd.xlane.f32.xlu0 %v1903_v59 }
 0xdfb   :  { %v6463_v38 = vsub.f32 %v6425_v36, %v1884_v27 }
 0xdfc   :  { %v1875_v4 = vpop.xlane.xlu0 %1874 }
 0xdfd   :  { %v1885_v39 = vmul.f32 0.03125, %v1875_v4  ;;  %v1896_v40 = vmul.f32 %v6463_v38, %v6463_v38 }
 0xdff   :  { %v6468_v43 = vsub.f32 %v6430_v23, %v1885_v39  ;;  %v1906_v48 = vsel %vm74_vm0, %v1896_v40, 0.0 }
 0xe00   :  { %1907 = vadd.xlane.f32.xlu1 %v1906_v48  ;;  %v1878_v51 = vpop.xlane.xlu1 %1877 }
 0xe01   :  { %v1886_v32 = vmul.f32 0.03125, %v1878_v51  ;;  %v1897_v52 = vmul.f32 %v6468_v43, %v6468_v43 }
 0xe02   :  { %v1881_v54 = vpop.xlane.xlu0 %1880 }
 0xe03   :  { %v6474_v30 = vsub.f32 %v6439_v19, %v1886_v32  ;;  %v1887_v57 = vmul.f32 0.03125, %v1881_v54  ;;  %v1909_v56 = vsel %vm74_vm0, %v1897_v52, 0.0 }
 0xe04   :  { %1910 = vadd.xlane.f32.xlu0 %v1909_v56 }
 0xe05   :  { %v6478_v25 = vsub.f32 %v6444_v12, %v1887_v57  ;;  %v1898_v29 = vmul.f32 %v6474_v30, %v6474_v30 }
 0xe07   :  { %v1912_v34 = vsel %vm74_vm0, %v1898_v29, 0.0  ;;  %v1899_v60 = vmul.f32 %v6478_v25, %v6478_v25  ;;  %v4567_v29 = vld [vmem:[%s7294_s13] ss:$0 sm:$0xff] }
 0xe08   :  { %1913 = vadd.xlane.f32.xlu1 %v1912_v34 }
 0xe09   :  { %v1915_v61 = vsel %vm74_vm0, %v1899_v60, 0.0 }
 0xe0a   :  { %1916 = vadd.xlane.f32.xlu0 %v1915_v61 }
 0xe85   :  { %v1902_v2 = vpop.xlane.xlu1 %1901 }
 0xe86   :  { %v1918_v8 = vmul.f32 0.03125, %v1902_v2 }
 0xe87   :  { %v1905_v10 = vpop.xlane.xlu0 %1904 }
 0xe88   :  { %v1924_v11 = vadd.f32 1e-05, %v1918_v8  ;;  %v1919_v13 = vmul.f32 0.03125, %v1905_v10 }
 0xe8a   :  { %5576 = vrsqrt.f32 %v1924_v11  ;;  %v1925_v15 = vadd.f32 1e-05, %v1919_v13 }
 0xe8c   :  { %5578 = vrsqrt.f32 %v1925_v15 }
 0xe8d   :  { %v1908_v31 = vpop.xlane.xlu1 %1907 }
 0xe8e   :  { %v1920_v33 = vmul.f32 0.03125, %v1908_v31 }
 0xe90   :  { %v1926_v14 = vadd.f32 1e-05, %v1920_v33 }
 0xe91   :  { %v1911_v35 = vpop.xlane.xlu0 %1910 }
 0xe92   :  { %5580 = vrsqrt.f32 %v1926_v14  ;;  %v1921_v58 = vmul.f32 0.03125, %v1911_v35 }
 0xe94   :  { %v5577_v6 = vpop.eup %5576  ;;  %v1927_v20 = vadd.f32 1e-05, %v1921_v58 }
 0xe95   :  { %v1936_v41 = vmul.f32 %v5577_v6, %v6451_v26  ;;  %v1914_v49 = vpop.xlane.xlu1 %1913 }
 0xe96   :  { %v5579_v50 = vpop.eup %5578  ;;  %5582 = vrsqrt.f32 %v1927_v20  ;;  %v1922_v17 = vmul.f32 0.03125, %v1914_v49 }
 0xe97   :  { %v1948_v46 = vmul.f32 %v4565_v18, %v1936_v41  ;;  %v1937_v55 = vmul.f32 %v5579_v50, %v6454_v62  ;;  %v1917_v7 = vpop.xlane.xlu0 %1916 }
 0xe98   :  { %v1928_v28 = vadd.f32 1e-05, %v1922_v17  ;;  %v1923_v22 = vmul.f32 0.03125, %v1917_v7  ;;  %v4573_v7 = vld [vmem:[%s7295_s15] ss:$0 sm:$0xff] }
 0xe99   :  { %v1949_v5 = vmul.f32 %v4565_v18, %v1937_v55  ;;  %v1960_v37 = vadd.f32 %v4566_v9, %v1948_v46 }
 0xe9a   :  { %5584 = vrsqrt.f32 %v1928_v28  ;;  %v1929_v24 = vadd.f32 1e-05, %v1923_v22 }
 0xe9b   :  { %v1961_v45 = vadd.f32 %v4566_v9, %v1949_v5 }
 0xe9c   :  { %v5581_v26 = vpop.eup %5580  ;;  %5586 = vrsqrt.f32 %v1929_v24 }
 0xe9d   :  { %v1966_v21 = vpack.c.bf16 %v1961_v45, %v1960_v37  ;;  %v1938_v44 = vmul.f32 %v5581_v26, %v6463_v38 }
 0xe9f   :  { %5051 = vmatmul.mubr.msk.bf16.vlgmr.msra.gmra.mrb[44].mxu1 %vm74_vm0, %v1966_v21  ;;  %v1950_v27 = vmul.f32 %v4565_v18, %v1938_v44 }
 0xea0   :  { %v5583_v62 = vpop.eup %5582  ;;  %5054 = vmatprep.mubr.msk.bf16.mxu1 %vm5745_vm1, %v5744_v42 }
 0xea1   :  { %v1939_v47 = vmul.f32 %v5583_v62, %v6468_v43  ;;  %v1962_v39 = vadd.f32 %v4566_v9, %v1950_v27 }
 0xea3   :  { %v1951_v59 = vmul.f32 %v4565_v18, %v1939_v47 }
 0xea4   :  { %v5585_v4 = vpop.eup %5584 }
 0xea5   :  { %v1963_v40 = vadd.f32 %v4566_v9, %v1951_v59  ;;  %v1940_v48 = vmul.f32 %v5585_v4, %v6474_v30  ;;  %v5454_v30 = vld [vmem:[%s7291_s14 + $0x10] sm:$0xff]  }
 0xea6   :  { %v5587_v51 = vpop.eup %5586  ;;  %5067 = vmatpush3.bf16.msra.mxu0 %v5454_v30 }
 0xea7   :  { %v1967_v32 = vpack.c.bf16 %v1963_v40, %v1962_v39  ;;  %v1941_v52 = vmul.f32 %v5587_v51, %v6478_v25  ;;  %v1952_v38 = vmul.f32 %v4565_v18, %v1940_v48  ;;  %5068 = vmatprep.subr.bf16.mxu0 %v5744_v42  ;;  %v5455_v25 = vld [vmem:[%s7291_s14 + $0x18] sm:$0xff]  }
 0xea9   :  { %5055 = vmatmul.mubr.msk.bf16.gmra.mrb[48].mxu1 %vm74_vm0, %v1967_v32  ;;  %v1953_v54 = vmul.f32 %v4565_v18, %v1941_v52  ;;  %v1964_v43 = vadd.f32 %v4566_v9, %v1952_v38 }
 0xeaa   :  { %5058 = vmatprep.mubr.msk.bf16.mxu1 %vm5745_vm1, %v5744_v42  ;;  %5069 = vmatpush3.bf16.msra.mxu0 %v5455_v25 }
 0xeab   :  { %v1965_v57 = vadd.f32 %v4566_v9, %v1953_v54  ;;  %5098 = vmatprep.subr.bf16.mxu0 %v5744_v42 }
 0xead   :  { %v1968_v56 = vpack.c.bf16 %v1965_v57, %v1964_v43 }
 0xeb1   :  { %5059 = vmatmul.mubr.msk.bf16.gmra.mrb[52].mxu1 %vm74_vm0, %v1968_v56 }
 0xeb2   :  { %5086 = vmatprep.mubr.msk.bf16.mxu1 %vm5745_vm1, %v5744_v42 }
 0xf72   :  { %v2035_v34 = vpop.f32.mrb[44].mxu1 }
 0xf73   :  { %v2036_v60 = vadd.f32 %v4567_v29, %v2035_v34  ;;  %v5052_v61 = vpop.f32.mrb[45].mxu1 }
 0xf74   :  { %v2038_v53 = vpop.f32.mrb[46].mxu1 }
 0xf75   :  { %v2039_v63 = vadd.f32 %v4567_v29, %v2038_v53  ;;  %v5053_v1 = vpop.f32.mrb[47].mxu1  ;;  %v2058_v16 = vmax.f32 %v2036_v60, 0.0 }
 0xf77   :  { %v2059_v2 = vmax.f32 %v2039_v63, 0.0 }
 0xf79   :  { %v2064_v8 = vpack.c.bf16 %v2059_v2, %v2058_v16 }
 0xf7b   :  { %5071 = vmatmul.mubr.msk.bf16.vlgmr.msra.gmra.mrb[56].mxu0 %vm2106_vm6, %v2064_v8 }
 0xf7c   :  { %v2043_v10 = vpop.f32.mrb[48].mxu1  ;;  %5074 = vmatprep.mubr.msk.bf16.mxu0 %vm5745_vm1, %v5744_v42 }
 0xf7d   :  { %v2044_v11 = vadd.f32 %v4567_v29, %v2043_v10  ;;  %v5056_v13 = vpop.f32.mrb[49].mxu1 }
 0xf7e   :  { %v2046_v15 = vpop.f32.mrb[50].mxu1 }
 0xf7f   :  { %v2047_v31 = vadd.f32 %v4567_v29, %v2046_v15  ;;  %v5057_v33 = vpop.f32.mrb[51].mxu1  ;;  %v2060_v14 = vmax.f32 %v2044_v11, 0.0 }
 0xf81   :  { %v2061_v35 = vmax.f32 %v2047_v31, 0.0 }
 0xf83   :  { %v2065_v58 = vpack.c.bf16 %v2061_v35, %v2060_v14 }
 0xf84   :  { %v2051_v6 = vpop.f32.mrb[52].mxu1 }
 0xf85   :  { %v2052_v18 = vadd.f32 %v4567_v29, %v2051_v6  ;;  %v5060_v20 = vpop.f32.mrb[53].mxu1  ;;  %5075 = vmatmul.mubr.msk.bf16.gmra.mrb[60].mxu0 %vm2106_vm6, %v2065_v58 }
 0xf86   :  { %v2054_v41 = vpop.f32.mrb[54].mxu1  ;;  %5078 = vmatprep.mubr.msk.bf16.mxu0 %vm5745_vm1, %v5744_v42 }
 0xf87   :  { %v2055_v49 = vadd.f32 %v4567_v29, %v2054_v41  ;;  %v5061_v50 = vpop.f32.mrb[55].mxu1  ;;  %v2062_v17 = vmax.f32 %v2052_v18, 0.0 }
 0xf89   :  { %v2063_v46 = vmax.f32 %v2055_v49, 0.0 }
 0xf8b   :  { %v2066_v55 = vpack.c.bf16 %v2063_v46, %v2062_v17 }
 0xf8d   :  { %5079 = vmatmul.mubr.msk.bf16.gmra.mrb[64].mxu0 %vm2106_vm6, %v2066_v55 }
 0xf8e   :  { %5102 = vmatprep.mubr.msk.bf16.mxu0 %vm5745_vm1, %v5744_v42 }
0x104e   :  { %v2150_v28 = vpop.f32.mrb[56].mxu0 }
0x104f   :  { %v2151_v22 = vadd.f32 %v4573_v7, %v2150_v28  ;;  %v5072_v9 = vpop.f32.mrb[57].mxu0 }
0x1050   :  { %v2153_v5 = vpop.f32.mrb[58].mxu0 }
0x1051   :  { %v2173_v24 = vadd.f32 %v2151_v22, %v6411_v0  ;;  %v2154_v37 = vadd.f32 %v4573_v7, %v2153_v5  ;;  %v5073_v45 = vpop.f32.mrb[59].mxu0 }
0x1053   :  { %v2174_v26 = vadd.f32 %v2154_v37, %v6416_v3  ;;  %v2181_v21 = vsel %vm74_vm0, %v2173_v24, 0.0 }
0x1054   :  { %2182 = vadd.xlane.f32.xlu1 %v2181_v21 }
0x1055   :  { %v2184_v44 = vsel %vm74_vm0, %v2174_v26, 0.0 }
0x1056   :  { %2185 = vadd.xlane.f32.xlu0 %v2184_v44 }
0x1058   :  { %v2158_v62 = vpop.f32.mrb[60].mxu0 }
0x1059   :  { %v2159_v47 = vadd.f32 %v4573_v7, %v2158_v62  ;;  %v5076_v27 = vpop.f32.mrb[61].mxu0  ;;  %v4581_v62 = vld [vmem:[%s7296_s16] ss:$0 sm:$0xff] }
0x105a   :  { %v2161_v59 = vpop.f32.mrb[62].mxu0 }
0x105b   :  { %v2175_v4 = vadd.f32 %v2159_v47, %v6425_v36  ;;  %v2162_v39 = vadd.f32 %v4573_v7, %v2161_v59  ;;  %v5077_v40 = vpop.f32.mrb[63].mxu0  ;;  %v4582_v59 = vld [vmem:[%s7297_s17] ss:$0 sm:$0xff] }
0x105d   :  { %v2176_v0 = vadd.f32 %v2162_v39, %v6430_v23  ;;  %v2187_v48 = vsel %vm74_vm0, %v2175_v4, 0.0 }
0x105e   :  { %2188 = vadd.xlane.f32.xlu1 %v2187_v48 }
0x105f   :  { %v2190_v3 = vsel %vm74_vm0, %v2176_v0, 0.0 }
0x1060   :  { %2191 = vadd.xlane.f32.xlu0 %v2190_v3  ;;  %v2166_v51 = vpop.f32.mrb[64].mxu0 }
0x1061   :  { %v2167_v32 = vadd.f32 %v4573_v7, %v2166_v51  ;;  %v5080_v52 = vpop.f32.mrb[65].mxu0 }
0x1062   :  { %v2169_v38 = vpop.f32.mrb[66].mxu0 }
0x1063   :  { %v2177_v54 = vadd.f32 %v2167_v32, %v6439_v19  ;;  %v2170_v57 = vadd.f32 %v4573_v7, %v2169_v38  ;;  %v5081_v43 = vpop.f32.mrb[67].mxu0 }
0x1065   :  { %v2178_v36 = vadd.f32 %v2170_v57, %v6444_v12  ;;  %v2193_v56 = vsel %vm74_vm0, %v2177_v54, 0.0 }
0x1066   :  { %2194 = vadd.xlane.f32.xlu1 %v2193_v56 }
0x1067   :  { %v2196_v23 = vsel %vm74_vm0, %v2178_v36, 0.0 }
0x1068   :  { %2197 = vadd.xlane.f32.xlu0 %v2196_v23 }
0x10e1   :  { %v2183_v30 = vpop.xlane.xlu1 %2182 }
0x10e2   :  { %v2199_v25 = vmul.f32 0.03125, %v2183_v30 }
0x10e3   :  { %v2186_v29 = vpop.xlane.xlu0 %2185 }
0x10e4   :  { %v2205_v34 = vsub.f32 %v2173_v24, %v2199_v25  ;;  %v2200_v60 = vmul.f32 0.03125, %v2186_v29 }
0x10e6   :  { %v2206_v61 = vsub.f32 %v2174_v26, %v2200_v60  ;;  %v2211_v53 = vmul.f32 %v2205_v34, %v2205_v34 }
0x10e8   :  { %v2217_v63 = vsel %vm74_vm0, %v2211_v53, 0.0  ;;  %v2212_v19 = vmul.f32 %v2206_v61, %v2206_v61 }
0x10e9   :  { %2218 = vadd.xlane.f32.xlu1 %v2217_v63 }
0x10ea   :  { %v2220_v1 = vsel %vm74_vm0, %v2212_v19, 0.0 }
0x10eb   :  { %v2189_v12 = vpop.xlane.xlu1 %2188  ;;  %2221 = vadd.xlane.f32.xlu0 %v2220_v1 }
0x10ec   :  { %v2201_v16 = vmul.f32 0.03125, %v2189_v12 }
0x10ed   :  { %v2192_v2 = vpop.xlane.xlu0 %2191 }
0x10ee   :  { %v2207_v8 = vsub.f32 %v2175_v4, %v2201_v16  ;;  %v2202_v10 = vmul.f32 0.03125, %v2192_v2 }
0x10f0   :  { %v6560_v11 = vsub.f32 %v2176_v0, %v2202_v10  ;;  %v2213_v13 = vmul.f32 %v2207_v8, %v2207_v8 }
0x10f2   :  { %v2223_v15 = vsel %vm74_vm0, %v2213_v13, 0.0  ;;  %v2214_v31 = vmul.f32 %v6560_v11, %v6560_v11 }
0x10f3   :  { %2224 = vadd.xlane.f32.xlu1 %v2223_v15  ;;  %v2195_v33 = vpop.xlane.xlu1 %2194 }
0x10f4   :  { %v2203_v14 = vmul.f32 0.03125, %v2195_v33  ;;  %v2226_v35 = vsel %vm74_vm0, %v2214_v31, 0.0 }
0x10f5   :  { %2227 = vadd.xlane.f32.xlu0 %v2226_v35  ;;  %v2198_v58 = vpop.xlane.xlu0 %2197 }
0x10f6   :  { %v2209_v6 = vsub.f32 %v2177_v54, %v2203_v14  ;;  %v2204_v18 = vmul.f32 0.03125, %v2198_v58 }
0x10f8   :  { %v6566_v20 = vsub.f32 %v2178_v36, %v2204_v18  ;;  %v2215_v41 = vmul.f32 %v2209_v6, %v2209_v6 }
0x10fa   :  { %v2229_v49 = vsel %vm74_vm0, %v2215_v41, 0.0  ;;  %v2216_v50 = vmul.f32 %v6566_v20, %v6566_v20 }
0x10fb   :  { %2230 = vadd.xlane.f32.xlu1 %v2229_v49 }
0x10fc   :  { %v2232_v17 = vsel %vm74_vm0, %v2216_v50, 0.0 }
0x10fd   :  { %2233 = vadd.xlane.f32.xlu0 %v2232_v17 }
0x1176   :  { %v2219_v46 = vpop.xlane.xlu1 %2218 }
0x1177   :  { %v2235_v55 = vmul.f32 0.03125, %v2219_v46 }
0x1178   :  { %v2222_v7 = vpop.xlane.xlu0 %2221 }
0x1179   :  { %v2241_v28 = vadd.f32 1e-05, %v2235_v55  ;;  %v2236_v22 = vmul.f32 0.03125, %v2222_v7 }
0x117b   :  { %5588 = vrsqrt.f32 %v2241_v28  ;;  %v2242_v9 = vadd.f32 1e-05, %v2236_v22 }
0x117d   :  { %5590 = vrsqrt.f32 %v2242_v9 }
0x1180   :  { %v2225_v5 = vpop.xlane.xlu1 %2224 }
0x1181   :  { %v2237_v24 = vmul.f32 0.03125, %v2225_v5 }
0x1182   :  { %v2228_v37 = vpop.xlane.xlu0 %2227 }
0x1183   :  { %v2243_v45 = vadd.f32 1e-05, %v2237_v24  ;;  %v2238_v26 = vmul.f32 0.03125, %v2228_v37 }
0x1185   :  { %v5589_v21 = vpop.eup %5588  ;;  %5592 = vrsqrt.f32 %v2243_v45  ;;  %v2244_v44 = vadd.f32 1e-05, %v2238_v26 }
0x1186   :  { %v2253_v47 = vmul.f32 %v5589_v21, %v2205_v34 }
0x1187   :  { %v5591_v27 = vpop.eup %5590  ;;  %5594 = vrsqrt.f32 %v2244_v44 }
0x1188   :  { %v2231_v4 = vpop.xlane.xlu1 %2230  ;;  %v2265_v39 = vmul.f32 %v4581_v62, %v2253_v47  ;;  %v2254_v40 = vmul.f32 %v5591_v27, %v2206_v61 }
0x1189   :  { %v2239_v0 = vmul.f32 0.03125, %v2231_v4  ;;  %v5456_v4 = vld [vmem:[%s7317_s0 + $0x10] sm:$0xff]  }
0x118a   :  { %v2234_v48 = vpop.xlane.xlu0 %2233  ;;  %v6578_v3 = vadd.f32 %v4582_v59, %v2265_v39  ;;  %v2266_v51 = vmul.f32 %v4581_v62, %v2254_v40  ;;  %v5457_v39 = vld [vmem:[%s7316_s27 + $0x10] sm:$0xff]   ;;  %5099 = vmatpush3.bf16.msra.mxu0 %v5456_v4  ;;  %v5458_v40 = vld [vmem:[%s7316_s27 + $0x18] sm:$0xff]  }
0x118b   :  { %v2245_v32 = vadd.f32 1e-05, %v2239_v0  ;;  %v2240_v52 = vmul.f32 0.03125, %v2234_v48  ;;  %5083 = vmatpush3.bf16.msra.mxu1 %v5457_v39  ;;  %5100 = vmatprep.subr.bf16.mxu0 %v5744_v42  ;;  %v5459_v0 = vld [vmem:[%s7317_s0 + $0x18] sm:$0xff]  }
0x118c   :  { %v2287_v38 = vsel %vm74_vm0, %v6578_v3, 0.0  ;;  %v6582_v54 = vadd.f32 %v4582_v59, %v2266_v51  ;;  %5084 = vmatprep.subr.bf16.mxu1 %v5744_v42 }
0x118d   :  { %5596 = vrsqrt.f32 %v2245_v32  ;;  %v2246_v57 = vadd.f32 1e-05, %v2240_v52  ;;  %2288 = vadd.xlane.f32.xlu1 %v2287_v38 }
0x118e   :  { %v2290_v43 = vsel %vm74_vm0, %v6582_v54, 0.0  ;;  %5101 = vmatpush3.bf16.msra.mxu0 %v5459_v0 }
0x118f   :  { %v5593_v36 = vpop.eup %5592  ;;  %5598 = vrsqrt.f32 %v2246_v57  ;;  %2291 = vadd.xlane.f32.xlu0 %v2290_v43  ;;  %5085 = vmatpush3.bf16.msra.mxu1 %v5458_v40 }
0x1190   :  { %v2255_v56 = vmul.f32 %v5593_v36, %v2207_v8 }
0x1191   :  { %v5595_v23 = vpop.eup %5594 }
0x1192   :  { %v2267_v30 = vmul.f32 %v4581_v62, %v2255_v56  ;;  %v2256_v25 = vmul.f32 %v5595_v23, %v6560_v11 }
0x1194   :  { %v6587_v29 = vadd.f32 %v4582_v59, %v2267_v30  ;;  %v2268_v34 = vmul.f32 %v4581_v62, %v2256_v25 }
0x1196   :  { %v2293_v60 = vsel %vm74_vm0, %v6587_v29, 0.0  ;;  %v6591_v61 = vadd.f32 %v4582_v59, %v2268_v34  ;;  %v4585_v34 = vld [vmem:[%s7283_s2 + $0x1] ss:$0 sm:$0xff] }
0x1197   :  { %v5597_v53 = vpop.eup %5596  ;;  %2294 = vadd.xlane.f32.xlu1 %v2293_v60 }
0x1198   :  { %v2296_v63 = vsel %vm74_vm0, %v6591_v61, 0.0  ;;  %v2257_v19 = vmul.f32 %v5597_v53, %v2209_v6 }
0x1199   :  { %v5599_v1 = vpop.eup %5598  ;;  %2297 = vadd.xlane.f32.xlu0 %v2296_v63 }
0x119a   :  { %v2269_v12 = vmul.f32 %v4581_v62, %v2257_v19  ;;  %v2258_v16 = vmul.f32 %v5599_v1, %v6566_v20  ;;  %v4586_v19 = vld [vmem:[%s7284_s3 + $0x1] ss:$0 sm:$0xff] }
0x119c   :  { %v6596_v2 = vadd.f32 %v4582_v59, %v2269_v12  ;;  %v2270_v8 = vmul.f32 %v4581_v62, %v2258_v16 }
0x119e   :  { %v2299_v10 = vsel %vm74_vm0, %v6596_v2, 0.0  ;;  %v6600_v11 = vadd.f32 %v4582_v59, %v2270_v8 }
0x119f   :  { %2300 = vadd.xlane.f32.xlu1 %v2299_v10 }
0x11a0   :  { %v2302_v13 = vsel %vm74_vm0, %v6600_v11, 0.0 }
0x11a1   :  { %2303 = vadd.xlane.f32.xlu0 %v2302_v13 }
0x121a   :  { %v2289_v15 = vpop.xlane.xlu1 %2288 }
0x121b   :  { %v2305_v31 = vmul.f32 0.03125, %v2289_v15 }
0x121c   :  { %v2292_v33 = vpop.xlane.xlu0 %2291 }
0x121d   :  { %v2311_v14 = vsub.f32 %v6578_v3, %v2305_v31  ;;  %v2306_v35 = vmul.f32 0.03125, %v2292_v33 }
0x121f   :  { %v6606_v58 = vsub.f32 %v6582_v54, %v2306_v35  ;;  %v2317_v6 = vmul.f32 %v2311_v14, %v2311_v14 }
0x1221   :  { %v2323_v18 = vsel %vm74_vm0, %v2317_v6, 0.0  ;;  %v2318_v20 = vmul.f32 %v6606_v58, %v6606_v58 }
0x1222   :  { %2324 = vadd.xlane.f32.xlu1 %v2323_v18 }
0x1223   :  { %v2326_v41 = vsel %vm74_vm0, %v2318_v20, 0.0 }
0x1224   :  { %v2295_v49 = vpop.xlane.xlu1 %2294  ;;  %2327 = vadd.xlane.f32.xlu0 %v2326_v41 }
0x1225   :  { %v2307_v50 = vmul.f32 0.03125, %v2295_v49 }
0x1226   :  { %v2298_v17 = vpop.xlane.xlu0 %2297 }
0x1227   :  { %v6613_v46 = vsub.f32 %v6587_v29, %v2307_v50  ;;  %v2308_v55 = vmul.f32 0.03125, %v2298_v17 }
0x1229   :  { %v6616_v7 = vsub.f32 %v6591_v61, %v2308_v55  ;;  %v2319_v28 = vmul.f32 %v6613_v46, %v6613_v46 }
0x122b   :  { %v2329_v22 = vsel %vm74_vm0, %v2319_v28, 0.0  ;;  %v2320_v9 = vmul.f32 %v6616_v7, %v6616_v7 }
0x122c   :  { %2330 = vadd.xlane.f32.xlu1 %v2329_v22  ;;  %v2301_v5 = vpop.xlane.xlu1 %2300 }
0x122d   :  { %v2309_v24 = vmul.f32 0.03125, %v2301_v5  ;;  %v2332_v37 = vsel %vm74_vm0, %v2320_v9, 0.0 }
0x122e   :  { %2333 = vadd.xlane.f32.xlu0 %v2332_v37  ;;  %v2304_v45 = vpop.xlane.xlu0 %2303 }
0x122f   :  { %v6625_v26 = vsub.f32 %v6596_v2, %v2309_v24  ;;  %v2310_v21 = vmul.f32 0.03125, %v2304_v45 }
0x1231   :  { %v6628_v44 = vsub.f32 %v6600_v11, %v2310_v21  ;;  %v2321_v62 = vmul.f32 %v6625_v26, %v6625_v26 }
0x1233   :  { %v2335_v47 = vsel %vm74_vm0, %v2321_v62, 0.0  ;;  %v2322_v27 = vmul.f32 %v6628_v44, %v6628_v44  ;;  %v4603_v62 = vld [vmem:[%s7286_s7 + $0x1] ss:$0 sm:$0xff] }
0x1234   :  { %2336 = vadd.xlane.f32.xlu1 %v2335_v47 }
0x1235   :  { %v2338_v59 = vsel %vm74_vm0, %v2322_v27, 0.0 }
0x1236   :  { %2339 = vadd.xlane.f32.xlu0 %v2338_v59 }
0x12af   :  { %v2325_v48 = vpop.xlane.xlu1 %2324 }
0x12b0   :  { %v2341_v51 = vmul.f32 0.03125, %v2325_v48 }
0x12b1   :  { %v2328_v32 = vpop.xlane.xlu0 %2327 }
0x12b2   :  { %v2347_v52 = vadd.f32 1e-05, %v2341_v51  ;;  %v2342_v38 = vmul.f32 0.03125, %v2328_v32 }
0x12b4   :  { %5600 = vrsqrt.f32 %v2347_v52  ;;  %v2348_v57 = vadd.f32 1e-05, %v2342_v38 }
0x12b6   :  { %5602 = vrsqrt.f32 %v2348_v57 }
0x12b9   :  { %v2331_v43 = vpop.xlane.xlu1 %2330 }
0x12ba   :  { %v2343_v36 = vmul.f32 0.03125, %v2331_v43 }
0x12bb   :  { %v2334_v56 = vpop.xlane.xlu0 %2333 }
0x12bc   :  { %v2349_v23 = vadd.f32 1e-05, %v2343_v36  ;;  %v2344_v30 = vmul.f32 0.03125, %v2334_v56 }
0x12be   :  { %v5601_v25 = vpop.eup %5600  ;;  %5604 = vrsqrt.f32 %v2349_v23  ;;  %v2350_v60 = vadd.f32 1e-05, %v2344_v30 }
0x12bf   :  { %v2359_v53 = vmul.f32 %v5601_v25, %v2311_v14 }
0x12c0   :  { %v5603_v63 = vpop.eup %5602  ;;  %5606 = vrsqrt.f32 %v2350_v60 }
0x12c1   :  { %v2371_v1 = vmul.f32 %v4585_v34, %v2359_v53  ;;  %v2360_v12 = vmul.f32 %v5603_v63, %v6606_v58  ;;  %v2337_v16 = vpop.xlane.xlu1 %2336 }
0x12c2   :  { %v2345_v8 = vmul.f32 0.03125, %v2337_v16 }
0x12c3   :  { %v2383_v10 = vadd.f32 %v4586_v19, %v2371_v1  ;;  %v2372_v13 = vmul.f32 %v4585_v34, %v2360_v12  ;;  %v2340_v15 = vpop.xlane.xlu0 %2339 }
0x12c4   :  { %v2351_v31 = vadd.f32 1e-05, %v2345_v8  ;;  %v2346_v33 = vmul.f32 0.03125, %v2340_v15 }
0x12c5   :  { %v2384_v35 = vadd.f32 %v4586_v19, %v2372_v13 }
0x12c6   :  { %5608 = vrsqrt.f32 %v2351_v31  ;;  %v2352_v6 = vadd.f32 1e-05, %v2346_v33 }
0x12c7   :  { %v2389_v14 = vpack.c.bf16 %v2384_v35, %v2383_v10 }
0x12c8   :  { %v5605_v18 = vpop.eup %5604  ;;  %5610 = vrsqrt.f32 %v2352_v6 }
0x12c9   :  { %5087 = vmatmul.mubr.msk.bf16.vlgmr.msra.gmra.mrb[56].mxu1 %vm74_vm0, %v2389_v14  ;;  %5103 = vmatmul.mubr.msk.bf16.vlgmr.msra.gmra.mrb[68].mxu0 %vm74_vm0, %v2389_v14  ;;  %v2361_v20 = vmul.f32 %v5605_v18, %v6613_v46 }
0x12ca   :  { %v5607_v58 = vpop.eup %5606  ;;  %5090 = vmatprep.mubr.msk.bf16.mxu1 %vm5745_vm1, %v5744_v42  ;;  %5106 = vmatprep.mubr.msk.bf16.mxu0 %vm5745_vm1, %v5744_v42 }
0x12cb   :  { %v2362_v41 = vmul.f32 %v5607_v58, %v6616_v7  ;;  %v2373_v49 = vmul.f32 %v4585_v34, %v2361_v20 }
0x12cd   :  { %v2374_v50 = vmul.f32 %v4585_v34, %v2362_v41  ;;  %v2385_v17 = vadd.f32 %v4586_v19, %v2373_v49 }
0x12cf   :  { %v2386_v55 = vadd.f32 %v4586_v19, %v2374_v50 }
0x12d0   :  { %v5609_v28 = vpop.eup %5608 }
0x12d1   :  { %v2390_v22 = vpack.c.bf16 %v2386_v55, %v2385_v17  ;;  %v2363_v9 = vmul.f32 %v5609_v28, %v6625_v26  ;;  %v4592_v26 = vld [vmem:[%s7285_s5 + $0x1] ss:$0 sm:$0xff]  ;;  %s7322_s5 = smov 24  }
0x12d2   :  { %v5611_v5 = vpop.eup %5610 }
0x12d3   :  { %5091 = vmatmul.mubr.msk.bf16.gmra.mrb[60].mxu1 %vm74_vm0, %v2390_v22  ;;  %5107 = vmatmul.mubr.msk.bf16.gmra.mrb[72].mxu0 %vm74_vm0, %v2390_v22  ;;  %v2364_v46 = vmul.f32 %v5611_v5, %v6628_v44  ;;  %v2375_v24 = vmul.f32 %v4585_v34, %v2363_v9 }
0x12d4   :  { %5094 = vmatprep.mubr.msk.bf16.mxu1 %vm5745_vm1, %v5744_v42  ;;  %5110 = vmatprep.mubr.msk.bf16.mxu0 %vm5745_vm1, %v5744_v42 }
0x12d5   :  { %v2376_v7 = vmul.f32 %v4585_v34, %v2364_v46  ;;  %v2387_v37 = vadd.f32 %v4586_v19, %v2375_v24  ;;  %v6724_v24 = vld [vmem:[%s7287_s1] sm:$0xff] }
0x12d7   :  { %v2388_v45 = vadd.f32 %v4586_v19, %v2376_v7 }
0x12d9   :  { %v2391_v21 = vpack.c.bf16 %v2388_v45, %v2387_v37 }
0x12db   :  { %5095 = vmatmul.mubr.msk.bf16.gmra.mrb[64].mxu1 %vm74_vm0, %v2391_v21  ;;  %5111 = vmatmul.mubr.msk.bf16.gmra.mrb[76].mxu0 %vm74_vm0, %v2391_v21  ;;  %v6730_v21 = vld [vmem:[%s7287_s1 + $0x10] sm:$0xff] }
0x139c   :  { %v2460_v44 = vpop.f32.mrb[56].mxu1  ;;  %v2542_v47 = vpop.f32.mrb[68].mxu0 }
0x139d   :  { %v5088_v27 = vpop.f32.mrb[57].mxu1  ;;  %v5104_v59 = vpop.f32.mrb[69].mxu0  ;;  %v2461_v40 = vadd.f32 %v4592_v26, %v2460_v44  ;;  %v2543_v0 = vadd.f32 %v4603_v62, %v2542_v47  ;;  %v6736_v44 = vld [vmem:[%s7287_s1 + $0x8] sm:$0xff] }
0x139e   :  { %v2463_v4 = vpop.f32.mrb[58].mxu1  ;;  %v2545_v39 = vpop.f32.mrb[70].mxu0 }
0x139f   :  { %v2464_v48 = vadd.f32 %v4592_v26, %v2463_v4  ;;  %v2546_v51 = vadd.f32 %v4603_v62, %v2545_v39  ;;  %v5089_v32 = vpop.f32.mrb[59].mxu1  ;;  %v5105_v52 = vpop.f32.mrb[71].mxu0 }
0x13a0   :  { %v6751_v32 = vld [vmem:[%s7287_s1 + $0x28] sm:$0xff] }
0x13a1   :  { %v6681_v38 = vpack.c.bf16 %v2464_v48, %v2461_v40  ;;  %v6683_v57 = vpack.c.bf16 %v2546_v51, %v2543_v0  ;;  %v6745_v40 = vld [vmem:[%s7287_s1 + $0x18] sm:$0xff] }
0x13a3   :  { %5318 = vmatprep.subr.msk.bf16.mxu1 %vm358_vm2, %v6683_v57  ;;  %5118 = vmatprep.mubr.msk.bf16.mxu1 %vm358_vm2, %v6681_v38  ;;  %v2580_v43 = vsel %vm358_vm2, %v6683_v57, 0 }
0x13a4   :  { %5115 = vmatpush3.bf16.xpose.msra.mxu1 %v2580_v43  ;;  %v6757_v43 = vld [vmem:[%s7287_s1 + $0x20] sm:$0xff]  ;;  %s7318_s1 = smov 104  }
0x13a6   :  { %v2468_v36 = vpop.f32.mrb[60].mxu1  ;;  %v2550_v56 = vpop.f32.mrb[72].mxu0 }
0x13a7   :  { %v2551_v23 = vadd.f32 %v4603_v62, %v2550_v56  ;;  %v5092_v30 = vpop.f32.mrb[61].mxu1  ;;  %v5108_v25 = vpop.f32.mrb[73].mxu0  ;;  %v2469_v12 = vadd.f32 %v4592_v26, %v2468_v36 }
0x13a8   :  { %v2471_v34 = vpop.f32.mrb[62].mxu1  ;;  %v2553_v60 = vpop.f32.mrb[74].mxu0 }
0x13a9   :  { %v6691_v53 = vpack.c.bf16 %v2551_v23, %v2551_v23  ;;  %v5093_v63 = vpop.f32.mrb[63].mxu1  ;;  %v5109_v19 = vpop.f32.mrb[75].mxu0  ;;  %v2472_v10 = vadd.f32 %v4592_v26, %v2471_v34  ;;  %v2554_v13 = vadd.f32 %v4603_v62, %v2553_v60  ;;  %v6697_v18 = vpack.c.bf16 %v2469_v12, %v2469_v12 }
0x13ab   :  { %5319 = vmatprep.subr.msk.bf16.mxu1 %vm358_vm2, %v6691_v53  ;;  %v2583_v1 = vsel %vm358_vm2, %v6691_v53, 0 }
0x13ac   :  { %5117 = vmatpush3.bf16.xpose.msra.mxu1 %v2583_v1 }
0x13ae   :  { %v2476_v16 = vpop.f32.mrb[64].mxu1  ;;  %v2558_v8 = vpop.f32.mrb[76].mxu0 }
0x13af   :  { %v2477_v15 = vadd.f32 %v4592_v26, %v2476_v16  ;;  %v2559_v31 = vadd.f32 %v4603_v62, %v2558_v8  ;;  %v5096_v33 = vpop.f32.mrb[65].mxu1  ;;  %v5112_v35 = vpop.f32.mrb[77].mxu0 }
0x13b0   :  { %v2479_v6 = vpop.f32.mrb[66].mxu1  ;;  %v2561_v14 = vpop.f32.mrb[78].mxu0 }
0x13b1   :  { %v6699_v20 = vpack.c.bf16 %v2477_v15, %v2472_v10  ;;  %v6701_v58 = vpack.c.bf16 %v2559_v31, %v2554_v13  ;;  %v2562_v41 = vadd.f32 %v4603_v62, %v2561_v14  ;;  %v5097_v49 = vpop.f32.mrb[67].mxu1  ;;  %v5113_v50 = vpop.f32.mrb[79].mxu0  ;;  %v2480_v22 = vadd.f32 %v4592_v26, %v2479_v6 }
0x13b3   :  { %v6703_v17 = vpack.c.bf16 %v2562_v41, %v2562_v41  ;;  %5119 = vmatmul.mubr.msk.bf16.vlgmr.msra.gmra.mrb[68].mxu1 %vm358_vm2, %v6697_v18  ;;  %5320 = vmatprep.subr.msk.bf16.mxu1 %vm358_vm2, %v6701_v58  ;;  %v2640_v55 = vsel %vm358_vm2, %v6701_v58, 0  ;;  %v6717_v9 = vpack.c.bf16 %v2480_v22, %v2480_v22 }
0x13b4   :  { %5123 = vmatpush3.bf16.xpose.msra.mxu1 %v2640_v55  ;;  %5126 = vmatprep.mubr.msk.bf16.mxu1 %vm358_vm2, %v6699_v20 }
0x13b5   :  { %5321 = vmatprep.subr.msk.bf16.mxu1 %vm358_vm2, %v6703_v17  ;;  %v2643_v28 = vsel %vm358_vm2, %v6703_v17, 0 }
0x13bc   :  { %5125 = vmatpush3.bf16.xpose.msra.mxu1 %v2643_v28 }
0x13c3   :  { %5127 = vmatmul.mubr.msk.bf16.vlgmr.msra.gmra.mrb[72].mxu1 %vm358_vm2, %v6717_v9 }
0x1486   :  { %v5120_v5 = vpop.f32.mrb[68].mxu1 }
0x1487   :  { %v2619_v46 = vpop.f32.mrb[69].mxu1  ;;  %v2628_v26 = vadd.f32 %v6730_v21, %v5120_v5 }
0x1488   :  { %v2620_v7 = vadd.f32 %v6724_v24, %v2619_v46  ;;  %v5121_v37 = vpop.f32.mrb[70].mxu1 }
0x1489   :  { %v2622_v45 = vpop.f32.mrb[71].mxu1  ;;  %v2699_v59 = vsel %vm479_vm3, %v2628_v26, -inf }
0x148a   :  { %v2623_v62 = vadd.f32 %v6736_v44, %v2622_v45  ;;  %v2693_v47 = vsel %vm479_vm3, %v2620_v7, -inf }
0x148b   :  { %2694 = vmax.xlane.f32.xlu1 %v2693_v47 }
0x148c   :  { %v2696_v27 = vsel %vm479_vm3, %v2623_v62, -inf }
0x148d   :  { %2697 = vmax.xlane.f32.xlu0 %v2696_v27 }
0x148f   :  { %2700 = vmax.xlane.f32.xlu1 %v2699_v59 }
0x1496   :  { %v5128_v4 = vpop.f32.mrb[72].mxu1 }
0x1497   :  { %v2679_v39 = vpop.f32.mrb[73].mxu1  ;;  %v2688_v52 = vadd.f32 %v6751_v32, %v5128_v4 }
0x1498   :  { %v2680_v0 = vadd.f32 %v6745_v40, %v2679_v39  ;;  %v5129_v48 = vpop.f32.mrb[74].mxu1 }
0x1499   :  { %v2682_v51 = vpop.f32.mrb[75].mxu1  ;;  %v2708_v30 = vsel %vm479_vm3, %v2688_v52, -inf }
0x149a   :  { %v2683_v36 = vadd.f32 %v6757_v43, %v2682_v51  ;;  %v2702_v56 = vsel %vm479_vm3, %v2680_v0, -inf }
0x149b   :  { %2703 = vmax.xlane.f32.xlu0 %v2702_v56 }
0x149c   :  { %v2705_v23 = vsel %vm479_vm3, %v2683_v36, -inf }
0x149d   :  { %2706 = vmax.xlane.f32.xlu1 %v2705_v23 }
0x149f   :  { %2709 = vmax.xlane.f32.xlu0 %v2708_v30 }
0x14ae   :  { %2765 = vrot.lane.b32.xlu1 %v6683_v57, %s5746_s19 }
0x1518   :  { %v2695_v25 = vpop.xlane.xlu1 %2694 }
0x1519   :  { %v2711_v60 = vsub.f32 %v2620_v7, %v2695_v25 }
0x151a   :  { %v2698_v34 = vpop.xlane.xlu0 %2697 }
0x151b   :  { %v2712_v63 = vsub.f32 %v2623_v62, %v2698_v34  ;;  %v2717_v16 = vmul.f32 1.442695, %v2711_v60 }
0x151c   :  { %v2701_v19 = vpop.xlane.xlu1 %2700 }
0x151d   :  { %v2719_v1 = vmul.f32 1.442695, %v2712_v63  ;;  %v2713_v12 = vsub.f32 %v2628_v26, %v2701_v19 }
0x151f   :  { %5612 = vpow2.f32 %v2719_v1  ;;  %v2721_v8 = vmul.f32 1.442695, %v2713_v12 }
0x1521   :  { %5614 = vpow2.f32 %v2721_v8 }
0x1522   :  { %5616 = vpow2.f32 %v2717_v16 }
0x1528   :  { %v2704_v41 = vpop.xlane.xlu0 %2703 }
0x1529   :  { %v6765_v10 = vpop.eup %5612  ;;  %v2714_v55 = vsub.f32 %v2680_v0, %v2704_v41 }
0x152a   :  { %v2707_v13 = vpop.xlane.xlu1 %2706  ;;  %v2732_v15 = vsel %vm479_vm3, %v6765_v10, 0.0 }
0x152b   :  { %v5615_v31 = vpop.eup %5614  ;;  %2733 = vadd.xlane.f32.xlu0 %v2732_v15  ;;  %v2723_v22 = vmul.f32 1.442695, %v2714_v55  ;;  %v2715_v46 = vsub.f32 %v2683_v36, %v2707_v13 }
0x152c   :  { %v2735_v33 = vsel %vm479_vm3, %v5615_v31, 0.0  ;;  %v5617_v35 = vpop.eup %5616  ;;  %v2710_v49 = vpop.xlane.xlu0 %2709 }
0x152d   :  { %2736 = vadd.xlane.f32.xlu1 %v2735_v33  ;;  %v2729_v14 = vsel %vm479_vm3, %v5617_v35, 0.0  ;;  %v2716_v50 = vsub.f32 %v2688_v52, %v2710_v49  ;;  %v2725_v45 = vmul.f32 1.442695, %v2715_v46 }
0x152e   :  { %v2766_v6 = vpop.permute.xlu1 %2765 }
0x152f   :  { %5130 = vmatprep.subr.bf16.mxu1 %v2766_v6  ;;  %v2727_v28 = vmul.f32 1.442695, %v2716_v50 }
0x1530   :  { %5131 = vmatpush3.bf16.msra.mxu1 %v2766_v6 }
0x1531   :  { %2730 = vadd.xlane.f32.xlu1 %v2729_v14  ;;  %5618 = vpow2.f32 %v2727_v28 }
0x1532   :  { %5620 = vpow2.f32 %v2723_v22 }
0x1533   :  { %5622 = vpow2.f32 %v2725_v45 }
0x153b   :  { %v6781_v5 = vpop.eup %5618 }
0x153c   :  { %v2744_v7 = vsel %vm479_vm3, %v6781_v5, 0.0  ;;  %v6785_v37 = vpop.eup %5620 }
0x153d   :  { %v2738_v26 = vsel %vm479_vm3, %v6785_v37, 0.0  ;;  %v5623_v62 = vpop.eup %5622 }
0x153e   :  { %v2741_v47 = vsel %vm479_vm3, %v5623_v62, 0.0 }
0x1541   :  { %2767 = vrot.lane.b32.xlu0 %v6691_v53, %s5746_s19 }
0x1542   :  { %2829 = vrot.lane.b32.xlu1 %v6701_v58, %s5746_s19 }
0x1546   :  { %2897 = vrot.lane.b32.xlu1 %v6683_v57, %s5747_s4 }
0x154a   :  { %2831 = vrot.lane.b32.xlu1 %v6703_v17, %s5746_s19  ;;  %s7319_s19 = smov 72  }
0x154e   :  { %2967 = vrot.lane.b32.xlu1 %v6701_v58, %s5747_s4 }
0x1560   :  { %2745 = vadd.xlane.f32.xlu0 %v2744_v7 }
0x1564   :  { %2739 = vadd.xlane.f32.xlu0 %v2738_v26 }
0x1572   :  { %2742 = vadd.xlane.f32.xlu1 %v2741_v47 }
0x157a   :  { %2899 = vrot.lane.b32.xlu0 %v6691_v53, %s5747_s4 }
0x157e   :  { %2893 = vrot.lane.b32.xlu0 %v6681_v38, %s5747_s4 }
0x1582   :  { %2969 = vrot.lane.b32.xlu0 %v6703_v17, %s5747_s4 }
0x1583   :  { %2895 = vrot.lane.b32.xlu1 %v6697_v18, %s5747_s4 }
0x1586   :  { %2965 = vrot.lane.b32.xlu0 %v6717_v9, %s5747_s4 }
0x1587   :  { %2963 = vrot.lane.b32.xlu1 %v6699_v20, %s5747_s4  ;;  %s7320_s4 = smov 16  }
0x15b8   :  { %v2734_v27 = vpop.xlane.xlu0 %2733 }
0x15ba   :  { %v2737_v59 = vpop.xlane.xlu1 %2736 }
0x15bb   :  { %5624 = vrcp.f32 %v2737_v59 }
0x15bc   :  { %v2768_v4 = vpop.permute.xlu0 %2767  ;;  %5626 = vrcp.f32 %v2734_v27 }
0x15bd   :  { %5322 = vmatprep.subr.msk.bf16.mxu1 %vm563_vm4, %v2768_v4  ;;  %v2777_v39 = vsel %vm563_vm4, %v2768_v4, 0 }
0x15be   :  { %v2731_v0 = vpop.xlane.xlu1 %2730  ;;  %5133 = vmatpush3.bf16.msra.mxu1 %v2777_v39 }
0x15bf   :  { %5628 = vrcp.f32 %v2731_v0 }
0x15c2   :  { %v2830_v48 = vpop.permute.xlu1 %2829 }
0x15c3   :  { %5138 = vmatprep.subr.bf16.mxu1 %v2830_v48 }
0x15c5   :  { %v5625_v51 = vpop.eup %5624 }
0x15c6   :  { %v2898_v52 = vpop.permute.xlu1 %2897  ;;  %v5627_v36 = vpop.eup %5626  ;;  %v2755_v30 = vmul.f32 %v5625_v51, %v5615_v31 }
0x15c7   :  { %5324 = vmatprep.subr.msk.bf16.mxu0 %vm358_vm2, %v2898_v52  ;;  %v2908_v56 = vsel %vm358_vm2, %v2898_v52, 0  ;;  %v2754_v34 = vmul.f32 %v5627_v36, %v6765_v10 }
0x15c8   :  { %5147 = vmatpush3.bf16.xpose.msra.mxu0 %v2908_v56  ;;  %v2760_v63 = vpack.c.bf16 %v2755_v30, %v2755_v30 }
0x15c9   :  { %v5629_v23 = vpop.eup %5628 }
0x15ca   :  { %v2753_v25 = vmul.f32 %v5629_v23, %v5617_v35  ;;  %v2832_v19 = vpop.permute.xlu1 %2831 }
0x15cb   :  { %v2841_v1 = vsel %vm563_vm4, %v2832_v19, 0 }
0x15cc   :  { %v2759_v60 = vpack.c.bf16 %v2754_v34, %v2753_v25 }
0x15ce   :  { %5134 = vmatprep.mubr.msk.bf16.mxu1 %vm479_vm3, %v2759_v60  ;;  %v2968_v12 = vpop.permute.xlu1 %2967 }
0x15cf   :  { %5135 = vmatmul.mubr.msk.bf16.vlgmr.msra.gmra.mrb[76].mxu1 %vm479_vm3, %v2760_v63  ;;  %v2978_v46 = vsel %vm358_vm2, %v2968_v12, 0 }
0x15d0   :  { %5139 = vmatpush3.bf16.msra.mxu1 %v2830_v48 }
0x15d1   :  { %5323 = vmatprep.subr.msk.bf16.mxu1 %vm563_vm4, %v2832_v19 }
0x15d4   :  { %5141 = vmatpush3.bf16.msra.mxu1 %v2841_v1 }
0x15d5   :  { %5326 = vmatprep.subr.msk.bf16.mxu1 %vm358_vm2, %v2968_v12 }
0x15ed   :  { %v2746_v16 = vpop.xlane.xlu0 %2745 }
0x15ee   :  { %5630 = vrcp.f32 %v2746_v16 }
0x15f1   :  { %v2740_v8 = vpop.xlane.xlu0 %2739 }
0x15f2   :  { %5632 = vrcp.f32 %v2740_v8 }
0x15f5   :  { %v2900_v13 = vpop.permute.xlu0 %2899 }
0x15f6   :  { %5325 = vmatprep.subr.msk.bf16.mxu0 %vm358_vm2, %v2900_v13  ;;  %v2911_v10 = vsel %vm358_vm2, %v2900_v13, 0 }
0x15f7   :  { %5149 = vmatpush3.bf16.xpose.msra.mxu0 %v2911_v10 }
0x15f8   :  { %v5631_v35 = vpop.eup %5630 }
0x15f9   :  { %v2894_v15 = vpop.permute.xlu0 %2893  ;;  %v2758_v41 = vmul.f32 %v5631_v35, %v6781_v5 }
0x15fa   :  { %5150 = vmatprep.mubr.msk.bf16.mxu0 %vm358_vm2, %v2894_v15 }
0x15fb   :  { %v2762_v28 = vpack.c.bf16 %v2758_v41, %v2758_v41 }
0x15fc   :  { %v5633_v6 = vpop.eup %5632 }
0x15fd   :  { %v2756_v49 = vmul.f32 %v5633_v6, %v6785_v37  ;;  %v2970_v7 = vpop.permute.xlu0 %2969 }
0x15fe   :  { %v2981_v5 = vsel %vm358_vm2, %v2970_v7, 0 }
0x15ff   :  { %v2743_v31 = vpop.xlane.xlu1 %2742 }
0x1600   :  { %5634 = vrcp.f32 %v2743_v31 }
0x1601   :  { %v2966_v37 = vpop.permute.xlu0 %2965 }
0x1603   :  { %v2896_v33 = vpop.permute.xlu1 %2895 }
0x1604   :  { %5151 = vmatmul.mubr.msk.bf16.vlgmr.msra.gmra.mrb[80].mxu0 %vm358_vm2, %v2896_v33 }
0x1607   :  { %v2964_v22 = vpop.permute.xlu1 %2963 }
0x160a   :  { %v5635_v14 = vpop.eup %5634 }
0x160b   :  { %v2757_v50 = vmul.f32 %v5635_v14, %v5623_v62 }
0x160d   :  { %v2761_v55 = vpack.c.bf16 %v2757_v50, %v2756_v49 }
0x160f   :  { %5142 = vmatprep.mubr.msk.bf16.mxu1 %vm479_vm3, %v2761_v55 }
0x1610   :  { %5143 = vmatmul.mubr.msk.bf16.vlgmr.msra.gmra.mrb[80].mxu1 %vm479_vm3, %v2762_v28 }
0x1611   :  { %5155 = vmatpush3.bf16.xpose.msra.mxu1 %v2978_v46  ;;  %5158 = vmatprep.mubr.msk.bf16.mxu1 %vm358_vm2, %v2964_v22 }
0x1612   :  { %5327 = vmatprep.subr.msk.bf16.mxu1 %vm358_vm2, %v2970_v7 }
0x1619   :  { %5157 = vmatpush3.bf16.xpose.msra.mxu1 %v2981_v5 }
0x1620   :  { %5159 = vmatmul.mubr.msk.bf16.vlgmr.msra.gmra.mrb[84].mxu1 %vm358_vm2, %v2966_v37 }
0x16a2   :  { %v6825_v45 = vpop.f32.mrb[76].mxu1 }
0x16a3   :  { %v6827_v26 = vpop.f32.mrb[77].mxu1 }
0x16a4   :  { %v5137_v62 = vpop.f32.mrb[78].mxu1 }
0x16a5   :  { %v6829_v47 = vpop.f32.mrb[79].mxu1 }
0x16d7   :  { %v5152_v27 = vpop.f32.mrb[80].mxu0 }
0x16d8   :  { %v2947_v59 = vpop.f32.mrb[81].mxu0  ;;  %v2956_v52 = vadd.f32 %v6730_v21, %v5152_v27 }
0x16d9   :  { %v2948_v4 = vadd.f32 %v6724_v24, %v2947_v59  ;;  %v5153_v39 = vpop.f32.mrb[82].mxu0 }
0x16da   :  { %v2950_v0 = vpop.f32.mrb[83].mxu0  ;;  %v3037_v56 = vsel %vm479_vm3, %v2956_v52, -inf }
0x16db   :  { %v2951_v48 = vadd.f32 %v6736_v44, %v2950_v0  ;;  %v3031_v51 = vsel %vm479_vm3, %v2948_v4, -inf }
0x16dc   :  { %3032 = vmax.xlane.f32.xlu1 %v3031_v51 }
0x16dd   :  { %v3034_v36 = vsel %vm479_vm3, %v2951_v48, -inf }
0x16de   :  { %3035 = vmax.xlane.f32.xlu0 %v3034_v36 }
0x16e2   :  { %3038 = vmax.xlane.f32.xlu0 %v3037_v56 }
0x16e3   :  { %v6837_v23 = vpop.f32.mrb[80].mxu1 }
0x16e4   :  { %v6839_v30 = vpop.f32.mrb[81].mxu1 }
0x16e5   :  { %v5145_v25 = vpop.f32.mrb[82].mxu1 }
0x16e6   :  { %v6841_v34 = vpop.f32.mrb[83].mxu1 }
0x16f3   :  { %v5160_v60 = vpop.f32.mrb[84].mxu1 }
0x16f4   :  { %v3017_v63 = vpop.f32.mrb[85].mxu1  ;;  %v3026_v16 = vadd.f32 %v6751_v32, %v5160_v60 }
0x16f5   :  { %v3018_v19 = vadd.f32 %v6745_v40, %v3017_v63  ;;  %v5161_v1 = vpop.f32.mrb[86].mxu1 }
0x16f6   :  { %v3020_v12 = vpop.f32.mrb[87].mxu1  ;;  %v3046_v15 = vsel %vm479_vm3, %v3026_v16, -inf }
0x16f7   :  { %v3021_v8 = vadd.f32 %v6757_v43, %v3020_v12  ;;  %v3040_v13 = vsel %vm479_vm3, %v3018_v19, -inf }
0x16f8   :  { %3041 = vmax.xlane.f32.xlu0 %v3040_v13 }
0x16f9   :  { %v3043_v10 = vsel %vm479_vm3, %v3021_v8, -inf }
0x16fa   :  { %3044 = vmax.xlane.f32.xlu1 %v3043_v10 }
0x16fc   :  { %3047 = vmax.xlane.f32.xlu0 %v3046_v15 }
0x1769   :  { %v3033_v31 = vpop.xlane.xlu1 %3032 }
0x176a   :  { %v3049_v33 = vsub.f32 %v2948_v4, %v3033_v31 }
0x176b   :  { %v3036_v35 = vpop.xlane.xlu0 %3035 }
0x176c   :  { %v3055_v6 = vmul.f32 1.442695, %v3049_v33  ;;  %v3050_v14 = vsub.f32 %v2951_v48, %v3036_v35 }
0x176e   :  { %5636 = vpow2.f32 %v3055_v6  ;;  %v3057_v41 = vmul.f32 1.442695, %v3050_v14 }
0x176f   :  { %v3039_v49 = vpop.xlane.xlu0 %3038 }
0x1770   :  { %5638 = vpow2.f32 %v3057_v41  ;;  %v3051_v50 = vsub.f32 %v2956_v52, %v3039_v49 }
0x1772   :  { %v3059_v55 = vmul.f32 1.442695, %v3051_v50 }
0x1774   :  { %5640 = vpow2.f32 %v3059_v55 }
0x1778   :  { %v5637_v28 = vpop.eup %5636 }
0x1779   :  { %v3067_v22 = vsel %vm479_vm3, %v5637_v28, 0.0 }
0x177a   :  { %v5639_v46 = vpop.eup %5638  ;;  %3068 = vadd.xlane.f32.xlu1 %v3067_v22 }
0x177b   :  { %v3070_v7 = vsel %vm479_vm3, %v5639_v46, 0.0 }
0x177c   :  { %3071 = vadd.xlane.f32.xlu0 %v3070_v7 }
0x177e   :  { %v5641_v5 = vpop.eup %5640 }
0x177f   :  { %v3073_v37 = vsel %vm479_vm3, %v5641_v5, 0.0 }
0x1780   :  { %3074 = vadd.xlane.f32.xlu1 %v3073_v37 }
0x1785   :  { %v3042_v62 = vpop.xlane.xlu0 %3041 }
0x1786   :  { %v3052_v4 = vsub.f32 %v3018_v19, %v3042_v62 }
0x1787   :  { %v3045_v48 = vpop.xlane.xlu1 %3044 }
0x1788   :  { %v3061_v0 = vmul.f32 1.442695, %v3052_v4  ;;  %v3053_v52 = vsub.f32 %v3021_v8, %v3045_v48 }
0x1789   :  { %v3048_v27 = vpop.xlane.xlu0 %3047 }
0x178a   :  { %v3054_v59 = vsub.f32 %v3026_v16, %v3048_v27  ;;  %v3063_v25 = vmul.f32 1.442695, %v3053_v52 }
0x178c   :  { %v3065_v39 = vmul.f32 1.442695, %v3054_v59 }
0x178e   :  { %5642 = vpow2.f32 %v3065_v39 }
0x178f   :  { %5644 = vpow2.f32 %v3061_v0 }
0x1790   :  { %5646 = vpow2.f32 %v3063_v25 }
0x1791   :  { %3101 = vrot.lane.b32.xlu1 %v6683_v57, %s5748_s20 }
0x1792   :  { %3103 = vrot.lane.b32.xlu0 %v6691_v53, %s5748_s20 }
0x1795   :  { %3163 = vrot.lane.b32.xlu1 %v6701_v58, %s5748_s20 }
0x1798   :  { %v6864_v51 = vpop.eup %5642 }
0x1799   :  { %3229 = vrot.lane.b32.xlu1 %v6683_v57, %s5749_s21  ;;  %v3082_v36 = vsel %vm479_vm3, %v6864_v51, 0.0  ;;  %v6868_v56 = vpop.eup %5644 }
0x179a   :  { %v3076_v60 = vsel %vm479_vm3, %v6868_v56, 0.0  ;;  %v6872_v63 = vpop.eup %5646 }
0x179b   :  { %v3079_v19 = vsel %vm479_vm3, %v6872_v63, 0.0 }
0x179d   :  { %3165 = vrot.lane.b32.xlu1 %v6703_v17, %s5748_s20  ;;  %s7321_s20 = smov 8  }
0x17a1   :  { %3297 = vrot.lane.b32.xlu1 %v6701_v58, %s5749_s21 }
0x17b1   :  { %3083 = vadd.xlane.f32.xlu0 %v3082_v36 }
0x17b5   :  { %3077 = vadd.xlane.f32.xlu0 %v3076_v60 }
0x17c5   :  { %3080 = vadd.xlane.f32.xlu1 %v3079_v19 }
0x17cb   :  { %3231 = vrot.lane.b32.xlu0 %v6691_v53, %s5749_s21 }
0x17cf   :  { %3225 = vrot.lane.b32.xlu0 %v6681_v38, %s5749_s21 }
0x17d3   :  { %3299 = vrot.lane.b32.xlu0 %v6703_v17, %s5749_s21 }
0x17d6   :  { %3227 = vrot.lane.b32.xlu1 %v6697_v18, %s5749_s21 }
0x17d7   :  { %3295 = vrot.lane.b32.xlu0 %v6717_v9, %s5749_s21 }
0x17da   :  { %3293 = vrot.lane.b32.xlu1 %v6699_v20, %s5749_s21 }
0x1807   :  { %v3069_v1 = vpop.xlane.xlu1 %3068 }
0x1808   :  { %5648 = vrcp.f32 %v3069_v1 }
0x1809   :  { %v3072_v12 = vpop.xlane.xlu0 %3071 }
0x180a   :  { %5650 = vrcp.f32 %v3072_v12 }
0x180d   :  { %v3075_v16 = vpop.xlane.xlu1 %3074  ;;  %v3104_v10 = vpop.permute.xlu0 %3103 }
0x180e   :  { %5652 = vrcp.f32 %v3075_v16  ;;  %v3113_v6 = vsel %vm563_vm4, %v3104_v10, 0 }
0x1811   :  { %v3102_v8 = vpop.permute.xlu1 %3101 }
0x1812   :  { %v5649_v13 = vpop.eup %5648  ;;  %5162 = vmatprep.subr.bf16.mxu0 %v3102_v8 }
0x1813   :  { %5163 = vmatpush3.bf16.msra.mxu0 %v3102_v8  ;;  %v3091_v33 = vmul.f32 %v5649_v13, %v5637_v28 }
0x1814   :  { %v5651_v15 = vpop.eup %5650  ;;  %5328 = vmatprep.subr.msk.bf16.mxu0 %vm563_vm4, %v3104_v10 }
0x1815   :  { %v3164_v31 = vpop.permute.xlu1 %3163  ;;  %v3092_v35 = vmul.f32 %v5651_v15, %v5639_v46 }
0x1816   :  { %5170 = vmatprep.subr.bf16.mxu1 %v3164_v31 }
0x1817   :  { %5165 = vmatpush3.bf16.msra.mxu0 %v3113_v6  ;;  %5171 = vmatpush3.bf16.msra.mxu1 %v3164_v31  ;;  %v3097_v14 = vpack.c.bf16 %v3092_v35, %v3091_v33 }
0x1818   :  { %v5653_v41 = vpop.eup %5652 }
0x1819   :  { %v3093_v49 = vmul.f32 %v5653_v41, %v5641_v5  ;;  %5166 = vmatprep.mubr.msk.bf16.mxu0 %vm479_vm3, %v3097_v14  ;;  %v3230_v50 = vpop.permute.xlu1 %3229 }
0x181a   :  { %5330 = vmatprep.subr.msk.bf16.mxu0 %vm358_vm2, %v3230_v50  ;;  %v3240_v46 = vsel %vm358_vm2, %v3230_v50, 0 }
0x181b   :  { %v3098_v55 = vpack.c.bf16 %v3093_v49, %v3093_v49 }
0x181d   :  { %5167 = vmatmul.mubr.msk.bf16.vlgmr.msra.gmra.mrb[84].mxu0 %vm479_vm3, %v3098_v55  ;;  %v3166_v22 = vpop.permute.xlu1 %3165 }
0x181e   :  { %v3175_v28 = vsel %vm563_vm4, %v3166_v22, 0  ;;  %5329 = vmatprep.subr.msk.bf16.mxu1 %vm563_vm4, %v3166_v22 }
0x181f   :  { %5173 = vmatpush3.bf16.msra.mxu1 %v3175_v28 }
0x1820   :  { %5179 = vmatpush3.bf16.xpose.msra.mxu0 %v3240_v46 }
0x1821   :  { %v3298_v7 = vpop.permute.xlu1 %3297 }
0x1822   :  { %5332 = vmatprep.subr.msk.bf16.mxu1 %vm358_vm2, %v3298_v7  ;;  %v3308_v12 = vsel %vm358_vm2, %v3298_v7, 0 }
0x183e   :  { %v3084_v5 = vpop.xlane.xlu0 %3083 }
0x183f   :  { %5654 = vrcp.f32 %v3084_v5 }
0x1842   :  { %v3078_v37 = vpop.xlane.xlu0 %3077 }
0x1843   :  { %5656 = vrcp.f32 %v3078_v37 }
0x1846   :  { %v3232_v62 = vpop.permute.xlu0 %3231 }
0x1847   :  { %v3243_v27 = vsel %vm358_vm2, %v3232_v62, 0  ;;  %5331 = vmatprep.subr.msk.bf16.mxu0 %vm358_vm2, %v3232_v62 }
0x1848   :  { %5181 = vmatpush3.bf16.xpose.msra.mxu0 %v3243_v27 }
0x1849   :  { %v5655_v0 = vpop.eup %5654 }
0x184a   :  { %v3226_v59 = vpop.permute.xlu0 %3225  ;;  %v3096_v36 = vmul.f32 %v5655_v0, %v6864_v51 }
0x184b   :  { %5182 = vmatprep.mubr.msk.bf16.mxu0 %vm358_vm2, %v3226_v59 }
0x184c   :  { %v3100_v1 = vpack.c.bf16 %v3096_v36, %v3096_v36 }
0x184d   :  { %v5657_v48 = vpop.eup %5656 }
0x184e   :  { %v3094_v25 = vmul.f32 %v5657_v48, %v6868_v56  ;;  %v3300_v8 = vpop.permute.xlu0 %3299 }
0x184f   :  { %v3311_v51 = vsel %vm358_vm2, %v3300_v8, 0 }
0x1852   :  { %v3081_v4 = vpop.xlane.xlu1 %3080  ;;  %v3296_v56 = vpop.permute.xlu0 %3295 }
0x1853   :  { %5658 = vrcp.f32 %v3081_v4 }
0x1856   :  { %v3228_v39 = vpop.permute.xlu1 %3227 }
0x1857   :  { %5183 = vmatmul.mubr.msk.bf16.vlgmr.msra.gmra.mrb[88].mxu0 %vm358_vm2, %v3228_v39 }
0x185a   :  { %v3294_v16 = vpop.permute.xlu1 %3293 }
0x185d   :  { %v5659_v52 = vpop.eup %5658 }
0x185e   :  { %v3095_v60 = vmul.f32 %v5659_v52, %v6872_v63 }
0x1860   :  { %v3099_v19 = vpack.c.bf16 %v3095_v60, %v3094_v25 }
0x1862   :  { %5174 = vmatprep.mubr.msk.bf16.mxu1 %vm479_vm3, %v3099_v19 }
0x1863   :  { %5175 = vmatmul.mubr.msk.bf16.vlgmr.msra.gmra.mrb[88].mxu1 %vm479_vm3, %v3100_v1 }
0x1864   :  { %5187 = vmatpush3.bf16.xpose.msra.mxu1 %v3308_v12  ;;  %5190 = vmatprep.mubr.msk.bf16.mxu1 %vm358_vm2, %v3294_v16 }
0x1865   :  { %5333 = vmatprep.subr.msk.bf16.mxu1 %vm358_vm2, %v3300_v8 }
0x186c   :  { %5189 = vmatpush3.bf16.xpose.msra.mxu1 %v3311_v51 }
0x1873   :  { %5191 = vmatmul.mubr.msk.bf16.vlgmr.msra.gmra.mrb[92].mxu1 %vm358_vm2, %v3296_v56 }
0x18f0   :  { %v6911_v63 = vpop.f32.mrb[84].mxu0 }
0x18f1   :  { %v6913_v13 = vpop.f32.mrb[85].mxu0 }
0x18f2   :  { %v5169_v10 = vpop.f32.mrb[86].mxu0 }
0x18f3   :  { %v6915_v15 = vpop.f32.mrb[87].mxu0 }
0x18f4   :  { %v5399_v31 = vpack.i.bf16 %v6915_v15, %v6913_v13 }
0x192a   :  { %v5184_v33 = vpop.f32.mrb[88].mxu0 }
0x192b   :  { %v3279_v35 = vpop.f32.mrb[89].mxu0  ;;  %v3288_v55 = vadd.f32 %v6730_v21, %v5184_v33 }
0x192c   :  { %v3280_v6 = vadd.f32 %v6724_v24, %v3279_v35  ;;  %v5185_v14 = vpop.f32.mrb[90].mxu0 }
0x192d   :  { %v3282_v41 = vpop.f32.mrb[91].mxu0  ;;  %v3367_v28 = vsel %vm479_vm3, %v3288_v55, -inf }
0x192e   :  { %v3283_v49 = vadd.f32 %v6736_v44, %v3282_v41  ;;  %v3361_v50 = vsel %vm479_vm3, %v3280_v6, -inf }
0x192f   :  { %3362 = vmax.xlane.f32.xlu1 %v3361_v50 }
0x1930   :  { %v3364_v22 = vsel %vm479_vm3, %v3283_v49, -inf }
0x1931   :  { %3365 = vmax.xlane.f32.xlu0 %v3364_v22 }
0x1935   :  { %3368 = vmax.xlane.f32.xlu0 %v3367_v28 }
0x1936   :  { %v6925_v46 = vpop.f32.mrb[88].mxu1 }
0x1937   :  { %v6927_v7 = vpop.f32.mrb[89].mxu1 }
0x1938   :  { %v5414_v5 = vpack.i.bf16 %v6927_v7, %v6911_v63  ;;  %v5177_v37 = vpop.f32.mrb[90].mxu1 }
0x1939   :  { %v6931_v62 = vpop.f32.mrb[91].mxu1 }
0x193a   :  { %v5429_v27 = vpack.i.bf16 %v6925_v46, %v6931_v62 }
0x1946   :  { %v5192_v59 = vpop.f32.mrb[92].mxu1 }
0x1947   :  { %v3347_v4 = vpop.f32.mrb[93].mxu1  ;;  %v3356_v52 = vadd.f32 %v6751_v32, %v5192_v59 }
0x1948   :  { %v3348_v39 = vadd.f32 %v6745_v40, %v3347_v4  ;;  %v5193_v0 = vpop.f32.mrb[94].mxu1 }
0x1949   :  { %v3350_v48 = vpop.f32.mrb[95].mxu1  ;;  %v3376_v19 = vsel %vm479_vm3, %v3356_v52, -inf }
0x194a   :  { %v3351_v36 = vadd.f32 %v6757_v43, %v3350_v48  ;;  %v3370_v25 = vsel %vm479_vm3, %v3348_v39, -inf }
0x194b   :  { %3371 = vmax.xlane.f32.xlu0 %v3370_v25 }
0x194c   :  { %v3373_v60 = vsel %vm479_vm3, %v3351_v36, -inf }
0x194d   :  { %3374 = vmax.xlane.f32.xlu1 %v3373_v60 }
0x194f   :  { %3377 = vmax.xlane.f32.xlu0 %v3376_v19 }
0x19bc   :  { %v3363_v1 = vpop.xlane.xlu1 %3362 }
0x19bd   :  { %v3379_v12 = vsub.f32 %v3280_v6, %v3363_v1 }
0x19be   :  { %v3366_v16 = vpop.xlane.xlu0 %3365 }
0x19bf   :  { %v3385_v8 = vmul.f32 1.442695, %v3379_v12  ;;  %v3380_v51 = vsub.f32 %v3283_v49, %v3366_v16 }
0x19c1   :  { %5660 = vpow2.f32 %v3385_v8  ;;  %v3387_v56 = vmul.f32 1.442695, %v3380_v51 }
0x19c2   :  { %v3369_v10 = vpop.xlane.xlu0 %3368 }
0x19c3   :  { %5662 = vpow2.f32 %v3387_v56  ;;  %v3381_v33 = vsub.f32 %v3288_v55, %v3369_v10 }
0x19c5   :  { %v3389_v35 = vmul.f32 1.442695, %v3381_v33 }
0x19c7   :  { %5664 = vpow2.f32 %v3389_v35 }
0x19cb   :  { %v5661_v14 = vpop.eup %5660 }
0x19cc   :  { %v3397_v41 = vsel %vm479_vm3, %v5661_v14, 0.0 }
0x19cd   :  { %v5663_v50 = vpop.eup %5662  ;;  %3398 = vadd.xlane.f32.xlu1 %v3397_v41 }
0x19ce   :  { %v3400_v22 = vsel %vm479_vm3, %v5663_v50, 0.0 }
0x19cf   :  { %3401 = vadd.xlane.f32.xlu0 %v3400_v22 }
0x19d1   :  { %v5665_v28 = vpop.eup %5664 }
0x19d2   :  { %v3403_v6 = vsel %vm479_vm3, %v5665_v28, 0.0 }
0x19d3   :  { %3404 = vadd.xlane.f32.xlu1 %v3403_v6 }
0x19d8   :  { %v3372_v49 = vpop.xlane.xlu0 %3371 }
0x19d9   :  { %v3382_v59 = vsub.f32 %v3348_v39, %v3372_v49 }
0x19da   :  { %v3375_v48 = vpop.xlane.xlu1 %3374 }
0x19db   :  { %v3391_v0 = vmul.f32 1.442695, %v3382_v59  ;;  %v3383_v60 = vsub.f32 %v3351_v36, %v3375_v48 }
0x19dc   :  { %v3378_v55 = vpop.xlane.xlu0 %3377 }
0x19dd   :  { %v3384_v37 = vsub.f32 %v3356_v52, %v3378_v55  ;;  %v3393_v52 = vmul.f32 1.442695, %v3383_v60 }
0x19df   :  { %v3395_v4 = vmul.f32 1.442695, %v3384_v37 }
0x19e1   :  { %5666 = vpow2.f32 %v3395_v4 }
0x19e2   :  { %5668 = vpow2.f32 %v3391_v0 }
0x19e3   :  { %5670 = vpow2.f32 %v3393_v52 }
0x19e4   :  { %3431 = vrot.lane.b32.xlu1 %v6683_v57, %s5750_s22 }
0x19e5   :  { %3433 = vrot.lane.b32.xlu0 %v6691_v53, %s5750_s22 }
0x19e8   :  { %3493 = vrot.lane.b32.xlu1 %v6701_v58, %s5750_s22 }
0x19eb   :  { %v6956_v25 = vpop.eup %5666 }
0x19ec   :  { %3559 = vrot.lane.b32.xlu1 %v6683_v57, %s7318_s1  ;;  %v3412_v19 = vsel %vm479_vm3, %v6956_v25, 0.0  ;;  %v6960_v1 = vpop.eup %5668 }
0x19ed   :  { %v3406_v39 = vsel %vm479_vm3, %v6960_v1, 0.0  ;;  %v6964_v12 = vpop.eup %5670 }
0x19ee   :  { %v3409_v16 = vsel %vm479_vm3, %v6964_v12, 0.0 }
0x19f0   :  { %3495 = vrot.lane.b32.xlu1 %v6703_v17, %s5750_s22 }
0x19f4   :  { %3627 = vrot.lane.b32.xlu1 %v6701_v58, %s7318_s1 }
0x1a04   :  { %3413 = vadd.xlane.f32.xlu0 %v3412_v19 }
0x1a08   :  { %3407 = vadd.xlane.f32.xlu0 %v3406_v39 }
0x1a18   :  { %3410 = vadd.xlane.f32.xlu1 %v3409_v16 }
0x1a1e   :  { %3561 = vrot.lane.b32.xlu0 %v6691_v53, %s7318_s1 }
0x1a22   :  { %3555 = vrot.lane.b32.xlu0 %v6681_v38, %s7318_s1 }
0x1a26   :  { %3629 = vrot.lane.b32.xlu0 %v6703_v17, %s7318_s1 }
0x1a29   :  { %3557 = vrot.lane.b32.xlu1 %v6697_v18, %s7318_s1 }
0x1a2a   :  { %3625 = vrot.lane.b32.xlu0 %v6717_v9, %s7318_s1 }
0x1a2d   :  { %3623 = vrot.lane.b32.xlu1 %v6699_v20, %s7318_s1 }
0x1a5a   :  { %v3399_v36 = vpop.xlane.xlu1 %3398 }
0x1a5b   :  { %5672 = vrcp.f32 %v3399_v36 }
0x1a5c   :  { %v3402_v8 = vpop.xlane.xlu0 %3401 }
0x1a5d   :  { %5674 = vrcp.f32 %v3402_v8 }
0x1a60   :  { %v3405_v51 = vpop.xlane.xlu1 %3404  ;;  %v3434_v10 = vpop.permute.xlu0 %3433 }
0x1a61   :  { %5676 = vrcp.f32 %v3405_v51  ;;  %v3443_v41 = vsel %vm563_vm4, %v3434_v10, 0 }
0x1a64   :  { %v3432_v56 = vpop.permute.xlu1 %3431 }
0x1a65   :  { %v5673_v38 = vpop.eup %5672  ;;  %5194 = vmatprep.subr.bf16.mxu0 %v3432_v56 }
0x1a66   :  { %5195 = vmatpush3.bf16.msra.mxu0 %v3432_v56  ;;  %v3421_v35 = vmul.f32 %v5673_v38, %v5661_v14 }
0x1a67   :  { %v5675_v33 = vpop.eup %5674  ;;  %5334 = vmatprep.subr.msk.bf16.mxu0 %vm563_vm4, %v3434_v10 }
0x1a68   :  { %v3494_v18 = vpop.permute.xlu1 %3493  ;;  %v3422_v9 = vmul.f32 %v5675_v33, %v5663_v50 }
0x1a69   :  { %5202 = vmatprep.subr.bf16.mxu1 %v3494_v18 }
0x1a6a   :  { %5197 = vmatpush3.bf16.msra.mxu0 %v3443_v41  ;;  %5203 = vmatpush3.bf16.msra.mxu1 %v3494_v18  ;;  %v3427_v20 = vpack.c.bf16 %v3422_v9, %v3421_v35 }
0x1a6b   :  { %v5677_v22 = vpop.eup %5676 }
0x1a6c   :  { %v3423_v6 = vmul.f32 %v5677_v22, %v5665_v28  ;;  %5198 = vmatprep.mubr.msk.bf16.mxu0 %vm479_vm3, %v3427_v20  ;;  %v3560_v49 = vpop.permute.xlu1 %3559 }
0x1a6d   :  { %5336 = vmatprep.subr.msk.bf16.mxu0 %vm358_vm2, %v3560_v49  ;;  %v3570_v50 = vsel %vm358_vm2, %v3560_v49, 0 }
0x1a6e   :  { %v3428_v55 = vpack.c.bf16 %v3423_v6, %v3423_v6 }
0x1a70   :  { %5199 = vmatmul.mubr.msk.bf16.vlgmr.msra.gmra.mrb[92].mxu0 %vm479_vm3, %v3428_v55  ;;  %v3496_v37 = vpop.permute.xlu1 %3495 }
0x1a71   :  { %v3505_v14 = vsel %vm563_vm4, %v3496_v37, 0  ;;  %5335 = vmatprep.subr.msk.bf16.mxu1 %vm563_vm4, %v3496_v37 }
0x1a72   :  { %5205 = vmatpush3.bf16.msra.mxu1 %v3505_v14 }
0x1a73   :  { %5211 = vmatpush3.bf16.xpose.msra.mxu0 %v3570_v50 }
0x1a74   :  { %v3628_v59 = vpop.permute.xlu1 %3627 }
0x1a75   :  { %5338 = vmatprep.subr.msk.bf16.mxu1 %vm358_vm2, %v3628_v59  ;;  %v3638_v33 = vsel %vm358_vm2, %v3628_v59, 0 }
0x1a91   :  { %v3414_v28 = vpop.xlane.xlu0 %3413 }
0x1a92   :  { %5678 = vrcp.f32 %v3414_v28 }
0x1a95   :  { %v3408_v4 = vpop.xlane.xlu0 %3407 }
0x1a96   :  { %5680 = vrcp.f32 %v3408_v4 }
0x1a99   :  { %v3562_v0 = vpop.permute.xlu0 %3561 }
0x1a9a   :  { %v3573_v48 = vsel %vm358_vm2, %v3562_v0, 0  ;;  %5337 = vmatprep.subr.msk.bf16.mxu0 %vm358_vm2, %v3562_v0 }
0x1a9b   :  { %5213 = vmatpush3.bf16.xpose.msra.mxu0 %v3573_v48 }
0x1a9c   :  { %v5679_v39 = vpop.eup %5678 }
0x1a9d   :  { %v3556_v60 = vpop.permute.xlu0 %3555  ;;  %v3426_v8 = vmul.f32 %v5679_v39, %v6956_v25 }
0x1a9e   :  { %5214 = vmatprep.mubr.msk.bf16.mxu0 %vm358_vm2, %v3556_v60 }
0x1a9f   :  { %v3430_v10 = vpack.c.bf16 %v3426_v8, %v3426_v8 }
0x1aa0   :  { %v5681_v16 = vpop.eup %5680 }
0x1aa1   :  { %v3424_v51 = vmul.f32 %v5681_v16, %v6960_v1  ;;  %v3630_v35 = vpop.permute.xlu0 %3629 }
0x1aa2   :  { %v3641_v25 = vsel %vm358_vm2, %v3630_v35, 0 }
0x1aa5   :  { %v3411_v19 = vpop.xlane.xlu1 %3410  ;;  %v3626_v1 = vpop.permute.xlu0 %3625 }
0x1aa6   :  { %5682 = vrcp.f32 %v3411_v19 }
0x1aa9   :  { %v3558_v52 = vpop.permute.xlu1 %3557 }
0x1aaa   :  { %5215 = vmatmul.mubr.msk.bf16.vlgmr.msra.gmra.mrb[96].mxu0 %vm358_vm2, %v3558_v52 }
0x1aad   :  { %v3624_v18 = vpop.permute.xlu1 %3623 }
0x1ab0   :  { %v5683_v36 = vpop.eup %5682 }
0x1ab1   :  { %v3425_v56 = vmul.f32 %v5683_v36, %v6964_v12 }
0x1ab3   :  { %v3429_v38 = vpack.c.bf16 %v3425_v56, %v3424_v51 }
0x1ab5   :  { %5206 = vmatprep.mubr.msk.bf16.mxu1 %vm479_vm3, %v3429_v38 }
0x1ab6   :  { %5207 = vmatmul.mubr.msk.bf16.vlgmr.msra.gmra.mrb[96].mxu1 %vm479_vm3, %v3430_v10 }
0x1ab7   :  { %5219 = vmatpush3.bf16.xpose.msra.mxu1 %v3638_v33  ;;  %5222 = vmatprep.mubr.msk.bf16.mxu1 %vm358_vm2, %v3624_v18 }
0x1ab8   :  { %5339 = vmatprep.subr.msk.bf16.mxu1 %vm358_vm2, %v3630_v35 }
0x1abf   :  { %5221 = vmatpush3.bf16.xpose.msra.mxu1 %v3641_v25 }
0x1ac6   :  { %5223 = vmatmul.mubr.msk.bf16.vlgmr.msra.gmra.mrb[100].mxu1 %vm358_vm2, %v3626_v1 }
0x1b43   :  { %v7003_v12 = vpop.f32.mrb[92].mxu0 }
0x1b44   :  { %v7005_v9 = vpop.f32.mrb[93].mxu0 }
0x1b45   :  { %v5201_v41 = vpop.f32.mrb[94].mxu0 }
0x1b46   :  { %v7007_v20 = vpop.f32.mrb[95].mxu0 }
0x1b47   :  { %v5404_v22 = vpack.i.bf16 %v7007_v20, %v7005_v9 }
0x1b7d   :  { %v5216_v6 = vpop.f32.mrb[96].mxu0 }
0x1b7e   :  { %v3609_v49 = vpop.f32.mrb[97].mxu0  ;;  %v3618_v28 = vadd.f32 %v6730_v21, %v5216_v6 }
0x1b7f   :  { %v3610_v55 = vadd.f32 %v6724_v24, %v3609_v49  ;;  %v5217_v37 = vpop.f32.mrb[98].mxu0 }
0x1b80   :  { %v3612_v14 = vpop.f32.mrb[99].mxu0  ;;  %v3697_v0 = vsel %vm479_vm3, %v3618_v28, -inf }
0x1b81   :  { %v3613_v50 = vadd.f32 %v6736_v44, %v3612_v14  ;;  %v3691_v59 = vsel %vm479_vm3, %v3610_v55, -inf }
0x1b82   :  { %3692 = vmax.xlane.f32.xlu1 %v3691_v59 }
0x1b83   :  { %v3694_v4 = vsel %vm479_vm3, %v3613_v50, -inf }
0x1b84   :  { %3695 = vmax.xlane.f32.xlu0 %v3694_v4 }
0x1b88   :  { %3698 = vmax.xlane.f32.xlu0 %v3697_v0 }
0x1b89   :  { %v7017_v48 = vpop.f32.mrb[96].mxu1 }
0x1b8a   :  { %v7019_v60 = vpop.f32.mrb[97].mxu1 }
0x1b8b   :  { %v5419_v24 = vpack.i.bf16 %v7019_v60, %v7003_v12  ;;  %v5209_v19 = vpop.f32.mrb[98].mxu1 }
0x1b8c   :  { %v7023_v44 = vpop.f32.mrb[99].mxu1 }
0x1b8d   :  { %v5434_v52 = vpack.i.bf16 %v7017_v48, %v7023_v44 }
0x1b99   :  { %v5224_v21 = vpop.f32.mrb[100].mxu1 }
0x1b9a   :  { %v3677_v39 = vpop.f32.mrb[101].mxu1  ;;  %v3686_v51 = vadd.f32 %v6751_v32, %v5224_v21 }
0x1b9b   :  { %v3678_v16 = vadd.f32 %v6745_v40, %v3677_v39  ;;  %v5225_v36 = vpop.f32.mrb[102].mxu1 }
0x1b9c   :  { %v3680_v8 = vpop.f32.mrb[103].mxu1  ;;  %v3706_v33 = vsel %vm479_vm3, %v3686_v51, -inf }
0x1b9d   :  { %v3681_v56 = vadd.f32 %v6757_v43, %v3680_v8  ;;  %v3700_v38 = vsel %vm479_vm3, %v3678_v16, -inf }
0x1b9e   :  { %3701 = vmax.xlane.f32.xlu0 %v3700_v38 }
0x1b9f   :  { %v3703_v10 = vsel %vm479_vm3, %v3681_v56, -inf }
0x1ba0   :  { %3704 = vmax.xlane.f32.xlu1 %v3703_v10 }
0x1ba2   :  { %3707 = vmax.xlane.f32.xlu0 %v3706_v33 }
0x1c0f   :  { %v3693_v18 = vpop.xlane.xlu1 %3692 }
0x1c10   :  { %v3709_v35 = vsub.f32 %v3610_v55, %v3693_v18 }
0x1c11   :  { %v3696_v25 = vpop.xlane.xlu0 %3695 }
0x1c12   :  { %v3715_v1 = vmul.f32 1.442695, %v3709_v35  ;;  %v3710_v40 = vsub.f32 %v3613_v50, %v3696_v25 }
0x1c14   :  { %5684 = vpow2.f32 %v3715_v1  ;;  %v3717_v41 = vmul.f32 1.442695, %v3710_v40 }
0x1c15   :  { %v3699_v6 = vpop.xlane.xlu0 %3698 }
0x1c16   :  { %5686 = vpow2.f32 %v3717_v41  ;;  %v3711_v32 = vsub.f32 %v3618_v28, %v3699_v6 }
0x1c18   :  { %v3719_v43 = vmul.f32 1.442695, %v3711_v32 }
0x1c1a   :  { %5688 = vpow2.f32 %v3719_v43 }
0x1c1e   :  { %v5685_v49 = vpop.eup %5684 }
0x1c1f   :  { %v3727_v37 = vsel %vm479_vm3, %v5685_v49, 0.0 }
0x1c20   :  { %v5687_v14 = vpop.eup %5686  ;;  %3728 = vadd.xlane.f32.xlu1 %v3727_v37 }
0x1c21   :  { %v3730_v59 = vsel %vm479_vm3, %v5687_v14, 0.0 }
0x1c22   :  { %3731 = vadd.xlane.f32.xlu0 %v3730_v59 }
0x1c24   :  { %v5689_v4 = vpop.eup %5688 }
0x1c25   :  { %v3733_v55 = vsel %vm479_vm3, %v5689_v4, 0.0 }
0x1c26   :  { %3734 = vadd.xlane.f32.xlu1 %v3733_v55 }
0x1c2b   :  { %v3702_v50 = vpop.xlane.xlu0 %3701 }
0x1c2c   :  { %v3712_v0 = vsub.f32 %v3678_v16, %v3702_v50 }
0x1c2d   :  { %v3705_v16 = vpop.xlane.xlu1 %3704 }
0x1c2e   :  { %v3721_v39 = vmul.f32 1.442695, %v3712_v0  ;;  %v5460_v0 = vld [vmem:[%s7288_s8 + $0x10] sm:$0xff]  }
0x1c2f   :  { %v3708_v19 = vpop.xlane.xlu0 %3707 }
0x1c30   :  { %v3714_v21 = vsub.f32 %v3686_v51, %v3708_v19  ;;  %v3713_v51 = vsub.f32 %v3681_v56, %v3705_v16  ;;  %v5461_v19 = vld [vmem:[%s7288_s8 + $0x18] sm:$0xff]  }
0x1c32   :  { %v3725_v28 = vmul.f32 1.442695, %v3714_v21  ;;  %v3723_v33 = vmul.f32 1.442695, %v3713_v51 }
0x1c34   :  { %5690 = vpow2.f32 %v3725_v28 }
0x1c35   :  { %5692 = vpow2.f32 %v3721_v39 }
0x1c36   :  { %5694 = vpow2.f32 %v3723_v33 }
0x1c37   :  { %3761 = vrot.lane.b32.xlu1 %v6683_v57, %s7319_s19 }
0x1c3b   :  { %3823 = vrot.lane.b32.xlu1 %v6701_v58, %s7319_s19 }
0x1c3e   :  { %v5691_v36 = vpop.eup %5690 }
0x1c3f   :  { %v3742_v8 = vsel %vm479_vm3, %v5691_v36, 0.0  ;;  %v5693_v38 = vpop.eup %5692 }
0x1c40   :  { %3743 = vadd.xlane.f32.xlu0 %v3742_v8  ;;  %v3736_v10 = vsel %vm479_vm3, %v5693_v38, 0.0  ;;  %v5695_v18 = vpop.eup %5694 }
0x1c41   :  { %v3739_v57 = vsel %vm479_vm3, %v5695_v18, 0.0 }
0x1c44   :  { %3737 = vadd.xlane.f32.xlu0 %v3736_v10 }
0x1c5a   :  { %3763 = vrot.lane.b32.xlu0 %v6691_v53, %s7319_s19 }
0x1c5e   :  { %5405 = vrot.lane.b32.xlu0 %v5404_v22, %s7320_s4 }
0x1c5f   :  { %3740 = vadd.xlane.f32.xlu1 %v3739_v57 }
0x1c62   :  { %5415 = vrot.lane.b32.xlu0 %v5414_v5, %s7321_s20 }
0x1c70   :  { %3825 = vrot.lane.b32.xlu1 %v6703_v17, %s7319_s19 }
0x1c74   :  { %5400 = vrot.lane.b32.xlu1 %v5399_v31, %s7321_s20 }
0x1cad   :  { %v3729_v53 = vpop.xlane.xlu1 %3728 }
0x1cae   :  { %5696 = vrcp.f32 %v3729_v53 }
0x1caf   :  { %v3732_v58 = vpop.xlane.xlu0 %3731 }
0x1cb0   :  { %5698 = vrcp.f32 %v3732_v58 }
0x1cb3   :  { %v3735_v9 = vpop.xlane.xlu1 %3734 }
0x1cb4   :  { %5700 = vrcp.f32 %v3735_v9 }
0x1cb7   :  { %v3762_v20 = vpop.permute.xlu1 %3761 }
0x1cb8   :  { %v5697_v22 = vpop.eup %5696  ;;  %5226 = vmatprep.subr.bf16.mxu0 %v3762_v20 }
0x1cb9   :  { %5227 = vmatpush3.bf16.msra.mxu0 %v3762_v20  ;;  %v3751_v7 = vmul.f32 %v5697_v22, %v5685_v49 }
0x1cba   :  { %v5699_v56 = vpop.eup %5698 }
0x1cbb   :  { %v3824_v63 = vpop.permute.xlu1 %3823  ;;  %v3752_v5 = vmul.f32 %v5699_v56, %v5687_v14 }
0x1cbc   :  { %5234 = vmatprep.subr.bf16.mxu1 %v3824_v63 }
0x1cbd   :  { %5235 = vmatpush3.bf16.msra.mxu1 %v3824_v63  ;;  %v3757_v17 = vpack.c.bf16 %v3752_v5, %v3751_v7 }
0x1cbe   :  { %v5701_v15 = vpop.eup %5700 }
0x1cbf   :  { %5230 = vmatprep.mubr.msk.bf16.mxu0 %vm479_vm3, %v3757_v17  ;;  %v3753_v35 = vmul.f32 %v5701_v15, %v5689_v4 }
0x1cc1   :  { %v3758_v40 = vpack.c.bf16 %v3753_v35, %v3753_v35 }
0x1ccd   :  { %v3744_v13 = vpop.xlane.xlu0 %3743 }
0x1cce   :  { %5702 = vrcp.f32 %v3744_v13 }
0x1cd1   :  { %v3738_v31 = vpop.xlane.xlu0 %3737 }
0x1cd2   :  { %5704 = vrcp.f32 %v3738_v31 }
0x1cd5   :  { %v3764_v25 = vpop.permute.xlu0 %3763 }
0x1cd6   :  { %v3773_v1 = vsel %vm563_vm4, %v3764_v25, 0  ;;  %5340 = vmatprep.subr.msk.bf16.mxu0 %vm563_vm4, %v3764_v25 }
0x1cd7   :  { %5229 = vmatpush3.bf16.msra.mxu0 %v3773_v1 }
0x1cd8   :  { %5242 = vmatprep.subr.bf16.mxu0 %v5744_v42  ;;  %v5703_v43 = vpop.eup %5702 }
0x1cd9   :  { %v3756_v14 = vmul.f32 %v5703_v43, %v5691_v36  ;;  %v5406_v46 = vpop.permute.xlu0 %5405 }
0x1cda   :  { %5231 = vmatmul.mubr.msk.bf16.vlgmr.msra.gmra.mrb[100].mxu0 %vm479_vm3, %v3758_v40  ;;  %v5408_v57 = vunpack.i.h.bf16 %v5406_v46  ;;  %v5407_v53 = vunpack.i.l.bf16 %v5406_v46 }
0x1cdb   :  { %5246 = vmatprep.mubr.msk.bf16.mxu0 %vm5745_vm1, %v5744_v42  ;;  %v3760_v50 = vpack.c.bf16 %v3756_v14, %v3756_v14  ;;  %5243 = vmatpush3.bf16.msra.mxu0 %v5460_v0 }
0x1cdc   :  { %v5705_v49 = vpop.eup %5704  ;;  %5244 = vmatprep.subr.bf16.mxu0 %v5744_v42 }
0x1cdd   :  { %v3754_v59 = vmul.f32 %v5705_v49, %v5693_v38 }
0x1cdf   :  { %5245 = vmatpush3.bf16.msra.mxu0 %v5461_v19 }
0x1ce0   :  { %5274 = vmatprep.subr.bf16.mxu0 %v5744_v42 }
0x1cec   :  { %v3741_v41 = vpop.xlane.xlu1 %3740 }
0x1ced   :  { %5706 = vrcp.f32 %v3741_v41 }
0x1cf0   :  { %v3826_v6 = vpop.permute.xlu1 %3825 }
0x1cf1   :  { %v3835_v32 = vsel %vm563_vm4, %v3826_v6, 0  ;;  %5341 = vmatprep.subr.msk.bf16.mxu1 %vm563_vm4, %v3826_v6 }
0x1cf2   :  { %5237 = vmatpush3.bf16.msra.mxu1 %v3835_v32 }
0x1cf3   :  { %5258 = vmatprep.subr.bf16.mxu1 %v5744_v42 }
0x1cf4   :  { %v5401_v12 = vpop.permute.xlu1 %5400 }
0x1cf5   :  { %v5403_v60 = vunpack.i.h.bf16 %v5401_v12 }
0x1cf7   :  { %v5707_v37 = vpop.eup %5706  ;;  %v3958_v62 = vsel %vm358_vm2, %v6829_v47, %v5403_v60  ;;  %v5416_v47 = vpop.permute.xlu0 %5415 }
0x1cf8   :  { %v3755_v4 = vmul.f32 %v5707_v37, %v5695_v18  ;;  %v3964_v48 = vsel %vm1751_vm5, %v3958_v62, %v5408_v57  ;;  %v5418_v63 = vunpack.i.h.bf16 %v5416_v47  ;;  %v5417_v7 = vunpack.i.l.bf16 %v5416_v47 }
0x1cfa   :  { %v3759_v55 = vpack.c.bf16 %v3755_v4, %v3754_v59  ;;  %v3960_v31 = vsel %vm358_vm2, %v6839_v30, %v5418_v63  ;;  %v3959_v35 = vsel %vm358_vm2, %v6825_v45, %v5417_v7 }
0x1cfc   :  { %5238 = vmatprep.mubr.msk.bf16.mxu1 %vm479_vm3, %v3759_v55 }
0x1cfd   :  { %5239 = vmatmul.mubr.msk.bf16.vlgmr.msra.gmra.mrb[104].mxu1 %vm479_vm3, %v3760_v50 }
0x1cfe   :  { %5262 = vmatprep.mubr.msk.bf16.mxu1 %vm5745_vm1, %v5744_v42 }
0x1dad   :  { %v5232_v21 = vpop.f32.mrb[100].mxu0 }
0x1dae   :  { %v3809_v39 = vpop.f32.mrb[101].mxu0 }
0x1daf   :  { %v5233_v28 = vpop.f32.mrb[102].mxu0 }
0x1db0   :  { %v3812_v36 = vpop.f32.mrb[103].mxu0 }
0x1db1   :  { %v5409_v8 = vpack.i.bf16 %v3812_v36, %v3809_v39 }
0x1db3   :  { %5410 = vrot.lane.b32.xlu1 %v5409_v8, %s7322_s5 }
0x1db7   :  { %5420 = vrot.lane.b32.xlu1 %v5419_v24, %s7320_s4  ;;  %v5402_v24 = vunpack.i.l.bf16 %v5401_v12 }
0x1dbb   :  { %5430 = vrot.lane.b32.xlu1 %v5429_v27, %s7321_s20  ;;  %v3957_v27 = vsel %vm358_vm2, %v6827_v26, %v5402_v24 }
0x1dbc   :  { %v3963_v22 = vsel %vm1751_vm5, %v3957_v27, %v5407_v53 }
0x1dd0   :  { %v5240_v38 = vpop.f32.mrb[104].mxu1 }
0x1dd1   :  { %v3871_v10 = vpop.f32.mrb[105].mxu1 }
0x1dd2   :  { %v5424_v16 = vpack.i.bf16 %v3871_v10, %v5232_v21  ;;  %v5241_v51 = vpop.f32.mrb[106].mxu1 }
0x1dd3   :  { %v3874_v33 = vpop.f32.mrb[107].mxu1 }
0x1dd4   :  { %v5439_v18 = vpack.i.bf16 %v5240_v38, %v3874_v33  ;;  %5425 = vrot.lane.b32.xlu0 %v5424_v16, %s7322_s5 }
0x1dd6   :  { %5440 = vrot.lane.b32.xlu1 %v5439_v18, %s7322_s5 }
0x1dd8   :  { %5435 = vrot.lane.b32.xlu0 %v5434_v52, %s7320_s4 }
0x1e25   :  { %v5411_v58 = vpop.permute.xlu1 %5410 }
0x1e26   :  { %v5413_v9 = vunpack.i.h.bf16 %v5411_v58  ;;  %v5412_v20 = vunpack.i.l.bf16 %v5411_v58 }
0x1e28   :  { %v3969_v44 = vsel %vm479_vm3, %v3963_v22, %v5412_v20  ;;  %v3970_v52 = vsel %vm479_vm3, %v3964_v48, %v5413_v9 }
0x1e29   :  { %v3975_v56 = vpack.c.bf16 %v3970_v52, %v3969_v44  ;;  %v5421_v26 = vpop.permute.xlu1 %5420 }
0x1e2a   :  { %v5423_v5 = vunpack.i.h.bf16 %v5421_v26  ;;  %v5422_v17 = vunpack.i.l.bf16 %v5421_v26 }
0x1e2b   :  { %5247 = vmatmul.mubr.msk.bf16.vlgmr.msra.gmra.mrb[104].mxu0 %vm74_vm0, %v3975_v56 }
0x1e2c   :  { %5250 = vmatprep.mubr.msk.bf16.mxu0 %vm5745_vm1, %v5744_v42  ;;  %v3966_v40 = vsel %vm1751_vm5, %v3960_v31, %v5423_v5  ;;  %v3965_v41 = vsel %vm1751_vm5, %v3959_v35, %v5422_v17 }
0x1e2d   :  { %v5431_v13 = vpop.permute.xlu1 %5430 }
0x1e2e   :  { %v5433_v6 = vunpack.i.h.bf16 %v5431_v13  ;;  %v5432_v32 = vunpack.i.l.bf16 %v5431_v13 }
0x1e30   :  { %v3962_v45 = vsel %vm358_vm2, %v6837_v23, %v5433_v6  ;;  %v3961_v55 = vsel %vm358_vm2, %v6841_v34, %v5432_v32  ;;  %v4646_v23 = vld [vmem:[%s7289_s9 + $0x1] ss:$0 sm:$0xff] }
0x1e46   :  { %v5426_v15 = vpop.permute.xlu0 %5425 }
0x1e47   :  { %v5428_v25 = vunpack.i.h.bf16 %v5426_v15  ;;  %v5427_v1 = vunpack.i.l.bf16 %v5426_v15 }
0x1e48   :  { %v5441_v37 = vpop.permute.xlu1 %5440 }
0x1e49   :  { %v3971_v43 = vsel %vm479_vm3, %v3965_v41, %v5427_v1  ;;  %v3972_v49 = vsel %vm479_vm3, %v3966_v40, %v5428_v25  ;;  %v5443_v50 = vunpack.i.h.bf16 %v5441_v37  ;;  %v5442_v0 = vunpack.i.l.bf16 %v5441_v37 }
0x1e4a   :  { %v3976_v14 = vpack.c.bf16 %v3972_v49, %v3971_v43  ;;  %v5436_v59 = vpop.permute.xlu0 %5435  ;;  %v5462_v43 = vld [vmem:[%s7290_s12 + $0x10] sm:$0xff]  }
0x1e4b   :  { %v5438_v4 = vunpack.i.h.bf16 %v5436_v59  ;;  %v5437_v30 = vunpack.i.l.bf16 %v5436_v59  ;;  %5259 = vmatpush3.bf16.msra.mxu1 %v5462_v43  ;;  %v5463_v59 = vld [vmem:[%s7290_s12 + $0x18] sm:$0xff]  }
0x1e4c   :  { %5251 = vmatmul.mubr.msk.bf16.gmra.mrb[108].mxu0 %vm74_vm0, %v3976_v14  ;;  %5260 = vmatprep.subr.bf16.mxu1 %v5744_v42 }
0x1e4d   :  { %v3967_v19 = vsel %vm1751_vm5, %v3961_v55, %v5437_v30  ;;  %v3968_v21 = vsel %vm1751_vm5, %v3962_v45, %v5438_v4  ;;  %5254 = vmatprep.mubr.msk.bf16.mxu0 %vm5745_vm1, %v5744_v42 }
0x1e4e   :  { %v3973_v39 = vsel %vm479_vm3, %v3967_v19, %v5442_v0  ;;  %v3974_v28 = vsel %vm479_vm3, %v3968_v21, %v5443_v50 }
0x1e4f   :  { %v3977_v36 = vpack.c.bf16 %v3974_v28, %v3973_v39  ;;  %5261 = vmatpush3.bf16.msra.mxu1 %v5463_v59 }
0x1e54   :  { %5255 = vmatmul.mubr.msk.bf16.gmra.mrb[112].mxu0 %vm74_vm0, %v3977_v36 }
0x1e55   :  { %5282 = vmatprep.mubr.msk.bf16.mxu0 %vm5745_vm1, %v5744_v42 }
0x1efe   :  { %v4046_v34 = vpop.f32.mrb[104].mxu0 }
0x1eff   :  { %v4047_v8 = vadd.f32 %v4646_v23, %v4046_v34  ;;  %v5248_v38 = vpop.f32.mrb[105].mxu0  ;;  %v5465_v34 = vld [vmem:[%s7291_s14 + $0x28] sm:$0xff]  }
0x1f00   :  { %v4049_v10 = vpop.f32.mrb[106].mxu0 }
0x1f01   :  { %v7133_v16 = vadd.f32 %v4047_v8, %v6578_v3  ;;  %v4050_v51 = vadd.f32 %v4646_v23, %v4049_v10  ;;  %v5249_v33 = vpop.f32.mrb[107].mxu0 }
0x1f03   :  { %v7136_v18 = vadd.f32 %v4050_v51, %v6582_v54  ;;  %v4079_v12 = vsel %vm74_vm0, %v7133_v16, 0.0 }
0x1f04   :  { %4080 = vadd.xlane.f32.xlu0 %v4079_v12 }
0x1f05   :  { %v4082_v60 = vsel %vm74_vm0, %v7136_v18, 0.0 }
0x1f06   :  { %4083 = vadd.xlane.f32.xlu1 %v4082_v60 }
0x1f1f   :  { %v4054_v24 = vpop.f32.mrb[108].mxu0 }
0x1f20   :  { %v4055_v46 = vadd.f32 %v4646_v23, %v4054_v24  ;;  %v5252_v62 = vpop.f32.mrb[109].mxu0  ;;  %v4654_v24 = vld [vmem:[%s7292_s10 + $0x1] ss:$0 sm:$0xff] }
0x1f21   :  { %v4057_v27 = vpop.f32.mrb[110].mxu0 }
0x1f22   :  { %v7143_v3 = vadd.f32 %v4055_v46, %v6587_v29  ;;  %v4058_v57 = vadd.f32 %v4646_v23, %v4057_v27  ;;  %v5253_v53 = vpop.f32.mrb[111].mxu0 }
0x1f23   :  { %v4655_v53 = vld [vmem:[%s7293_s11 + $0x1] ss:$0 sm:$0xff] }
0x1f24   :  { %v7146_v54 = vadd.f32 %v4058_v57, %v6591_v61  ;;  %v4085_v58 = vsel %vm74_vm0, %v7143_v3, 0.0 }
0x1f25   :  { %4086 = vadd.xlane.f32.xlu0 %v4085_v58 }
0x1f26   :  { %v4088_v48 = vsel %vm74_vm0, %v7146_v54, 0.0 }
0x1f27   :  { %v4062_v9 = vpop.f32.mrb[112].mxu0 }
0x1f28   :  { %v4063_v20 = vadd.f32 %v4646_v23, %v4062_v9  ;;  %v5256_v22 = vpop.f32.mrb[113].mxu0 }
0x1f29   :  { %4089 = vadd.xlane.f32.xlu0 %v4088_v48  ;;  %v4065_v44 = vpop.f32.mrb[114].mxu0 }
0x1f2a   :  { %v7153_v29 = vadd.f32 %v4063_v20, %v6596_v2  ;;  %v4066_v52 = vadd.f32 %v4646_v23, %v4065_v44  ;;  %v5257_v56 = vpop.f32.mrb[115].mxu0  ;;  %v5464_v23 = vld [vmem:[%s7291_s14 + $0x20] sm:$0xff]  }
0x1f2b   :  { %5275 = vmatpush3.bf16.msra.mxu0 %v5464_v23 }
0x1f2c   :  { %v7156_v61 = vadd.f32 %v4066_v52, %v6600_v11  ;;  %v4091_v26 = vsel %vm74_vm0, %v7153_v29, 0.0  ;;  %5276 = vmatprep.subr.bf16.mxu0 %v5744_v42 }
0x1f2d   :  { %4092 = vadd.xlane.f32.xlu0 %v4091_v26 }
0x1f2e   :  { %v4094_v47 = vsel %vm74_vm0, %v7156_v61, 0.0 }
0x1f2f   :  { %4095 = vadd.xlane.f32.xlu1 %v4094_v47  ;;  %5277 = vmatpush3.bf16.msra.mxu0 %v5465_v34 }
0x1f30   :  { %5278 = vmatprep.subr.bf16.mxu0 %v5744_v42 }
0x1f91   :  { %v4081_v63 = vpop.xlane.xlu0 %4080 }
0x1f92   :  { %v4097_v7 = vmul.f32 0.03125, %v4081_v63 }
0x1f93   :  { %v4084_v5 = vpop.xlane.xlu1 %4083 }
0x1f94   :  { %v4103_v17 = vsub.f32 %v7133_v16, %v4097_v7  ;;  %v4098_v2 = vmul.f32 0.03125, %v4084_v5 }
0x1f96   :  { %v4104_v13 = vsub.f32 %v7136_v18, %v4098_v2  ;;  %v4109_v15 = vmul.f32 %v4103_v17, %v4103_v17 }
0x1f98   :  { %v4115_v11 = vsel %vm74_vm0, %v4109_v15, 0.0  ;;  %v4110_v31 = vmul.f32 %v4104_v13, %v4104_v13 }
0x1f99   :  { %4116 = vadd.xlane.f32.xlu0 %v4115_v11 }
0x1f9a   :  { %v4118_v35 = vsel %vm74_vm0, %v4110_v31, 0.0 }
0x1f9b   :  { %4119 = vadd.xlane.f32.xlu1 %v4118_v35 }
0x1fb2   :  { %v4087_v25 = vpop.xlane.xlu0 %4086 }
0x1fb3   :  { %v4099_v1 = vmul.f32 0.03125, %v4087_v25 }
0x1fb5   :  { %v7167_v40 = vsub.f32 %v7143_v3, %v4099_v1 }
0x1fb6   :  { %v4090_v41 = vpop.xlane.xlu0 %4089 }
0x1fb7   :  { %v4100_v6 = vmul.f32 0.03125, %v4090_v41  ;;  %v4111_v32 = vmul.f32 %v7167_v40, %v7167_v40 }
0x1fb9   :  { %v7175_v49 = vsub.f32 %v7146_v54, %v4100_v6  ;;  %v4121_v37 = vsel %vm74_vm0, %v4111_v32, 0.0 }
0x1fba   :  { %4122 = vadd.xlane.f32.xlu0 %v4121_v37  ;;  %v4093_v14 = vpop.xlane.xlu0 %4092 }
0x1fbb   :  { %v4101_v4 = vmul.f32 0.03125, %v4093_v14  ;;  %v4112_v30 = vmul.f32 %v7175_v49, %v7175_v49 }
0x1fbc   :  { %v4096_v45 = vpop.xlane.xlu1 %4095 }
0x1fbd   :  { %v4107_v55 = vsub.f32 %v7153_v29, %v4101_v4  ;;  %v4102_v50 = vmul.f32 0.03125, %v4096_v45  ;;  %v4124_v0 = vsel %vm74_vm0, %v4112_v30, 0.0 }
0x1fbe   :  { %4125 = vadd.xlane.f32.xlu1 %v4124_v0  ;;  %v4661_v0 = vld [vmem:[%s7294_s13 + $0x1] ss:$0 sm:$0xff] }
0x1fbf   :  { %v4108_v19 = vsub.f32 %v7156_v61, %v4102_v50  ;;  %v4113_v21 = vmul.f32 %v4107_v55, %v4107_v55 }
0x1fc1   :  { %v4127_v39 = vsel %vm74_vm0, %v4113_v21, 0.0  ;;  %v4114_v28 = vmul.f32 %v4108_v19, %v4108_v19 }
0x1fc2   :  { %4128 = vadd.xlane.f32.xlu0 %v4127_v39 }
0x1fc3   :  { %v4130_v36 = vsel %vm74_vm0, %v4114_v28, 0.0 }
0x1fc4   :  { %4131 = vadd.xlane.f32.xlu1 %v4130_v36 }
0x2026   :  { %v4117_v8 = vpop.xlane.xlu0 %4116 }
0x2027   :  { %v4133_v38 = vmul.f32 0.03125, %v4117_v8 }
0x2028   :  { %v4120_v10 = vpop.xlane.xlu1 %4119 }
0x2029   :  { %v4139_v51 = vadd.f32 1e-05, %v4133_v38  ;;  %v4134_v33 = vmul.f32 0.03125, %v4120_v10 }
0x202b   :  { %5708 = vrsqrt.f32 %v4139_v51  ;;  %v4140_v12 = vadd.f32 1e-05, %v4134_v33 }
0x202d   :  { %5710 = vrsqrt.f32 %v4140_v12 }
0x2035   :  { %v5709_v60 = vpop.eup %5708 }
0x2036   :  { %v4151_v46 = vmul.f32 %v5709_v60, %v4103_v17 }
0x2037   :  { %v5711_v62 = vpop.eup %5710 }
0x2038   :  { %v4163_v27 = vmul.f32 %v4654_v24, %v4151_v46  ;;  %v4152_v57 = vmul.f32 %v5711_v62, %v4104_v13 }
0x203a   :  { %v4164_v58 = vmul.f32 %v4654_v24, %v4152_v57  ;;  %v4175_v9 = vadd.f32 %v4655_v53, %v4163_v27 }
0x203c   :  { %v4176_v20 = vadd.f32 %v4655_v53, %v4164_v58 }
0x203e   :  { %v4181_v22 = vpack.c.bf16 %v4176_v20, %v4175_v9 }
0x2040   :  { %5263 = vmatmul.mubr.msk.bf16.vlgmr.msra.gmra.mrb[108].mxu1 %vm74_vm0, %v4181_v22 }
0x2041   :  { %5266 = vmatprep.mubr.msk.bf16.mxu1 %vm5745_vm1, %v5744_v42 }
0x2047   :  { %v4123_v48 = vpop.xlane.xlu0 %4122 }
0x2048   :  { %v4135_v44 = vmul.f32 0.03125, %v4123_v48 }
0x204a   :  { %v4141_v52 = vadd.f32 1e-05, %v4135_v44 }
0x204b   :  { %v4126_v56 = vpop.xlane.xlu1 %4125 }
0x204c   :  { %5712 = vrsqrt.f32 %v4141_v52  ;;  %v4136_v26 = vmul.f32 0.03125, %v4126_v56  ;;  %v4676_v56 = vld [vmem:[%s7295_s15 + $0x1] ss:$0 sm:$0xff] }
0x204e   :  { %v4142_v47 = vadd.f32 1e-05, %v4136_v26 }
0x204f   :  { %v4129_v63 = vpop.xlane.xlu0 %4128 }
0x2050   :  { %5714 = vrsqrt.f32 %v4142_v47  ;;  %v4137_v7 = vmul.f32 0.03125, %v4129_v63 }
0x2051   :  { %v4132_v5 = vpop.xlane.xlu1 %4131 }
0x2052   :  { %v4143_v17 = vadd.f32 1e-05, %v4137_v7  ;;  %v4138_v2 = vmul.f32 0.03125, %v4132_v5 }
0x2054   :  { %5716 = vrsqrt.f32 %v4143_v17  ;;  %v4144_v13 = vadd.f32 1e-05, %v4138_v2 }
0x2056   :  { %v5713_v15 = vpop.eup %5712  ;;  %5718 = vrsqrt.f32 %v4144_v13 }
0x2057   :  { %v4153_v11 = vmul.f32 %v5713_v15, %v7167_v40 }
0x2059   :  { %v4165_v25 = vmul.f32 %v4654_v24, %v4153_v11 }
0x205a   :  { %v5715_v31 = vpop.eup %5714 }
0x205b   :  { %v4154_v35 = vmul.f32 %v5715_v31, %v7175_v49  ;;  %v4177_v32 = vadd.f32 %v4655_v53, %v4165_v25  ;;  %v5466_v49 = vld [vmem:[%s7291_s14 + $0x30] sm:$0xff]  }
0x205c   :  { %5279 = vmatpush3.bf16.msra.mxu0 %v5466_v49 }
0x205d   :  { %v4166_v1 = vmul.f32 %v4654_v24, %v4154_v35  ;;  %5280 = vmatprep.subr.bf16.mxu0 %v5744_v42 }
0x205e   :  { %v5717_v41 = vpop.eup %5716 }
0x205f   :  { %v4155_v6 = vmul.f32 %v5717_v41, %v4107_v55  ;;  %v4178_v43 = vadd.f32 %v4655_v53, %v4166_v1  ;;  %v5467_v55 = vld [vmem:[%s7291_s14 + $0x38] sm:$0xff]  }
0x2060   :  { %v5719_v37 = vpop.eup %5718  ;;  %5281 = vmatpush3.bf16.msra.mxu0 %v5467_v55 }
0x2061   :  { %v4156_v14 = vmul.f32 %v5719_v37, %v4108_v19  ;;  %v4182_v59 = vpack.c.bf16 %v4178_v43, %v4177_v32  ;;  %v4167_v4 = vmul.f32 %v4654_v24, %v4155_v6 }
0x2063   :  { %5267 = vmatmul.mubr.msk.bf16.gmra.mrb[112].mxu1 %vm74_vm0, %v4182_v59  ;;  %v4168_v30 = vmul.f32 %v4654_v24, %v4156_v14  ;;  %v4179_v45 = vadd.f32 %v4655_v53, %v4167_v4 }
0x2064   :  { %5270 = vmatprep.mubr.msk.bf16.mxu1 %vm5745_vm1, %v5744_v42 }
0x2065   :  { %v4180_v40 = vadd.f32 %v4655_v53, %v4168_v30 }
0x2067   :  { %v4183_v50 = vpack.c.bf16 %v4180_v40, %v4179_v45 }
0x206b   :  { %5271 = vmatmul.mubr.msk.bf16.gmra.mrb[116].mxu1 %vm74_vm0, %v4183_v50 }
0x2113   :  { %v4252_v19 = vpop.f32.mrb[108].mxu1 }
0x2114   :  { %v4253_v21 = vadd.f32 %v4661_v0, %v4252_v19  ;;  %v5264_v39 = vpop.f32.mrb[109].mxu1 }
0x2115   :  { %v4255_v28 = vpop.f32.mrb[110].mxu1 }
0x2116   :  { %v4256_v36 = vadd.f32 %v4661_v0, %v4255_v28  ;;  %v5265_v23 = vpop.f32.mrb[111].mxu1  ;;  %v4275_v34 = vmax.f32 %v4253_v21, 0.0 }
0x2118   :  { %v4276_v8 = vmax.f32 %v4256_v36, 0.0 }
0x211a   :  { %v4281_v38 = vpack.c.bf16 %v4276_v8, %v4275_v34 }
0x211c   :  { %5283 = vmatmul.mubr.msk.bf16.vlgmr.msra.gmra.mrb[116].mxu0 %vm2106_vm6, %v4281_v38 }
0x211d   :  { %5286 = vmatprep.mubr.msk.bf16.mxu0 %vm5745_vm1, %v5744_v42 }
0x2136   :  { %v4260_v10 = vpop.f32.mrb[112].mxu1 }
0x2137   :  { %v4261_v51 = vadd.f32 %v4661_v0, %v4260_v10  ;;  %v5268_v33 = vpop.f32.mrb[113].mxu1 }
0x2138   :  { %v4263_v12 = vpop.f32.mrb[114].mxu1 }
0x2139   :  { %v4264_v60 = vadd.f32 %v4661_v0, %v4263_v12  ;;  %v5269_v24 = vpop.f32.mrb[115].mxu1  ;;  %v4277_v46 = vmax.f32 %v4261_v51, 0.0 }
0x213b   :  { %v4278_v62 = vmax.f32 %v4264_v60, 0.0 }
0x213d   :  { %v4282_v27 = vpack.c.bf16 %v4278_v62, %v4277_v46 }
0x213e   :  { %v4268_v57 = vpop.f32.mrb[116].mxu1 }
0x213f   :  { %v4269_v53 = vadd.f32 %v4661_v0, %v4268_v57  ;;  %v5272_v58 = vpop.f32.mrb[117].mxu1  ;;  %5287 = vmatmul.mubr.msk.bf16.gmra.mrb[120].mxu0 %vm2106_vm6, %v4282_v27 }
0x2140   :  { %v4271_v9 = vpop.f32.mrb[118].mxu1  ;;  %5290 = vmatprep.mubr.msk.bf16.mxu0 %vm5745_vm1, %v5744_v42 }
0x2141   :  { %v4272_v20 = vadd.f32 %v4661_v0, %v4271_v9  ;;  %v5273_v22 = vpop.f32.mrb[119].mxu1  ;;  %v4279_v48 = vmax.f32 %v4269_v53, 0.0 }
0x2143   :  { %v4280_v44 = vmax.f32 %v4272_v20, 0.0 }
0x2145   :  { %v4283_v52 = vpack.c.bf16 %v4280_v44, %v4279_v48 }
0x2147   :  { %5291 = vmatmul.mubr.msk.bf16.gmra.mrb[124].mxu0 %vm2106_vm6, %v4283_v52 }
0x21ef   :  { %v4368_v26 = vpop.f32.mrb[116].mxu0 }
0x21f0   :  { %v4369_v47 = vadd.f32 %v4676_v56, %v4368_v26  ;;  %v5284_v63 = vpop.f32.mrb[117].mxu0 }
0x21f1   :  { %v4371_v7 = vpop.f32.mrb[118].mxu0 }
0x21f2   :  { %v4391_v5 = vadd.f32 %v4369_v47, %v7133_v16  ;;  %v4372_v17 = vadd.f32 %v4676_v56, %v4371_v7  ;;  %v5285_v2 = vpop.f32.mrb[119].mxu0  ;;  %v4686_v7 = vld [vmem:[%s7296_s16 + $0x1] ss:$0 sm:$0xff] }
0x21f3   :  { %v4687_v2 = vld [vmem:[%s7297_s17 + $0x1] ss:$0 sm:$0xff] }
0x21f4   :  { %v4392_v42 = vadd.f32 %v4372_v17, %v7136_v18  ;;  %v4401_v13 = vsel %vm74_vm0, %v4391_v5, 0.0 }
0x21f5   :  { %4402 = vadd.xlane.f32.xlu0 %v4401_v13 }
0x21f6   :  { %v4404_v15 = vsel %vm74_vm0, %v4392_v42, 0.0 }
0x21f7   :  { %4405 = vadd.xlane.f32.xlu1 %v4404_v15 }
0x2212   :  { %v4376_v11 = vpop.f32.mrb[120].mxu0 }
0x2213   :  { %v4377_v31 = vadd.f32 %v4676_v56, %v4376_v11  ;;  %v5288_v35 = vpop.f32.mrb[121].mxu0 }
0x2214   :  { %v4379_v25 = vpop.f32.mrb[122].mxu0 }
0x2215   :  { %v4393_v1 = vadd.f32 %v4377_v31, %v7143_v3  ;;  %v4380_v41 = vadd.f32 %v4676_v56, %v4379_v25  ;;  %v5289_v6 = vpop.f32.mrb[123].mxu0 }
0x2217   :  { %v4394_v16 = vadd.f32 %v4380_v41, %v7146_v54  ;;  %v4407_v32 = vsel %vm74_vm0, %v4393_v1, 0.0 }
0x2218   :  { %4408 = vadd.xlane.f32.xlu0 %v4407_v32 }
0x2219   :  { %v4410_v18 = vsel %vm74_vm0, %v4394_v16, 0.0 }
0x221a   :  { %4411 = vadd.xlane.f32.xlu1 %v4410_v18  ;;  %v4384_v43 = vpop.f32.mrb[124].mxu0 }
0x221b   :  { %v4385_v37 = vadd.f32 %v4676_v56, %v4384_v43  ;;  %v5292_v14 = vpop.f32.mrb[125].mxu0 }
0x221c   :  { %v4387_v59 = vpop.f32.mrb[126].mxu0 }
0x221d   :  { %v4395_v4 = vadd.f32 %v4385_v37, %v7153_v29  ;;  %v4388_v30 = vadd.f32 %v4676_v56, %v4387_v59  ;;  %v5293_v40 = vpop.f32.mrb[127].mxu0 }
0x221f   :  { %v4396_v3 = vadd.f32 %v4388_v30, %v7156_v61  ;;  %v4413_v45 = vsel %vm74_vm0, %v4395_v4, 0.0 }
0x2220   :  { %4414 = vadd.xlane.f32.xlu0 %v4413_v45 }
0x2221   :  { %v4416_v54 = vsel %vm74_vm0, %v4396_v3, 0.0 }
0x2222   :  { %4417 = vadd.xlane.f32.xlu1 %v4416_v54 }
0x2282   :  { %v4403_v50 = vpop.xlane.xlu0 %4402 }
0x2283   :  { %v4419_v49 = vmul.f32 0.03125, %v4403_v50 }
0x2284   :  { %v4406_v55 = vpop.xlane.xlu1 %4405 }
0x2285   :  { %v4425_v0 = vsub.f32 %v4391_v5, %v4419_v49  ;;  %v4420_v19 = vmul.f32 0.03125, %v4406_v55 }
0x2287   :  { %v4426_v21 = vsub.f32 %v4392_v42, %v4420_v19  ;;  %v4431_v39 = vmul.f32 %v4425_v0, %v4425_v0 }
0x2289   :  { %v4437_v28 = vsel %vm74_vm0, %v4431_v39, 0.0  ;;  %v4432_v29 = vmul.f32 %v4426_v21, %v4426_v21 }
0x228a   :  { %4438 = vadd.xlane.f32.xlu0 %v4437_v28 }
0x228b   :  { %v4440_v36 = vsel %vm74_vm0, %v4432_v29, 0.0 }
0x228c   :  { %4441 = vadd.xlane.f32.xlu1 %v4440_v36 }
0x22a5   :  { %v4409_v61 = vpop.xlane.xlu0 %4408 }
0x22a6   :  { %v4421_v23 = vmul.f32 0.03125, %v4409_v61 }
0x22a7   :  { %v4412_v34 = vpop.xlane.xlu1 %4411 }
0x22a8   :  { %v4427_v8 = vsub.f32 %v4393_v1, %v4421_v23  ;;  %v4422_v38 = vmul.f32 0.03125, %v4412_v34 }
0x22aa   :  { %v4428_v10 = vsub.f32 %v4394_v16, %v4422_v38  ;;  %v4433_v51 = vmul.f32 %v4427_v8, %v4427_v8 }
0x22ac   :  { %v4443_v33 = vsel %vm74_vm0, %v4433_v51, 0.0  ;;  %v4434_v12 = vmul.f32 %v4428_v10, %v4428_v10 }
0x22ad   :  { %4444 = vadd.xlane.f32.xlu0 %v4443_v33  ;;  %v4415_v60 = vpop.xlane.xlu0 %4414 }
0x22ae   :  { %v4423_v24 = vmul.f32 0.03125, %v4415_v60  ;;  %v4446_v46 = vsel %vm74_vm0, %v4434_v12, 0.0 }
0x22af   :  { %4447 = vadd.xlane.f32.xlu1 %v4446_v46  ;;  %v4418_v62 = vpop.xlane.xlu1 %4417 }
0x22b0   :  { %v4429_v27 = vsub.f32 %v4395_v4, %v4423_v24  ;;  %v4424_v57 = vmul.f32 0.03125, %v4418_v62 }
0x22b2   :  { %v4430_v53 = vsub.f32 %v4396_v3, %v4424_v57  ;;  %v4435_v58 = vmul.f32 %v4429_v27, %v4429_v27 }
0x22b4   :  { %v4449_v9 = vsel %vm74_vm0, %v4435_v58, 0.0  ;;  %v4436_v20 = vmul.f32 %v4430_v53, %v4430_v53 }
0x22b5   :  { %4450 = vadd.xlane.f32.xlu0 %v4449_v9 }
0x22b6   :  { %v4452_v22 = vsel %vm74_vm0, %v4436_v20, 0.0 }
0x22b7   :  { %4453 = vadd.xlane.f32.xlu1 %v4452_v22 }
0x2317   :  { %v4439_v48 = vpop.xlane.xlu0 %4438 }
0x2318   :  { %v4455_v44 = vmul.f32 0.03125, %v4439_v48 }
0x2319   :  { %v4442_v52 = vpop.xlane.xlu1 %4441 }
0x231a   :  { %v4461_v56 = vadd.f32 1e-05, %v4455_v44  ;;  %v4456_v26 = vmul.f32 0.03125, %v4442_v52 }
0x231c   :  { %5720 = vrsqrt.f32 %v4461_v56  ;;  %v4462_v47 = vadd.f32 1e-05, %v4456_v26 }
0x231e   :  { %5722 = vrsqrt.f32 %v4462_v47 }
0x2326   :  { %v5721_v63 = vpop.eup %5720 }
0x2327   :  { %v4473_v5 = vmul.f32 %v5721_v63, %v4425_v0 }
0x2328   :  { %v5723_v17 = vpop.eup %5722 }
0x2329   :  { %v4485_v42 = vmul.f32 %v4686_v7, %v4473_v5  ;;  %v4474_v13 = vmul.f32 %v5723_v17, %v4426_v21 }
0x232b   :  { %v4497_v15 = vadd.f32 %v4687_v2, %v4485_v42  ;;  %v4486_v11 = vmul.f32 %v4686_v7, %v4474_v13 }
0x232d   :  { %4503 = vst.msk [vmem:[%s7298_s18] sm:$0xff] %vm74_vm0, %v4497_v15  ;;  %v4498_v31 = vadd.f32 %v4687_v2, %v4486_v11 }
0x232f   :  { %4504 = vst.msk [vmem:[%s7298_s18 + $0x8] sm:$0xff] %vm74_vm0, %v4498_v31 }
0x233a   :  { %v4445_v35 = vpop.xlane.xlu0 %4444 }
0x233b   :  { %v4457_v25 = vmul.f32 0.03125, %v4445_v35 }
0x233c   :  { %v4448_v1 = vpop.xlane.xlu1 %4447 }
0x233d   :  { %v4463_v41 = vadd.f32 1e-05, %v4457_v25  ;;  %v4458_v6 = vmul.f32 0.03125, %v4448_v1 }
0x233f   :  { %5724 = vrsqrt.f32 %v4463_v41  ;;  %v4464_v16 = vadd.f32 1e-05, %v4458_v6 }
0x2341   :  { %5726 = vrsqrt.f32 %v4464_v16 }
0x2342   :  { %v4451_v32 = vpop.xlane.xlu0 %4450 }
0x2343   :  { %v4459_v18 = vmul.f32 0.03125, %v4451_v32 }
0x2344   :  { %v4454_v43 = vpop.xlane.xlu1 %4453 }
0x2345   :  { %v4465_v37 = vadd.f32 1e-05, %v4459_v18  ;;  %v4460_v14 = vmul.f32 0.03125, %v4454_v43 }
0x2347   :  { %5728 = vrsqrt.f32 %v4465_v37  ;;  %v4466_v59 = vadd.f32 1e-05, %v4460_v14 }
0x2349   :  { %v5725_v4 = vpop.eup %5724  ;;  %5730 = vrsqrt.f32 %v4466_v59 }
0x234a   :  { %v4475_v30 = vmul.f32 %v5725_v4, %v4427_v8 }
0x234b   :  { %v5727_v40 = vpop.eup %5726 }
0x234c   :  { %v4487_v3 = vmul.f32 %v4686_v7, %v4475_v30  ;;  %v4476_v45 = vmul.f32 %v5727_v40, %v4428_v10 }
0x234e   :  { %v4499_v54 = vadd.f32 %v4687_v2, %v4487_v3  ;;  %v4488_v50 = vmul.f32 %v4686_v7, %v4476_v45 }
0x2350   :  { %4505 = vst.msk [vmem:[%s7298_s18 + $0x10] sm:$0xff] %vm74_vm0, %v4499_v54  ;;  %v4500_v49 = vadd.f32 %v4687_v2, %v4488_v50 }
0x2351   :  { %v5729_v55 = vpop.eup %5728 }
0x2352   :  { %4506 = vst.msk [vmem:[%s7298_s18 + $0x18] sm:$0xff] %vm74_vm0, %v4500_v49  ;;  %v4477_v0 = vmul.f32 %v5729_v55, %v4429_v27 }
0x2353   :  { %v5731_v19 = vpop.eup %5730 }
0x2354   :  { %v4489_v21 = vmul.f32 %v4686_v7, %v4477_v0  ;;  %v4478_v39 = vmul.f32 %v5731_v19, %v4430_v53 }
0x2356   :  { %v4501_v28 = vadd.f32 %v4687_v2, %v4489_v21  ;;  %v4490_v29 = vmul.f32 %v4686_v7, %v4478_v39 }
0x2358   :  { %4507 = vst.msk [vmem:[%s7298_s18 + $0x20] sm:$0xff] %vm74_vm0, %v4501_v28  ;;  %v4502_v36 = vadd.f32 %v4687_v2, %v4490_v29 }
0x235a   :  { %4508 = vst.msk [vmem:[%s7298_s18 + $0x28] sm:$0xff] %vm74_vm0, %v4502_v36 }

</bundles_post_ra>
